<compile_context>
chip_gen: v5e
topology: v5e:2x2
jax: 0.10.0
libtpu: 0.0.40
codegen_flags: <defaults>
</compile_context>

<pallas_src>
import math
import functools

import jax
import jax.numpy as jnp
from jax.experimental import pallas as pl
from jax.experimental.pallas import tpu as pltpu


# -------------------------- in-kernel helpers --------------------------

def _layer_norm(x, gamma, beta, eps=1e-5):
    # x: (tq, D), gamma/beta: (1, D); matches torch.nn.LayerNorm (biased variance)
    mu = jnp.mean(x, axis=-1, keepdims=True)
    var = jnp.mean((x - mu) ** 2, axis=-1, keepdims=True)
    return (x - mu) * jax.lax.rsqrt(var + eps) * gamma + beta


# -------------------------- fused encoder-stack kernel --------------------------

def encoder_stack_kernel(x_ref, pos_ref,
                         wq_ref, bq_ref, wk_ref, bk_ref, wv_ref, bv_ref,
                         wo_ref, bo_ref,
                         w1_ref, b1_ref, w2_ref, b2_ref,
                         g1_ref, be1_ref, g2_ref, be2_ref,
                         gf_ref, bf_ref,
                         o_ref,
                         x_vmem, k_vmem, v_vmem,
                         *, nhead, q_tile, apply_final_norm, exp_dtype):
    l = pl.program_id(1)
    n_layers = pl.num_programs(1)

    # At the first layer of each batch element, load the input slab into the carry.
    @pl.when(l == 0)
    def _():
        x_vmem[...] = x_ref[0]

    S, D = x_vmem.shape
    Dh = D // nhead
    nqt = S // q_tile

    # ---- Full-sequence K / V projections, once per layer --------------------
    # (S, D) slabs fit VMEM even at DETR sizes; the head-split relayout happens
    # once per layer here, not per q-tile.
    x_full = x_vmem[...]                                  # (S, D) f32 carry
    qk_full = (x_full + pos_ref[0]).astype(jnp.bfloat16)  # q = k = src + pos
    k = jnp.dot(qk_full, wk_ref[0], preferred_element_type=jnp.float32) + bk_ref[0]
    v = jnp.dot(x_full.astype(jnp.bfloat16), wv_ref[0],   # value = src (no pos)
                preferred_element_type=jnp.float32) + bv_ref[0]
    k_vmem[...] = jnp.swapaxes(k.astype(jnp.bfloat16).reshape(S, nhead, Dh), 0, 1)
    v_vmem[...] = jnp.swapaxes(v.astype(jnp.bfloat16).reshape(S, nhead, Dh), 0, 1)

    # ---- q-row tiled attention + FFN ----------------------------------------
    # Each tile only reads its own rows of the carry (K/V already extracted above),
    # so the carry can be updated in place, tile by tile.
    @pl.loop(0, nqt)
    def _(qt):
        q0 = pl.multiple_of(qt * q_tile, q_tile)
        x_t = x_vmem[pl.ds(q0, q_tile), :]                               # (tq, D) f32
        qk_t = (x_t + pos_ref[0, pl.ds(q0, q_tile), :]).astype(jnp.bfloat16)

        # Q projection (1/sqrt(Dh) pre-folded into wq/bq on the host).
        q = jnp.dot(qk_t, wq_ref[0], preferred_element_type=jnp.float32) + bq_ref[0]
        qh = jnp.swapaxes(q.astype(jnp.bfloat16).reshape(q_tile, nhead, Dh), 0, 1)

        # Scores for this q-tile against the full sequence: (H, tq, S) only.
        s = jnp.einsum('hqd,hkd->hqk', qh, k_vmem[...],
                       preferred_element_type=jnp.float32)
        s = s - jnp.max(s, axis=-1, keepdims=True)
        p = jnp.exp(s.astype(exp_dtype))              # bf16 exp on v6e/v7x (EUP 2x)
        row = jnp.sum(p.astype(jnp.float32), axis=-1, keepdims=True)

        # Unnormalized context, then deferred EXACT softmax normalization on the
        # small (H, tq, Dh) tensor instead of the (H, tq, S) probability slab.
        ctx = jnp.einsum('hqk,hkd->hqd', p.astype(jnp.bfloat16), v_vmem[...],
                         preferred_element_type=jnp.float32)
        ctx = ctx * pl.reciprocal(row)

        # Head merge (small per-tile relayout) + output projection.
        attn = jnp.swapaxes(ctx, 0, 1).reshape(q_tile, D)
        attn = jnp.dot(attn.astype(jnp.bfloat16), wo_ref[0],
                       preferred_element_type=jnp.float32) + bo_ref[0]

        # Residual + LayerNorm1 (f32).
        x1 = _layer_norm(x_t + attn, g1_ref[0], be1_ref[0])

        # Feed-forward chunked over the same q-rows (never materializes (S, FF)).
        h1 = jnp.maximum(
            jnp.dot(x1.astype(jnp.bfloat16), w1_ref[0],
                    preferred_element_type=jnp.float32) + b1_ref[0], 0.0)
        ff = jnp.dot(h1.astype(jnp.bfloat16), w2_ref[0],
                     preferred_element_type=jnp.float32) + b2_ref[0]

        # Residual + LayerNorm2 -> in-place carry update for the next layer.
        x2 = _layer_norm(x1 + ff, g2_ref[0], be2_ref[0])
        x_vmem[pl.ds(q0, q_tile), :] = x2

        # On the last layer, emit this tile (with the fused final LayerNorm if any).
        @pl.when(l == n_layers - 1)
        def _():
            if apply_final_norm:
                o_ref[0, pl.ds(q0, q_tile), :] = _layer_norm(x2, gf_ref[...], bf_ref[...])
            else:
                o_ref[0, pl.ds(q0, q_tile), :] = x2


# -------------------------- wrapper --------------------------

def transformer_encoder(src_sbd, pos_sbd, layer_params, final_norm, nhead,
                        q_tile=128, exp_dtype=jnp.bfloat16):
    """src_sbd, pos_sbd: (S, B, D) seq-first, like PyTorch. Returns (S, B, D).

    q_tile:   rows of the sequence processed per inner attention/FFN step
              (use >=128 at production sizes so the MXU M dimension is full).
    exp_dtype: jnp.bfloat16 on v6e/v7x (faster EUP); pass jnp.float32 on v5e.
    """
    S, B, D = src_sbd.shape
    L = len(layer_params)
    assert D % nhead == 0
    Dh = D // nhead
    q_tile = min(q_tile, S)
    assert S % q_tile == 0, "S must be divisible by q_tile"
    scale = 1.0 / math.sqrt(Dh)

    # Single layout transpose in / out for the whole stack (not per layer).
    x = jnp.transpose(src_sbd, (1, 0, 2))        # (B, S, D)
    pos = jnp.transpose(pos_sbd, (1, 0, 2))

    def stack(name):
        return jnp.stack([p[name] for p in layer_params], axis=0)

    wqkv_t = stack("wqkv_t")                     # (L, D, 3D) f32
    bqkv = stack("bqkv")                         # (L, 1, 3D) f32
    # Split q/k/v, fold 1/sqrt(Dh) into the q weight AND bias, cast weights to bf16.
    wq = (wqkv_t[:, :, 0:D] * scale).astype(jnp.bfloat16)
    wk = wqkv_t[:, :, D:2 * D].astype(jnp.bfloat16)
    wv = wqkv_t[:, :, 2 * D:3 * D].astype(jnp.bfloat16)
    bq = bqkv[:, :, 0:D] * scale
    bk = bqkv[:, :, D:2 * D]
    bv = bqkv[:, :, 2 * D:3 * D]

    wo = stack("wo_t").astype(jnp.bfloat16)      # (L, D, D)
    bo = stack("bo")                             # (L, 1, D)
    w1 = stack("w1_t").astype(jnp.bfloat16)      # (L, D, FF)
    b1 = stack("b1")                             # (L, 1, FF)
    w2 = stack("w2_t").astype(jnp.bfloat16)      # (L, FF, D)
    b2 = stack("b2")                             # (L, 1, D)
    g1 = stack("g1"); be1 = stack("be1")
    g2 = stack("g2"); be2 = stack("be2")

    apply_final_norm = final_norm is not None
    if apply_final_norm:
        gf, bf = final_norm["g"], final_norm["b"]
    else:
        gf = jnp.ones((1, D), jnp.float32)
        bf = jnp.zeros((1, D), jnp.float32)

    tok_spec = pl.BlockSpec((1, S, D), lambda b, l: (b, 0, 0))

    def layer_spec(arr):
        n = arr.ndim - 1
        return pl.BlockSpec((1,) + arr.shape[1:],
                            lambda b, l, n=n: (l,) + (0,) * n)

    weights = [wq, bq, wk, bk, wv, bv, wo, bo, w1, b1, w2, b2, g1, be1, g2, be2]

    # NOTE: correctness of the deferred output writeback (only the last layer writes
    # o_ref) relies on the layer axis being the INNER, "arbitrary" grid axis with the
    # output block index constant across it. Do not reorder the grid or mark L parallel.
    out = pl.pallas_call(
        functools.partial(encoder_stack_kernel, nhead=nhead, q_tile=q_tile,
                          apply_final_norm=apply_final_norm, exp_dtype=exp_dtype),
        out_shape=jax.ShapeDtypeStruct((B, S, D), jnp.float32),
        grid_spec=pltpu.PrefetchScalarGridSpec(
            num_scalar_prefetch=0,
            grid=(B, L),
            in_specs=[tok_spec, tok_spec]
                     + [layer_spec(w) for w in weights]
                     + [pl.BlockSpec((1, D), lambda b, l: (0, 0))] * 2,
            out_specs=tok_spec,
            scratch_shapes=[pltpu.VMEM((S, D), jnp.float32),          # carry
                            pltpu.VMEM((nhead, S, Dh), jnp.bfloat16),  # K heads
                            pltpu.VMEM((nhead, S, Dh), jnp.bfloat16)], # V heads
        ),
        compiler_params=pltpu.CompilerParams(
            dimension_semantics=("parallel", "arbitrary"),
            # Re-derived budget after q-tiling: carry + K/V scratch + per-tile
            # temporaries + double-buffered layer weights stay well under 32 MiB
            # at DETR sizes, leaving headroom on v7x's 64 MiB VMEM.
            vmem_limit_bytes=32 * 1024 * 1024,
        ),
    )(x, pos, *weights, gf, bf)

    return jnp.transpose(out, (1, 0, 2))         # back to (S, B, D)


# -------------------------- pure-JAX reference (f32) --------------------------

def _ref_layer(x, pos, p, nhead):
    # x, pos: (B, S, D)
    B, S, D = x.shape
    Dh = D // nhead
    qk_in = x + pos
    q = qk_in @ p["wqkv_t"][:, 0:D] + p["bqkv"][0, 0:D]
    k = qk_in @ p["wqkv_t"][:, D:2 * D] + p["bqkv"][0, D:2 * D]
    v = x @ p["wqkv_t"][:, 2 * D:3 * D] + p["bqkv"][0, 2 * D:3 * D]
    q = q.reshape(B, S, nhead, Dh) / math.sqrt(Dh)
    k = k.reshape(B, S, nhead, Dh)
    v = v.reshape(B, S, nhead, Dh)
    s = jnp.einsum("bqhd,bkhd->bhqk", q, k)
    pattn = jax.nn.softmax(s, axis=-1)
    o = jnp.einsum("bhqk,bkhd->bqhd", pattn, v).reshape(B, S, D)
    o = o @ p["wo_t"] + p["bo"][0]

    def ln(y, g, b):
        mu = y.mean(-1, keepdims=True)
        var = ((y - mu) ** 2).mean(-1, keepdims=True)
        return (y - mu) / jnp.sqrt(var + 1e-5) * g[0] + b[0]

    x1 = ln(x + o, p["g1"], p["be1"])
    ff = jnp.maximum(x1 @ p["w1_t"] + p["b1"][0], 0.0) @ p["w2_t"] + p["b2"][0]
    return ln(x1 + ff, p["g2"], p["be2"])


def _ref_encoder(src_sbd, pos_sbd, layer_params, final_norm, nhead):
    x = jnp.transpose(src_sbd, (1, 0, 2))
    pos = jnp.transpose(pos_sbd, (1, 0, 2))
    for p in layer_params:
        x = _ref_layer(x, pos, p, nhead)
    if final_norm is not None:
        mu = x.mean(-1, keepdims=True)
        var = ((x - mu) ** 2).mean(-1, keepdims=True)
        x = (x - mu) / jnp.sqrt(var + 1e-5) * final_norm["g"][0] + final_norm["b"][0]
    return jnp.transpose(x, (1, 0, 2))


# -------------------------- parameter construction --------------------------

def make_layer_params(key, d_model, nhead, dim_feedforward):
    ks = jax.random.split(key, 10)
    s = 0.05
    return {
        # pre-transposed weights so the kernel does x @ W_T (no in-kernel transposes)
        "wqkv_t": jax.random.normal(ks[0], (d_model, 3 * d_model), jnp.float32) * s,
        "bqkv":   jax.random.normal(ks[1], (1, 3 * d_model), jnp.float32) * s,
        "wo_t":   jax.random.normal(ks[2], (d_model, d_model), jnp.float32) * s,
        "bo":     jax.random.normal(ks[3], (1, d_model), jnp.float32) * s,
        "w1_t":   jax.random.normal(ks[4], (d_model, dim_feedforward), jnp.float32) * s,
        "b1":     jax.random.normal(ks[5], (1, dim_feedforward), jnp.float32) * s,
        "w2_t":   jax.random.normal(ks[6], (dim_feedforward, d_model), jnp.float32) * s,
        "b2":     jax.random.normal(ks[7], (1, d_model), jnp.float32) * s,
        "g1":     1.0 + jax.random.normal(ks[8], (1, d_model), jnp.float32) * 0.01,
        "be1":    jnp.zeros((1, d_model), jnp.float32),
        "g2":     1.0 + jax.random.normal(ks[9], (1, d_model), jnp.float32) * 0.01,
        "be2":    jnp.zeros((1, d_model), jnp.float32),
    }


# -------------------------- main --------------------------

if __name__ == "__main__":
    # Small but lane-friendly shapes: D multiple of 128, S multiple of 8.
    S, B, D = 32, 2, 128        # seq, batch, d_model
    NHEAD = 4                   # head_dim = 32
    DIM_FF = 256
    NUM_LAYERS = 2
    Q_TILE = 16                 # 2 q-tiles -> exercises the in-kernel tiling loop

    root = jax.random.PRNGKey(0)
    k_src, k_pos, k_fn, *k_layers = jax.random.split(root, 3 + NUM_LAYERS)

    src = jax.random.normal(k_src, (S, B, D), jnp.float32)
    pos = jax.random.normal(k_pos, (S, B, D), jnp.float32)

    layer_params = [make_layer_params(k, D, NHEAD, DIM_FF) for k in k_layers]
    final_norm = {
        "g": 1.0 + jax.random.normal(k_fn, (1, D), jnp.float32) * 0.01,
        "b": jnp.zeros((1, D), jnp.float32),
    }

    out = transformer_encoder(src, pos, layer_params, final_norm, NHEAD,
                              q_tile=Q_TILE, exp_dtype=jnp.bfloat16)
    out = jax.block_until_ready(out)

    ref = _ref_encoder(src, pos, layer_params, final_norm, NHEAD)
    assert out.shape == (S, B, D)
    # bf16 matmul operands + bf16 exp => relaxed tolerance vs f32 reference.
    assert jnp.allclose(out, ref, rtol=5e-2, atol=5e-2), "mismatch vs reference"

    print("KERNEL_OK")
</pallas_src>

<mosaic_0001>
module attributes {stable_mosaic.version = 11 : i64} {
  func.func @encoder_stack_kernel(%arg0: i32, %arg1: i32, %arg2: memref<1x32x128xf32, #tpu.memory_space<vmem>>, %arg3: memref<1x32x128xf32, #tpu.memory_space<vmem>>, %arg4: memref<1x128x128xbf16, #tpu.memory_space<vmem>>, %arg5: memref<1x1x128xf32, #tpu.memory_space<vmem>>, %arg6: memref<1x128x128xbf16, #tpu.memory_space<vmem>>, %arg7: memref<1x1x128xf32, #tpu.memory_space<vmem>>, %arg8: memref<1x128x128xbf16, #tpu.memory_space<vmem>>, %arg9: memref<1x1x128xf32, #tpu.memory_space<vmem>>, %arg10: memref<1x128x128xbf16, #tpu.memory_space<vmem>>, %arg11: memref<1x1x128xf32, #tpu.memory_space<vmem>>, %arg12: memref<1x128x256xbf16, #tpu.memory_space<vmem>>, %arg13: memref<1x1x256xf32, #tpu.memory_space<vmem>>, %arg14: memref<1x256x128xbf16, #tpu.memory_space<vmem>>, %arg15: memref<1x1x128xf32, #tpu.memory_space<vmem>>, %arg16: memref<1x1x128xf32, #tpu.memory_space<vmem>>, %arg17: memref<1x1x128xf32, #tpu.memory_space<vmem>>, %arg18: memref<1x1x128xf32, #tpu.memory_space<vmem>>, %arg19: memref<1x1x128xf32, #tpu.memory_space<vmem>>, %arg20: memref<1x128xf32, #tpu.memory_space<vmem>>, %arg21: memref<1x128xf32, #tpu.memory_space<vmem>>, %arg22: memref<1x32x128xf32, #tpu.memory_space<vmem>>, %arg23: memref<32x128xf32, #tpu.memory_space<vmem>>, %arg24: memref<4x32x32xbf16, #tpu.memory_space<vmem>>, %arg25: memref<4x32x32xbf16, #tpu.memory_space<vmem>>) attributes {dimension_semantics = [#tpu.dimension_semantics<parallel>, #tpu.dimension_semantics<arbitrary>], iteration_bounds = array<i64: 2, 2>, scalar_prefetch = 0 : i64, scratch_operands = 3 : i64, tpu.core_type = #tpu.core_type<tc>, window_params = [{transform_indices = @transform_0, window_bounds = array<i64: 1, 32, 128>}, {transform_indices = @transform_1, window_bounds = array<i64: 1, 32, 128>}, {transform_indices = @transform_2, window_bounds = array<i64: 1, 128, 128>}, {transform_indices = @transform_3, window_bounds = array<i64: 1, 1, 128>}, {transform_indices = @transform_4, window_bounds = array<i64: 1, 128, 128>}, {transform_indices = @transform_5, window_bounds = array<i64: 1, 1, 128>}, {transform_indices = @transform_6, window_bounds = array<i64: 1, 128, 128>}, {transform_indices = @transform_7, window_bounds = array<i64: 1, 1, 128>}, {transform_indices = @transform_8, window_bounds = array<i64: 1, 128, 128>}, {transform_indices = @transform_9, window_bounds = array<i64: 1, 1, 128>}, {transform_indices = @transform_10, window_bounds = array<i64: 1, 128, 256>}, {transform_indices = @transform_11, window_bounds = array<i64: 1, 1, 256>}, {transform_indices = @transform_12, window_bounds = array<i64: 1, 256, 128>}, {transform_indices = @transform_13, window_bounds = array<i64: 1, 1, 128>}, {transform_indices = @transform_14, window_bounds = array<i64: 1, 1, 128>}, {transform_indices = @transform_15, window_bounds = array<i64: 1, 1, 128>}, {transform_indices = @transform_16, window_bounds = array<i64: 1, 1, 128>}, {transform_indices = @transform_17, window_bounds = array<i64: 1, 1, 128>}, {pipeline_mode = #tpu.pipeline_mode<synchronous>, transform_indices = @transform_18, window_bounds = array<i64: 1, 128>}, {pipeline_mode = #tpu.pipeline_mode<synchronous>, transform_indices = @transform_19, window_bounds = array<i64: 1, 128>}, {transform_indices = @transform_20, window_bounds = array<i64: 1, 32, 128>}]} {
    %c0_i32 = arith.constant 0 : i32
    %0 = arith.cmpi eq, %arg1, %c0_i32 : i32
    %1 = arith.extui %0 : i1 to i32
    %c0_i32_0 = arith.constant 0 : i32
    %2 = arith.cmpi ne, %1, %c0_i32_0 : i32
    scf.if %2 {
      %c0_26 = arith.constant 0 : index
      %c0_27 = arith.constant 0 : index
      %c0_28 = arith.constant 0 : index
      %32 = vector.load %arg2[%c0_26, %c0_27, %c0_28] : memref<1x32x128xf32, #tpu.memory_space<vmem>>, vector<1x32x128xf32>
      %33 = vector.shape_cast %32 : vector<1x32x128xf32> to vector<32x128xf32>
      %c0_29 = arith.constant 0 : index
      %c0_30 = arith.constant 0 : index
      %34 = vector.load %arg23[%c0_29, %c0_30] : memref<32x128xf32, #tpu.memory_space<vmem>>, vector<32x128xf32>
      tpu.vector_store %arg23[%c0_29, %c0_30], %33 {strides = array<i32>} : memref<32x128xf32, #tpu.memory_space<vmem>>, vector<32x128xf32>,
    } else {
    }
    %c0 = arith.constant 0 : index
    %c0_1 = arith.constant 0 : index
    %3 = vector.load %arg23[%c0, %c0_1] : memref<32x128xf32, #tpu.memory_space<vmem>>, vector<32x128xf32>
    %c0_2 = arith.constant 0 : index
    %c0_3 = arith.constant 0 : index
    %c0_4 = arith.constant 0 : index
    %4 = vector.load %arg3[%c0_2, %c0_3, %c0_4] : memref<1x32x128xf32, #tpu.memory_space<vmem>>, vector<1x32x128xf32>
    %5 = vector.shape_cast %4 : vector<1x32x128xf32> to vector<32x128xf32>
    %6 = arith.addf %3, %5 : vector<32x128xf32>
    %7 = arith.truncf %6 : vector<32x128xf32> to vector<32x128xbf16>
    %c0_5 = arith.constant 0 : index
    %c0_6 = arith.constant 0 : index
    %c0_7 = arith.constant 0 : index
    %8 = vector.load %arg6[%c0_5, %c0_6, %c0_7] : memref<1x128x128xbf16, #tpu.memory_space<vmem>>, vector<1x128x128xbf16>
    %9 = vector.shape_cast %8 : vector<1x128x128xbf16> to vector<128x128xbf16>
    %cst = arith.constant dense<0.000000e+00> : vector<32x128xf32>
    %10 = tpu.matmul %7, %9, %cst {dimension_numbers = #tpu.dot_dimension_numbers<[1], [0], [0], [1], [0, 0, 1, 1], [], []>} : vector<32x128xbf16>, vector<128x128xbf16>, vector<32x128xf32> -> vector<32x128xf32>
    %c0_8 = arith.constant 0 : index
    %c0_9 = arith.constant 0 : index
    %c0_10 = arith.constant 0 : index
    %11 = vector.load %arg7[%c0_8, %c0_9, %c0_10] : memref<1x1x128xf32, #tpu.memory_space<vmem>>, vector<1x1x128xf32>
    %12 = vector.shape_cast %11 : vector<1x1x128xf32> to vector<1x128xf32>
    %13 = vector.broadcast %12 : vector<1x128xf32> to vector<32x128xf32>
    %14 = arith.addf %10, %13 : vector<32x128xf32>
    %15 = arith.truncf %3 : vector<32x128xf32> to vector<32x128xbf16>
    %c0_11 = arith.constant 0 : index
    %c0_12 = arith.constant 0 : index
    %c0_13 = arith.constant 0 : index
    %16 = vector.load %arg8[%c0_11, %c0_12, %c0_13] : memref<1x128x128xbf16, #tpu.memory_space<vmem>>, vector<1x128x128xbf16>
    %17 = vector.shape_cast %16 : vector<1x128x128xbf16> to vector<128x128xbf16>
    %cst_14 = arith.constant dense<0.000000e+00> : vector<32x128xf32>
    %18 = tpu.matmul %15, %17, %cst_14 {dimension_numbers = #tpu.dot_dimension_numbers<[1], [0], [0], [1], [0, 0, 1, 1], [], []>} : vector<32x128xbf16>, vector<128x128xbf16>, vector<32x128xf32> -> vector<32x128xf32>
    %c0_15 = arith.constant 0 : index
    %c0_16 = arith.constant 0 : index
    %c0_17 = arith.constant 0 : index
    %19 = vector.load %arg9[%c0_15, %c0_16, %c0_17] : memref<1x1x128xf32, #tpu.memory_space<vmem>>, vector<1x1x128xf32>
    %20 = vector.shape_cast %19 : vector<1x1x128xf32> to vector<1x128xf32>
    %21 = vector.broadcast %20 : vector<1x128xf32> to vector<32x128xf32>
    %22 = arith.addf %18, %21 : vector<32x128xf32>
    %23 = arith.truncf %14 : vector<32x128xf32> to vector<32x128xbf16>
    %24 = vector.shape_cast %23 : vector<32x128xbf16> to vector<32x4x32xbf16>
    %25 = tpu.transpose %24, [1, 0, 2] : vector<32x4x32xbf16> -> vector<4x32x32xbf16>
    %c0_18 = arith.constant 0 : index
    %c0_19 = arith.constant 0 : index
    %c0_20 = arith.constant 0 : index
    %26 = vector.load %arg24[%c0_18, %c0_19, %c0_20] : memref<4x32x32xbf16, #tpu.memory_space<vmem>>, vector<4x32x32xbf16>
    tpu.vector_store %arg24[%c0_18, %c0_19, %c0_20], %25 {strides = array<i32>} : memref<4x32x32xbf16, #tpu.memory_space<vmem>>, vector<4x32x32xbf16>,
    %27 = arith.truncf %22 : vector<32x128xf32> to vector<32x128xbf16>
    %28 = vector.shape_cast %27 : vector<32x128xbf16> to vector<32x4x32xbf16>
    %29 = tpu.transpose %28, [1, 0, 2] : vector<32x4x32xbf16> -> vector<4x32x32xbf16>
    %c0_21 = arith.constant 0 : index
    %c0_22 = arith.constant 0 : index
    %c0_23 = arith.constant 0 : index
    %30 = vector.load %arg25[%c0_21, %c0_22, %c0_23] : memref<4x32x32xbf16, #tpu.memory_space<vmem>>, vector<4x32x32xbf16>
    tpu.vector_store %arg25[%c0_21, %c0_22, %c0_23], %29 {strides = array<i32>} : memref<4x32x32xbf16, #tpu.memory_space<vmem>>, vector<4x32x32xbf16>,
    %c0_i32_24 = arith.constant 0 : i32
    %c2_i32 = arith.constant 2 : i32
    %31 = arith.addi %c0_i32_24, %c2_i32 : i32
    %c1_i32 = arith.constant 1 : i32
    scf.for %arg26 = %c0_i32_24 to %31 step %c1_i32  : i32 {
      %c1_i32_26 = arith.constant 1 : i32
      %32 = arith.muli %arg26, %c1_i32_26 : i32
      %c0_i32_27 = arith.constant 0 : i32
      %33 = arith.addi %c0_i32_27, %32 : i32
      %c16_i32 = arith.constant 16 : i32
      %34 = arith.muli %33, %c16_i32 : i32
      %35 = tpu.assume_multiple %34, 16 : i32
      %36 = arith.index_cast %35 : i32 to index
      %c0_28 = arith.constant 0 : index
      %37 = vector.load %arg23[%36, %c0_28] : memref<32x128xf32, #tpu.memory_space<vmem>>, vector<16x128xf32>
      %c0_29 = arith.constant 0 : index
      %38 = arith.index_cast %35 : i32 to index
      %c0_30 = arith.constant 0 : index
      %39 = vector.load %arg3[%c0_29, %38, %c0_30] : memref<1x32x128xf32, #tpu.memory_space<vmem>>, vector<1x16x128xf32>
      %40 = vector.shape_cast %39 : vector<1x16x128xf32> to vector<16x128xf32>
      %41 = arith.addf %37, %40 : vector<16x128xf32>
      %42 = arith.truncf %41 : vector<16x128xf32> to vector<16x128xbf16>
      %c0_31 = arith.constant 0 : index
      %c0_32 = arith.constant 0 : index
      %c0_33 = arith.constant 0 : index
      %43 = vector.load %arg4[%c0_31, %c0_32, %c0_33] : memref<1x128x128xbf16, #tpu.memory_space<vmem>>, vector<1x128x128xbf16>
      %44 = vector.shape_cast %43 : vector<1x128x128xbf16> to vector<128x128xbf16>
      %cst_34 = arith.constant dense<0.000000e+00> : vector<16x128xf32>
      %45 = tpu.matmul %42, %44, %cst_34 {dimension_numbers = #tpu.dot_dimension_numbers<[1], [0], [0], [1], [0, 0, 1, 1], [], []>} : vector<16x128xbf16>, vector<128x128xbf16>, vector<16x128xf32> -> vector<16x128xf32>
      %c0_35 = arith.constant 0 : index
      %c0_36 = arith.constant 0 : index
      %c0_37 = arith.constant 0 : index
      %46 = vector.load %arg5[%c0_35, %c0_36, %c0_37] : memref<1x1x128xf32, #tpu.memory_space<vmem>>, vector<1x1x128xf32>
      %47 = vector.shape_cast %46 : vector<1x1x128xf32> to vector<1x128xf32>
      %48 = vector.broadcast %47 : vector<1x128xf32> to vector<16x128xf32>
      %49 = arith.addf %45, %48 : vector<16x128xf32>
      %50 = arith.truncf %49 : vector<16x128xf32> to vector<16x128xbf16>
      %51 = vector.shape_cast %50 : vector<16x128xbf16> to vector<16x4x32xbf16>
      %52 = tpu.transpose %51, [1, 0, 2] : vector<16x4x32xbf16> -> vector<4x16x32xbf16>
      %c0_38 = arith.constant 0 : index
      %c0_39 = arith.constant 0 : index
      %c0_40 = arith.constant 0 : index
      %53 = vector.load %arg24[%c0_38, %c0_39, %c0_40] : memref<4x32x32xbf16, #tpu.memory_space<vmem>>, vector<4x32x32xbf16>
      "tpu.trace_start"() <{level = 10 : i32, message = "hqd,hkd->hqk"}> : () -> ()
      %cst_41 = arith.constant dense<0.000000e+00> : vector<4x16x32xf32>
      %54 = tpu.matmul %52, %53, %cst_41 {dimension_numbers = #tpu.dot_dimension_numbers<[2], [2], [1], [1], [0, 0, 0, 1, 1, 1], [0], [0]>} : vector<4x16x32xbf16>, vector<4x32x32xbf16>, vector<4x16x32xf32> -> vector<4x16x32xf32>
      "tpu.trace_stop"() : () -> ()
      %cst_42 = arith.constant dense<0xFF800000> : vector<4x16xf32>
      %55 = vector.multi_reduction <maximumf>, %54, %cst_42 [2] : vector<4x16x32xf32> to vector<4x16xf32>
      %56 = vector.shape_cast %55 : vector<4x16xf32> to vector<4x16x1xf32>
      %57 = vector.broadcast %56 : vector<4x16x1xf32> to vector<4x16x32xf32>
      %58 = arith.subf %54, %57 : vector<4x16x32xf32>
      %59 = arith.truncf %58 : vector<4x16x32xf32> to vector<4x16x32xbf16>
      %60 = math.exp %59 : vector<4x16x32xbf16>
      %61 = arith.extf %60 : vector<4x16x32xbf16> to vector<4x16x32xf32>
      %cst_43 = arith.constant dense<0.000000e+00> : vector<4x16xf32>
      %62 = vector.multi_reduction <add>, %61, %cst_43 [2] : vector<4x16x32xf32> to vector<4x16xf32>
      %63 = vector.shape_cast %62 : vector<4x16xf32> to vector<4x16x1xf32>
      %c0_44 = arith.constant 0 : index
      %c0_45 = arith.constant 0 : index
      %c0_46 = arith.constant 0 : index
      %64 = vector.load %arg25[%c0_44, %c0_45, %c0_46] : memref<4x32x32xbf16, #tpu.memory_space<vmem>>, vector<4x32x32xbf16>
      "tpu.trace_start"() <{level = 10 : i32, message = "hqk,hkd->hqd"}> : () -> ()
      %cst_47 = arith.constant dense<0.000000e+00> : vector<4x16x32xf32>
      %65 = tpu.matmul %60, %64, %cst_47 {dimension_numbers = #tpu.dot_dimension_numbers<[2], [1], [1], [2], [0, 0, 0, 1, 1, 2], [0], [0]>} : vector<4x16x32xbf16>, vector<4x32x32xbf16>, vector<4x16x32xf32> -> vector<4x16x32xf32>
      "tpu.trace_stop"() : () -> ()
      %66 = tpu.reciprocal %63 : vector<4x16x1xf32> -> vector<4x16x1xf32>
      %67 = vector.broadcast %66 : vector<4x16x1xf32> to vector<4x16x32xf32>
      %68 = arith.mulf %65, %67 : vector<4x16x32xf32>
      %69 = tpu.transpose %68, [1, 0, 2] : vector<4x16x32xf32> -> vector<16x4x32xf32>
      %70 = vector.shape_cast %69 : vector<16x4x32xf32> to vector<16x128xf32>
      %71 = arith.truncf %70 : vector<16x128xf32> to vector<16x128xbf16>
      %c0_48 = arith.constant 0 : index
      %c0_49 = arith.constant 0 : index
      %c0_50 = arith.constant 0 : index
      %72 = vector.load %arg10[%c0_48, %c0_49, %c0_50] : memref<1x128x128xbf16, #tpu.memory_space<vmem>>, vector<1x128x128xbf16>
      %73 = vector.shape_cast %72 : vector<1x128x128xbf16> to vector<128x128xbf16>
      %cst_51 = arith.constant dense<0.000000e+00> : vector<16x128xf32>
      %74 = tpu.matmul %71, %73, %cst_51 {dimension_numbers = #tpu.dot_dimension_numbers<[1], [0], [0], [1], [0, 0, 1, 1], [], []>} : vector<16x128xbf16>, vector<128x128xbf16>, vector<16x128xf32> -> vector<16x128xf32>
      %c0_52 = arith.constant 0 : index
      %c0_53 = arith.constant 0 : index
      %c0_54 = arith.constant 0 : index
      %75 = vector.load %arg11[%c0_52, %c0_53, %c0_54] : memref<1x1x128xf32, #tpu.memory_space<vmem>>, vector<1x1x128xf32>
      %76 = vector.shape_cast %75 : vector<1x1x128xf32> to vector<1x128xf32>
      %77 = vector.broadcast %76 : vector<1x128xf32> to vector<16x128xf32>
      %78 = arith.addf %74, %77 : vector<16x128xf32>
      %79 = arith.addf %37, %78 : vector<16x128xf32>
      %c0_55 = arith.constant 0 : index
      %c0_56 = arith.constant 0 : index
      %c0_57 = arith.constant 0 : index
      %80 = vector.load %arg16[%c0_55, %c0_56, %c0_57] : memref<1x1x128xf32, #tpu.memory_space<vmem>>, vector<1x1x128xf32>
      %81 = vector.shape_cast %80 : vector<1x1x128xf32> to vector<1x128xf32>
      %c0_58 = arith.constant 0 : index
      %c0_59 = arith.constant 0 : index
      %c0_60 = arith.constant 0 : index
      %82 = vector.load %arg17[%c0_58, %c0_59, %c0_60] : memref<1x1x128xf32, #tpu.memory_space<vmem>>, vector<1x1x128xf32>
      %83 = vector.shape_cast %82 : vector<1x1x128xf32> to vector<1x128xf32>
      %cst_61 = arith.constant dense<0.000000e+00> : vector<16xf32>
      %84 = vector.multi_reduction <add>, %79, %cst_61 [1] : vector<16x128xf32> to vector<16xf32>
      %85 = vector.shape_cast %84 : vector<16xf32> to vector<16x1xf32>
      %cst_62 = arith.constant 1.280000e+02 : f32
      %86 = vector.broadcast %cst_62 : f32 to vector<16x1xf32>
      %87 = arith.divf %85, %86 : vector<16x1xf32>
      %88 = vector.broadcast %87 : vector<16x1xf32> to vector<16x128xf32>
      %89 = arith.subf %79, %88 : vector<16x128xf32>
      %90 = arith.mulf %89, %89 : vector<16x128xf32>
      %cst_63 = arith.constant dense<0.000000e+00> : vector<16xf32>
      %91 = vector.multi_reduction <add>, %90, %cst_63 [1] : vector<16x128xf32> to vector<16xf32>
      %92 = vector.shape_cast %91 : vector<16xf32> to vector<16x1xf32>
      %cst_64 = arith.constant 1.280000e+02 : f32
      %93 = vector.broadcast %cst_64 : f32 to vector<16x1xf32>
      %94 = arith.divf %92, %93 : vector<16x1xf32>
      %95 = vector.broadcast %87 : vector<16x1xf32> to vector<16x128xf32>
      %96 = arith.subf %79, %95 : vector<16x128xf32>
      %cst_65 = arith.constant 9.99999974E-6 : f32
      %97 = vector.broadcast %cst_65 : f32 to vector<16x1xf32>
      %98 = arith.addf %94, %97 : vector<16x1xf32>
      %99 = math.rsqrt %98 : vector<16x1xf32>
      %100 = vector.broadcast %99 : vector<16x1xf32> to vector<16x128xf32>
      %101 = arith.mulf %96, %100 : vector<16x128xf32>
      %102 = vector.broadcast %81 : vector<1x128xf32> to vector<16x128xf32>
      %103 = arith.mulf %101, %102 : vector<16x128xf32>
      %104 = vector.broadcast %83 : vector<1x128xf32> to vector<16x128xf32>
      %105 = arith.addf %103, %104 : vector<16x128xf32>
      %106 = arith.truncf %105 : vector<16x128xf32> to vector<16x128xbf16>
      %c0_66 = arith.constant 0 : index
      %c0_67 = arith.constant 0 : index
      %c0_68 = arith.constant 0 : index
      %107 = vector.load %arg12[%c0_66, %c0_67, %c0_68] : memref<1x128x256xbf16, #tpu.memory_space<vmem>>, vector<1x128x256xbf16>
      %108 = vector.shape_cast %107 : vector<1x128x256xbf16> to vector<128x256xbf16>
      %cst_69 = arith.constant dense<0.000000e+00> : vector<16x256xf32>
      %109 = tpu.matmul %106, %108, %cst_69 {dimension_numbers = #tpu.dot_dimension_numbers<[1], [0], [0], [1], [0, 0, 1, 1], [], []>} : vector<16x128xbf16>, vector<128x256xbf16>, vector<16x256xf32> -> vector<16x256xf32>
      %c0_70 = arith.constant 0 : index
      %c0_71 = arith.constant 0 : index
      %c0_72 = arith.constant 0 : index
      %110 = vector.load %arg13[%c0_70, %c0_71, %c0_72] : memref<1x1x256xf32, #tpu.memory_space<vmem>>, vector<1x1x256xf32>
      %111 = vector.shape_cast %110 : vector<1x1x256xf32> to vector<1x256xf32>
      %112 = vector.broadcast %111 : vector<1x256xf32> to vector<16x256xf32>
      %113 = arith.addf %109, %112 : vector<16x256xf32>
      %cst_73 = arith.constant 0.000000e+00 : f32
      %114 = vector.broadcast %cst_73 : f32 to vector<16x256xf32>
      %115 = arith.maximumf %113, %114 : vector<16x256xf32>
      %116 = arith.truncf %115 : vector<16x256xf32> to vector<16x256xbf16>
      %c0_74 = arith.constant 0 : index
      %c0_75 = arith.constant 0 : index
      %c0_76 = arith.constant 0 : index
      %117 = vector.load %arg14[%c0_74, %c0_75, %c0_76] : memref<1x256x128xbf16, #tpu.memory_space<vmem>>, vector<1x256x128xbf16>
      %118 = vector.shape_cast %117 : vector<1x256x128xbf16> to vector<256x128xbf16>
      %cst_77 = arith.constant dense<0.000000e+00> : vector<16x128xf32>
      %119 = tpu.matmul %116, %118, %cst_77 {dimension_numbers = #tpu.dot_dimension_numbers<[1], [0], [0], [1], [0, 0, 1, 1], [], []>} : vector<16x256xbf16>, vector<256x128xbf16>, vector<16x128xf32> -> vector<16x128xf32>
      %c0_78 = arith.constant 0 : index
      %c0_79 = arith.constant 0 : index
      %c0_80 = arith.constant 0 : index
      %120 = vector.load %arg15[%c0_78, %c0_79, %c0_80] : memref<1x1x128xf32, #tpu.memory_space<vmem>>, vector<1x1x128xf32>
      %121 = vector.shape_cast %120 : vector<1x1x128xf32> to vector<1x128xf32>
      %122 = vector.broadcast %121 : vector<1x128xf32> to vector<16x128xf32>
      %123 = arith.addf %119, %122 : vector<16x128xf32>
      %124 = arith.addf %105, %123 : vector<16x128xf32>
      %c0_81 = arith.constant 0 : index
      %c0_82 = arith.constant 0 : index
      %c0_83 = arith.constant 0 : index
      %125 = vector.load %arg18[%c0_81, %c0_82, %c0_83] : memref<1x1x128xf32, #tpu.memory_space<vmem>>, vector<1x1x128xf32>
      %126 = vector.shape_cast %125 : vector<1x1x128xf32> to vector<1x128xf32>
      %c0_84 = arith.constant 0 : index
      %c0_85 = arith.constant 0 : index
      %c0_86 = arith.constant 0 : index
      %127 = vector.load %arg19[%c0_84, %c0_85, %c0_86] : memref<1x1x128xf32, #tpu.memory_space<vmem>>, vector<1x1x128xf32>
      %128 = vector.shape_cast %127 : vector<1x1x128xf32> to vector<1x128xf32>
      %cst_87 = arith.constant dense<0.000000e+00> : vector<16xf32>
      %129 = vector.multi_reduction <add>, %124, %cst_87 [1] : vector<16x128xf32> to vector<16xf32>
      %130 = vector.shape_cast %129 : vector<16xf32> to vector<16x1xf32>
      %cst_88 = arith.constant 1.280000e+02 : f32
      %131 = vector.broadcast %cst_88 : f32 to vector<16x1xf32>
      %132 = arith.divf %130, %131 : vector<16x1xf32>
      %133 = vector.broadcast %132 : vector<16x1xf32> to vector<16x128xf32>
      %134 = arith.subf %124, %133 : vector<16x128xf32>
      %135 = arith.mulf %134, %134 : vector<16x128xf32>
      %cst_89 = arith.constant dense<0.000000e+00> : vector<16xf32>
      %136 = vector.multi_reduction <add>, %135, %cst_89 [1] : vector<16x128xf32> to vector<16xf32>
      %137 = vector.shape_cast %136 : vector<16xf32> to vector<16x1xf32>
      %cst_90 = arith.constant 1.280000e+02 : f32
      %138 = vector.broadcast %cst_90 : f32 to vector<16x1xf32>
      %139 = arith.divf %137, %138 : vector<16x1xf32>
      %140 = vector.broadcast %132 : vector<16x1xf32> to vector<16x128xf32>
      %141 = arith.subf %124, %140 : vector<16x128xf32>
      %cst_91 = arith.constant 9.99999974E-6 : f32
      %142 = vector.broadcast %cst_91 : f32 to vector<16x1xf32>
      %143 = arith.addf %139, %142 : vector<16x1xf32>
      %144 = math.rsqrt %143 : vector<16x1xf32>
      %145 = vector.broadcast %144 : vector<16x1xf32> to vector<16x128xf32>
      %146 = arith.mulf %141, %145 : vector<16x128xf32>
      %147 = vector.broadcast %126 : vector<1x128xf32> to vector<16x128xf32>
      %148 = arith.mulf %146, %147 : vector<16x128xf32>
      %149 = vector.broadcast %128 : vector<1x128xf32> to vector<16x128xf32>
      %150 = arith.addf %148, %149 : vector<16x128xf32>
      %151 = arith.index_cast %35 : i32 to index
      %c0_92 = arith.constant 0 : index
      %152 = vector.load %arg23[%151, %c0_92] : memref<32x128xf32, #tpu.memory_space<vmem>>, vector<16x128xf32>
      tpu.vector_store %arg23[%151, %c0_92], %150 {strides = array<i32>} : memref<32x128xf32, #tpu.memory_space<vmem>>, vector<16x128xf32>,
      %c1_i32_93 = arith.constant 1 : i32
      %153 = arith.cmpi eq, %arg1, %c1_i32_93 : i32
      %154 = arith.extui %153 : i1 to i32
      %c0_i32_94 = arith.constant 0 : i32
      %155 = arith.cmpi ne, %154, %c0_i32_94 : i32
      scf.if %155 {
        %c0_95 = arith.constant 0 : index
        %c0_96 = arith.constant 0 : index
        %156 = vector.load %arg20[%c0_95, %c0_96] : memref<1x128xf32, #tpu.memory_space<vmem>>, vector<1x128xf32>
        %c0_97 = arith.constant 0 : index
        %c0_98 = arith.constant 0 : index
        %157 = vector.load %arg21[%c0_97, %c0_98] : memref<1x128xf32, #tpu.memory_space<vmem>>, vector<1x128xf32>
        %cst_99 = arith.constant dense<0.000000e+00> : vector<16xf32>
        %158 = vector.multi_reduction <add>, %150, %cst_99 [1] : vector<16x128xf32> to vector<16xf32>
        %159 = vector.shape_cast %158 : vector<16xf32> to vector<16x1xf32>
        %cst_100 = arith.constant 1.280000e+02 : f32
        %160 = vector.broadcast %cst_100 : f32 to vector<16x1xf32>
        %161 = arith.divf %159, %160 : vector<16x1xf32>
        %162 = vector.broadcast %161 : vector<16x1xf32> to vector<16x128xf32>
        %163 = arith.subf %150, %162 : vector<16x128xf32>
        %164 = arith.mulf %163, %163 : vector<16x128xf32>
        %cst_101 = arith.constant dense<0.000000e+00> : vector<16xf32>
        %165 = vector.multi_reduction <add>, %164, %cst_101 [1] : vector<16x128xf32> to vector<16xf32>
        %166 = vector.shape_cast %165 : vector<16xf32> to vector<16x1xf32>
        %cst_102 = arith.constant 1.280000e+02 : f32
        %167 = vector.broadcast %cst_102 : f32 to vector<16x1xf32>
        %168 = arith.divf %166, %167 : vector<16x1xf32>
        %169 = vector.broadcast %161 : vector<16x1xf32> to vector<16x128xf32>
        %170 = arith.subf %150, %169 : vector<16x128xf32>
        %cst_103 = arith.constant 9.99999974E-6 : f32
        %171 = vector.broadcast %cst_103 : f32 to vector<16x1xf32>
        %172 = arith.addf %168, %171 : vector<16x1xf32>
        %173 = math.rsqrt %172 : vector<16x1xf32>
        %174 = vector.broadcast %173 : vector<16x1xf32> to vector<16x128xf32>
        %175 = arith.mulf %170, %174 : vector<16x128xf32>
        %176 = vector.broadcast %156 : vector<1x128xf32> to vector<16x128xf32>
        %177 = arith.mulf %175, %176 : vector<16x128xf32>
        %178 = vector.broadcast %157 : vector<1x128xf32> to vector<16x128xf32>
        %179 = arith.addf %177, %178 : vector<16x128xf32>
        %c0_104 = arith.constant 0 : index
        %180 = arith.index_cast %35 : i32 to index
        %c0_105 = arith.constant 0 : index
        %181 = vector.load %arg22[%c0_104, %180, %c0_105] : memref<1x32x128xf32, #tpu.memory_space<vmem>>, vector<1x16x128xf32>
        %182 = vector.shape_cast %181 : vector<1x16x128xf32> to vector<16x128xf32>
        %183 = vector.shape_cast %179 : vector<16x128xf32> to vector<1x16x128xf32>
        tpu.vector_store %arg22[%c0_104, %180, %c0_105], %183 {strides = array<i32>} : memref<1x32x128xf32, #tpu.memory_space<vmem>>, vector<1x16x128xf32>,
      } else {
      }
    }
    %c2_i32_25 = arith.constant 2 : i32
    return
  }
  func.func @transform_0(%arg0: i32, %arg1: i32) -> (i32, i32, i32) {
    %c0_i32 = arith.constant 0 : i32
    %c0_i32_0 = arith.constant 0 : i32
    %c0_i32_1 = arith.constant 0 : i32
    return %arg0, %c0_i32, %c0_i32_0 : i32, i32, i32
  }
  func.func @transform_1(%arg0: i32, %arg1: i32) -> (i32, i32, i32) {
    %c0_i32 = arith.constant 0 : i32
    %c0_i32_0 = arith.constant 0 : i32
    %c0_i32_1 = arith.constant 0 : i32
    return %arg0, %c0_i32, %c0_i32_0 : i32, i32, i32
  }
  func.func @transform_2(%arg0: i32, %arg1: i32) -> (i32, i32, i32) {
    %c0_i32 = arith.constant 0 : i32
    %c0_i32_0 = arith.constant 0 : i32
    %c0_i32_1 = arith.constant 0 : i32
    return %arg1, %c0_i32, %c0_i32_0 : i32, i32, i32
  }
  func.func @transform_3(%arg0: i32, %arg1: i32) -> (i32, i32, i32) {
    %c0_i32 = arith.constant 0 : i32
    %c0_i32_0 = arith.constant 0 : i32
    %c0_i32_1 = arith.constant 0 : i32
    return %arg1, %c0_i32, %c0_i32_0 : i32, i32, i32
  }
  func.func @transform_4(%arg0: i32, %arg1: i32) -> (i32, i32, i32) {
    %c0_i32 = arith.constant 0 : i32
    %c0_i32_0 = arith.constant 0 : i32
    %c0_i32_1 = arith.constant 0 : i32
    return %arg1, %c0_i32, %c0_i32_0 : i32, i32, i32
  }
  func.func @transform_5(%arg0: i32, %arg1: i32) -> (i32, i32, i32) {
    %c0_i32 = arith.constant 0 : i32
    %c0_i32_0 = arith.constant 0 : i32
    %c0_i32_1 = arith.constant 0 : i32
    return %arg1, %c0_i32, %c0_i32_0 : i32, i32, i32
  }
  func.func @transform_6(%arg0: i32, %arg1: i32) -> (i32, i32, i32) {
    %c0_i32 = arith.constant 0 : i32
    %c0_i32_0 = arith.constant 0 : i32
    %c0_i32_1 = arith.constant 0 : i32
    return %arg1, %c0_i32, %c0_i32_0 : i32, i32, i32
  }
  func.func @transform_7(%arg0: i32, %arg1: i32) -> (i32, i32, i32) {
    %c0_i32 = arith.constant 0 : i32
    %c0_i32_0 = arith.constant 0 : i32
    %c0_i32_1 = arith.constant 0 : i32
    return %arg1, %c0_i32, %c0_i32_0 : i32, i32, i32
  }
  func.func @transform_8(%arg0: i32, %arg1: i32) -> (i32, i32, i32) {
    %c0_i32 = arith.constant 0 : i32
    %c0_i32_0 = arith.constant 0 : i32
    %c0_i32_1 = arith.constant 0 : i32
    return %arg1, %c0_i32, %c0_i32_0 : i32, i32, i32
  }
  func.func @transform_9(%arg0: i32, %arg1: i32) -> (i32, i32, i32) {
    %c0_i32 = arith.constant 0 : i32
    %c0_i32_0 = arith.constant 0 : i32
    %c0_i32_1 = arith.constant 0 : i32
    return %arg1, %c0_i32, %c0_i32_0 : i32, i32, i32
  }
  func.func @transform_10(%arg0: i32, %arg1: i32) -> (i32, i32, i32) {
    %c0_i32 = arith.constant 0 : i32
    %c0_i32_0 = arith.constant 0 : i32
    %c0_i32_1 = arith.constant 0 : i32
    return %arg1, %c0_i32, %c0_i32_0 : i32, i32, i32
  }
  func.func @transform_11(%arg0: i32, %arg1: i32) -> (i32, i32, i32) {
    %c0_i32 = arith.constant 0 : i32
    %c0_i32_0 = arith.constant 0 : i32
    %c0_i32_1 = arith.constant 0 : i32
    return %arg1, %c0_i32, %c0_i32_0 : i32, i32, i32
  }
  func.func @transform_12(%arg0: i32, %arg1: i32) -> (i32, i32, i32) {
    %c0_i32 = arith.constant 0 : i32
    %c0_i32_0 = arith.constant 0 : i32
    %c0_i32_1 = arith.constant 0 : i32
    return %arg1, %c0_i32, %c0_i32_0 : i32, i32, i32
  }
  func.func @transform_13(%arg0: i32, %arg1: i32) -> (i32, i32, i32) {
    %c0_i32 = arith.constant 0 : i32
    %c0_i32_0 = arith.constant 0 : i32
    %c0_i32_1 = arith.constant 0 : i32
    return %arg1, %c0_i32, %c0_i32_0 : i32, i32, i32
  }
  func.func @transform_14(%arg0: i32, %arg1: i32) -> (i32, i32, i32) {
    %c0_i32 = arith.constant 0 : i32
    %c0_i32_0 = arith.constant 0 : i32
    %c0_i32_1 = arith.constant 0 : i32
    return %arg1, %c0_i32, %c0_i32_0 : i32, i32, i32
  }
  func.func @transform_15(%arg0: i32, %arg1: i32) -> (i32, i32, i32) {
    %c0_i32 = arith.constant 0 : i32
    %c0_i32_0 = arith.constant 0 : i32
    %c0_i32_1 = arith.constant 0 : i32
    return %arg1, %c0_i32, %c0_i32_0 : i32, i32, i32
  }
  func.func @transform_16(%arg0: i32, %arg1: i32) -> (i32, i32, i32) {
    %c0_i32 = arith.constant 0 : i32
    %c0_i32_0 = arith.constant 0 : i32
    %c0_i32_1 = arith.constant 0 : i32
    return %arg1, %c0_i32, %c0_i32_0 : i32, i32, i32
  }
  func.func @transform_17(%arg0: i32, %arg1: i32) -> (i32, i32, i32) {
    %c0_i32 = arith.constant 0 : i32
    %c0_i32_0 = arith.constant 0 : i32
    %c0_i32_1 = arith.constant 0 : i32
    return %arg1, %c0_i32, %c0_i32_0 : i32, i32, i32
  }
  func.func @transform_18(%arg0: i32, %arg1: i32) -> (i32, i32) {
    %c0_i32 = arith.constant 0 : i32
    %c0_i32_0 = arith.constant 0 : i32
    %c0_i32_1 = arith.constant 0 : i32
    return %c0_i32, %c0_i32_0 : i32, i32
  }
  func.func @transform_19(%arg0: i32, %arg1: i32) -> (i32, i32) {
    %c0_i32 = arith.constant 0 : i32
    %c0_i32_0 = arith.constant 0 : i32
    %c0_i32_1 = arith.constant 0 : i32
    return %c0_i32, %c0_i32_0 : i32, i32
  }
  func.func @transform_20(%arg0: i32, %arg1: i32) -> (i32, i32, i32) {
    %c0_i32 = arith.constant 0 : i32
    %c0_i32_0 = arith.constant 0 : i32
    %c0_i32_1 = arith.constant 0 : i32
    return %arg0, %c0_i32, %c0_i32_0 : i32, i32, i32
  }
}

</mosaic_0001>

<bundles_post_ra>
// kernel: tpu_custom_call.1
= control target key start
LH: loop header
LB: loop body
LE: loop exit
PB: predicated region body
PF: predicated region fallthrough
CT: control target
= control target key end

     0   :  { %s7247_s0 = inlined_call_operand.hbm [shape: f32[2,32,128], index: 0, kind: input, shape index: {}]   ;;  %s7248_s1 = inlined_call_operand.hbm [shape: f32[2,32,128], index: 1, kind: input, shape index: {}]   ;;  %s7249_s2 = inlined_call_operand.hbm [shape: bf16[2,128,128], index: 2, kind: input, shape index: {}]   ;;  %s7250_s3 = inlined_call_operand.vmem [shape: f32[2,1,128], index: 3, kind: input, shape index: {}]   ;;  %s7251_s4 = inlined_call_operand.hbm [shape: bf16[2,128,128], index: 4, kind: input, shape index: {}]   ;;  %s7252_s5 = inlined_call_operand.hbm [shape: f32[2,1,128], index: 5, kind: input, shape index: {}]   ;;  %s7253_s6 = inlined_call_operand.hbm [shape: bf16[2,128,128], index: 6, kind: input, shape index: {}]   ;;  %s7254_s7 = inlined_call_operand.hbm [shape: f32[2,1,128], index: 7, kind: input, shape index: {}]   ;;  %s7255_s8 = inlined_call_operand.hbm [shape: bf16[2,128,128], index: 8, kind: input, shape index: {}]   ;;  %s7256_s9 = inlined_call_operand.vmem [shape: f32[2,1,128], index: 9, kind: input, shape index: {}]   ;;  %s7257_s10 = inlined_call_operand.hbm [shape: bf16[2,128,256], index: 10, kind: input, shape index: {}]   ;;  %s7258_s11 = inlined_call_operand.vmem [shape: f32[2,1,256], index: 11, kind: input, shape index: {}]   ;;  %s7259_s12 = inlined_call_operand.hbm [shape: bf16[2,256,128], index: 12, kind: input, shape index: {}]   ;;  %s7260_s13 = inlined_call_operand.vmem [shape: f32[2,1,128], index: 13, kind: input, shape index: {}]   ;;  %s7261_s14 = inlined_call_operand.vmem [shape: f32[2,1,128], index: 14, kind: input, shape index: {}]   ;;  %s7262_s15 = inlined_call_operand.vmem [shape: f32[2,1,128], index: 15, kind: input, shape index: {}]   ;;  %s7263_s16 = inlined_call_operand.hbm [shape: f32[2,1,128], index: 16, kind: input, shape index: {}]   ;;  %s7264_s17 = inlined_call_operand.vmem [shape: f32[2,1,128], index: 17, kind: input, shape index: {}]   ;;  %s7265_s18 = inlined_call_operand.vmem [shape: f32[1,128], index: 18, kind: input, shape index: {}]   ;;  %s7266_s19 = inlined_call_operand.vmem [shape: f32[1,128], index: 19, kind: input, shape index: {}]   ;;  %s7267_s20 = inlined_call_operand.hbm [shape: f32[2,32,128], index: 20, kind: output, shape index: {}]  }
   0x1   :  { %7307 = sst [smem:[#allocation56_spill]] %s7247_s0 }
   0x2   :  { %7308 = sst [smem:[#allocation57_spill]] %s7248_s1 }
   0x3   :  { %7309 = sst [smem:[#allocation58_spill]] %s7249_s2 }
   0x4   :  { %7310 = sst [smem:[#allocation59_spill]] %s7250_s3 }
   0x5   :  { %7311 = sst [smem:[#allocation60_spill]] %s7251_s4 }
   0x6   :  { %7312 = sst [smem:[#allocation61_spill]] %s7252_s5 }
   0x7   :  { %7313 = sst [smem:[#allocation62_spill]] %s7253_s6 }
   0x8   :  { %7314 = sst [smem:[#allocation63_spill]] %s7254_s7 }
   0x9   :  { %7315 = sst [smem:[#allocation64_spill]] %s7255_s8 }
   0xa   :  { %7316 = sst [smem:[#allocation65_spill]] %s7256_s9 }
   0xb   :  { %7317 = sst [smem:[#allocation66_spill]] %s7257_s10 }
   0xc   :  { %7318 = sst [smem:[#allocation67_spill]] %s7258_s11 }
   0xd   :  { %7319 = sst [smem:[#allocation68_spill]] %s7259_s12 }
   0xe   :  { %7320 = sst [smem:[#allocation69_spill]] %s7260_s13 }
   0xf   :  { %7321 = sst [smem:[#allocation70_spill]] %s7261_s14 }
  0x10   :  { %7322 = sst [smem:[#allocation71_spill]] %s7262_s15 }
  0x11   :  { %7323 = sst [smem:[#allocation72_spill]] %s7263_s16 }
  0x12   :  { %7324 = sst [smem:[#allocation73_spill]] %s7264_s17 }
  0x13   :  { %7325 = sst [smem:[#allocation74_spill]] %s7265_s18 }
  0x14   :  { %7326 = sst [smem:[#allocation75_spill]] %s7266_s19 }
  0x15   :  { %7327 = sst [smem:[#allocation76_spill]] %s7267_s20 }
  0x16   :  { %25 = vsyncpa [#allocation6], 0 }
  0x17   :  { %27 = vsyncpa [#allocation6 + $0x1], 0 }
  0x18   :  { %28 = vsyncpa [#allocation9], 0 }
  0x19   :  { %30 = vsyncpa [#allocation9 + $0x1], 0 }
  0x1a   :  { %31 = vsyncpa [#allocation12], 0 }
  0x1b   :  { %33 = vsyncpa [#allocation12 + $0x1], 0 }
  0x1c   :  { %34 = vsyncpa [#allocation15], 0 }
  0x1d   :  { %36 = vsyncpa [#allocation15 + $0x1], 0 }
  0x1e   :  { %37 = vsyncpa [#allocation18], 0 }
  0x1f   :  { %39 = vsyncpa [#allocation18 + $0x1], 0 }
  0x20   :  { %40 = vsyncpa [#allocation21], 0 }
  0x21   :  { %42 = vsyncpa [#allocation21 + $0x1], 0 }
  0x22   :  { %43 = vsyncpa [#allocation7], 0 }
  0x23   :  { %45 = vsyncpa [#allocation7 + $0x1], 0  ;;  %s5795_s1 = smov 0   ;;  %s5797_s22 = smov 0  }
  0x24   :  { %s5799_s23 = smov 0   ;;  %s5801_s24 = smov 0  }
  0x25   :  { %s5803_s2 = smov 0   ;;  %s5805_s25 = smov 0  }
  0x26   :  { %s5807_s3 = smov 0   ;;  %s5809_s26 = smov 0  }
  0x27   :  { %s5811_s27 = smov 0   ;;  %s5813_s28 = smov 0  }
  0x28   :  { %s5815_s4 = smov 0  }
  0x29 LB: > { %7328 = sst [smem:[#allocation32_spill]] %s5633_s22  ;;  %s5851_s29 = sadd.s32 4294967295, %s5669_s4   ;;  %s5669_s4 = sphi %s5815_s4, %s51_s4   ;;  %s5665_s28 = sphi %s5813_s28, %s7450_s28   ;;  %s5661_s27 = sphi %s5811_s27, %s7449_s27   ;;  %s5657_s26 = sphi %s5809_s26, %s7448_s26   ;;  %s5653_s3 = sphi %s5807_s3, %s7447_s3   ;;  %s5649_s25 = sphi %s5805_s25, %s7446_s25   ;;  %s5645_s2 = sphi %s5803_s2, %s7445_s2   ;;  %s5641_s24 = sphi %s5801_s24, %s7444_s24   ;;  %s5637_s23 = sphi %s5799_s23, %s7443_s23   ;;  %s5633_s22 = sphi %s5797_s22, %s7442_s22   ;;  %s5629_s1 = sphi %s5795_s1, %s7441_s1  }
  0x2a   : > { %7329 = sst [smem:[#allocation33_spill]] %s5637_s23  ;;  %s4461_s30 = sadd.s32 4294967294, %s5669_s4  }
  0x2b   : > { %7330 = sst [smem:[#allocation34_spill]] %s5641_s24  ;;  %s60_s0 = sadd.s32 1, %s5661_s27 }
  0x2c   : > { %7331 = sst [smem:[#allocation35_spill]] %s5645_s2  ;;  %s63_s21 = sadd.s32 1, %s5665_s28 }
  0x2d   : > { %7332 = sst [smem:[#allocation36_spill]] %s5649_s25  ;;  %p61_p0 = scmp.ge.s32.totalorder %s60_s0, 2 }
  0x2e   : > { %7333 = sst [smem:[#allocation37_spill]] %s5653_s3  ;;  %s70_s20 = sadd.s32 1, %s5649_s25 }
  0x2f   : > { %7334 = sst [smem:[#allocation38_spill]] %s5657_s26  ;;  %p77_p1 = scmp.ne.s32.totalorder %s5649_s25, %s5645_s2 }
  0x30   : > { %7335 = sst [smem:[#allocation39_spill]] %s5661_s27  ;;  %p78_p2 = scmp.eq.s32.totalorder %s5669_s4, 0 }
  0x31   : > { %7336 = sst [smem:[#allocation40_spill]] %s5665_s28  ;;  %s7452_s0 = smov (%p61_p0, %s60_s0), 0 }
  0x32   : > { %7337 = sst [smem:[#allocation41_spill]] %s5669_s4  ;;  %s7454_s21 = smov (!%p61_p0, %s63_s21), %s5665_s28 }
  0x33   : > { %7338 = sst [smem:[#allocation42_spill]] %s5851_s29  ;;  %p5868_p3 = por %p78_p2, %p77_p1 }
  0x34   : > { %7339 = sst [smem:[#allocation43_spill]] %s7452_s0  ;;  %p7270_p4 = scmp.ne.s32.totalorder %s5645_s2, %s5641_s24 }
  0x35   : > { %p65_p5 = scmp.ge.s32.totalorder %s7454_s21, 2  ;;  %p84_p6 = scmp.eq.s32.totalorder %s5851_s29, 0 }
  0x36   : > { %s119_s19 = ssub.s32 %s5661_s27, %s7452_s0  ;;  %s122_s18 = sadd.s32 1, %s5637_s23 }
  0x37   : > { %s7456_s21 = smov (%p65_p5, %s7454_s21), 0  ;;  %p5885_p7 = por %p84_p6, %p7270_p4 }
  0x38   : > { %7341 = sst [smem:[#allocation44_spill]] %s7456_s21  ;;  %p120_p8 = scmp.eq.s32.totalorder %s119_s19, 0 }
  0x39   : > { %s7342_s17 = scalar_select %p5885_p7, 1, 0 }
  0x3a   : > { %s67_s15 = ssub.s32 %s5665_s28, %s7456_s21  ;;  %p129_p9 = scmp.ne.s32.totalorder %s5637_s23, %s5633_s22 }
  0x3b   : > { %7343 = sst [smem:[#allocation45_spill]] %s7342_s17  ;;  %p68_p10 = scmp.eq.s32.totalorder %s67_s15, 0 }
  0x3c   : > { %p135_p11 = scmp.ne.s32.totalorder %s5633_s22, %s5629_s1  ;;  %p5903_p12 = por %p129_p9, %p78_p2 }
  0x3d   : > { %s5896_s0 = scalar_select %p120_p8, %s5637_s23, %s122_s18  }
  0x3e   : > { %s5899_s14 = scalar_select %p68_p10, %s5649_s25, %s70_s20  }
  0x3f   : > { %7344 = sst [smem:[#allocation46_spill]] %s5896_s0  ;;  %p5909_p13 = por %p135_p11, %p84_p6 }
  0x40   : > { %7345 = sst [smem:[#allocation47_spill]] %s5899_s14  ;;  %p591_p0 = scmp.eq.s32.totalorder %s5851_s29, 3 }
  0x41   : > { %s7347_s19 = scalar_select %p5909_p13, 1, 0 }
  0x42   : > { %p597_p5 = scmp.eq.s32.totalorder %s4461_s30, 3  ;;  %p5002_p4 = scmp.lt.s32.totalorder %s5669_s4, 4 }
  0x43   : > { %7348 = sst [smem:[#allocation48_spill]] %s7347_s19  ;;  %p5918_p8 = por %p591_p0, %p77_p1 }
  0x44   : > { %p7351_p10 = scmp.ne.s32.totalorder %s5645_s2, %s5641_s24  ;;  %s7274_s20 = sand.u32 1, %s5649_s25  }
  0x45   : > { %s7349_s15 = scalar_select %p5918_p8, 1, 0 }
  0x46   : > { %p5925_p2 = por %p597_p5, %p7351_p10  ;;  %s7286_s1 = sshll.u32 %s5665_s28, 5 }
  0x47   : > { %7350 = sst [smem:[#allocation49_spill]] %s7349_s15  ;;  %s5933_s21 = sshll.u32 %s7274_s20, 5 }
  0x48   : > { %s7352_s18 = scalar_select %p5925_p2, 1, 0 }
  0x49   : > { %p5939_p1 = pnand %p5002_p4, %p5868_p3  ;;  %s5944_s14 = sand.u32 1, %s5669_s4  }
  0x4a   : > { %7353 = sst [smem:[#allocation50_spill]] %s7352_s18  ;;  %s649_s15 = scalar_lea.vmem [#allocation8], %s5933_s21 }
  0x4b   : > { %s7355_s24 = sld [smem:[#allocation57_spill]]  ;;  %s657_s26 = sshll.u32 %s649_s15, 4  ;;  %s658_s26 = int_to_ptr.vmem [resolvable:$true] %s657_s26 }
  0x4c   : > { %p5956_p3 = pnand %p5002_p4, %p5903_p12  ;;  %s7281_s3 = scalar_lea.sflag [#allocation9], %s5944_s14 }
  0x4d   : > { %s7282_s19 = smov 128   ;;  %s7284_s22 = smov 8  }
  0x4e   : > { %p4488_p6 = scmp.ge.s32.totalorder %s5669_s4, 1  ;;  %p891_p9 = scmp.lt.s32.totalorder %s5669_s4, 5 }
  0x4f   : > { %s5971_s11 = sand.u32 1, %s5637_s23   ;;  %s5977_s0 = sshll.u32 %s5661_s27, 6 }
  0x50   : > { %p5979_p4 = pnand %p4488_p6, %p891_p9  ;;  %s7296_s23 = smov 64  }
  0x51   : > { %s654_s20 = scalar_lea.hbm %s7355_s24, %s7286_s1  ;;  %s5974_s24 = sshll.u32 %s5971_s11, 6 }
  0x52   : > { %s655_s13 = sshll.u32 %s654_s20, 4  ;;  %s7359_s20 = sld [smem:[#allocation60_spill]]  ;;  %s656_s13 = int_to_ptr.hbm [resolvable:$true] %s655_s13 }
  0x53   : > { %4970 = dma.hbm_to_vmem [thread:$0]  (!%p5939_p1), %s656_s13, 512, %s658_s26, %s7281_s3, %s7282_s19, %s7282_s19, %s7284_s22  }
  0x54   : > { %s7357_s15 = scalar_select %p5979_p4, 1, 0 }
  0x55   : > { %s699_s19 = scalar_lea.vmem [#allocation11], %s5974_s24  ;;  %s7293_s1 = scalar_lea.sflag [#allocation12], %s5944_s14 }
  0x56   : > { %7358 = sst [smem:[#allocation51_spill]] %s7357_s15  ;;  %s707_s22 = sshll.u32 %s699_s19, 4  ;;  %s708_s22 = int_to_ptr.vmem [resolvable:$true] %s707_s22 }
  0x57   : > { %s5678_s4 = smov 4   ;;  %s7360_s6 = sld [smem:[#allocation62_spill]] }
  0x58   : > { %s704_s26 = scalar_lea.hbm %s7359_s20, %s5977_s0  ;;  %s738_s19 = scalar_lea.vmem [#allocation14], %s5974_s24 }
  0x59   : > { %s705_s3 = sshll.u32 %s704_s26, 4  ;;  %s746_s26 = sshll.u32 %s738_s19, 4  ;;  %s706_s3 = int_to_ptr.hbm [resolvable:$true] %s705_s3  ;;  %s747_s26 = int_to_ptr.vmem [resolvable:$true] %s746_s26 }
  0x5a   : > { %4976 = dma.hbm_to_vmem [thread:$0]  (!%p5956_p3), %s706_s3, 1024, %s708_s22, %s7293_s1, %s7296_s23, %s7296_s23, %s5678_s4  }
  0x5b   : > { %s7294_s17 = scalar_lea.sflag [#allocation15], %s5944_s14  ;;  %s7361_s8 = sld [smem:[#allocation64_spill]] }
  0x5c   : > { %s777_s1 = scalar_lea.vmem [#allocation17], %s5974_s24  ;;  %s7295_s19 = scalar_lea.sflag [#allocation18], %s5944_s14 }
  0x5d   : > { %s743_s20 = scalar_lea.hbm %s7360_s6, %s5977_s0  ;;  %s785_s6 = sshll.u32 %s777_s1, 4  ;;  %s786_s6 = int_to_ptr.vmem [resolvable:$true] %s785_s6 }
  0x5e   : > { %s744_s29 = sshll.u32 %s743_s20, 4  ;;  %s4841_s20 = sshll.u32 %s5661_s27, 7  ;;  %s745_s29 = int_to_ptr.hbm [resolvable:$true] %s744_s29 }
  0x5f   : > { %4982 = dma.hbm_to_vmem [thread:$0]  (!%p5956_p3), %s745_s29, 1024, %s747_s26, %s7294_s17, %s7296_s23, %s7296_s23, %s5678_s4  }
  0x60   : > { %s4482_s29 = sshll.u32 %s5971_s11, 7  ;;  %s7362_s10 = sld [smem:[#allocation66_spill]] }
  0x61   : > { %s782_s13 = scalar_lea.hbm %s7361_s8, %s5977_s0  ;;  %s7363_s12 = sld [smem:[#allocation68_spill]] }
  0x62   : > { %s783_s18 = sshll.u32 %s782_s13, 4  ;;  %s805_s13 = scalar_lea.vmem [#allocation19], %s4482_s29  ;;  %s784_s18 = int_to_ptr.hbm [resolvable:$true] %s783_s18 }
  0x63   : > { %4988 = dma.hbm_to_vmem [thread:$0]  (!%p5956_p3), %s784_s18, 1024, %s786_s6, %s7295_s19, %s7296_s23, %s7296_s23, %s5678_s4  }
  0x64   : > { %s813_s17 = sshll.u32 %s805_s13, 4  ;;  %s834_s19 = scalar_lea.vmem [#allocation20], %s4482_s29  ;;  %s6029_s17 = int_to_ptr.vmem [resolvable:$true] %s813_s17 }
  0x65   : > { %s842_s23 = sshll.u32 %s834_s19, 4  ;;  %s831_s22 = scalar_lea.sflag [#allocation21], %s5944_s14  ;;  %s843_s23 = int_to_ptr.vmem [resolvable:$true] %s842_s23 }
  0x66   : > { %s810_s3 = scalar_lea.hbm %s7362_s10, %s4841_s20  ;;  %s7365_s13 = sshll.u32 %s5665_s28, 5 }
  0x67   : > { %s811_s1 = sshll.u32 %s810_s3, 4  ;;  %s839_s18 = scalar_lea.hbm %s7363_s12, %s4841_s20  ;;  %s6027_s1 = int_to_ptr.hbm [resolvable:$true] %s811_s1 }
  0x68   : > { %s840_s26 = sshll.u32 %s839_s18, 4  ;;  %s7364_s3 = smov 64   ;;  %s841_s26 = int_to_ptr.hbm [resolvable:$true] %s840_s26 }
  0x69   : > { %4994 = dma.hbm_to_vmem [thread:$0]  (!%p5956_p3), %s841_s26, 2048, %s843_s23, %s831_s22, %s7364_s3, %s7364_s3, %s5678_s4  }
  0x6a   : > { %s7366_s20 = sld [smem:[#allocation56_spill]]  ;;  %s627_s18 = scalar_lea.vmem [#allocation5], %s5933_s21 }
  0x6b   : > { %s635_s10 = sshll.u32 %s627_s18, 4  ;;  %s7367_s12 = sand.u32 1, %s5649_s25   ;;  %s636_s10 = int_to_ptr.vmem [resolvable:$true] %s635_s10 }
  0x6c   : > { %s624_s2 = scalar_lea.sflag [#allocation6], %s7367_s12  ;;  %s7368_s15 = smov 8  }
  0x6d   : > { %s7369_s16 = smov 128   ;;  %s7370_s8 = sld [smem:[#allocation58_spill]] }
  0x6e   : > { %s671_s21 = scalar_lea.vmem [#allocation10], %s5974_s24  ;;  %s7371_s12 = scalar_lea.sflag [#allocation9], %s5944_s14 }
  0x6f   : > { %s7372_s5 = sld [smem:[#allocation61_spill]]  ;;  %s759_s26 = scalar_lea.vmem [#allocation16], %s5971_s11 }
  0x70   : > { %s632_s29 = scalar_lea.hbm %s7366_s20, %s7365_s13  ;;  %s679_s20 = sshll.u32 %s671_s21, 4  ;;  %s680_s20 = int_to_ptr.vmem [resolvable:$true] %s679_s20 }
  0x71   : > { %s633_s19 = sshll.u32 %s632_s29, 4  ;;  %s7374_s7 = sld [smem:[#allocation63_spill]]  ;;  %s634_s19 = int_to_ptr.hbm [resolvable:$true] %s633_s19 }
  0x72   : > { %4967 = dma.hbm_to_vmem [thread:$0]  (!%p5939_p1), %s634_s19, 512, %s636_s10, %s624_s2, %s7369_s16, %s7369_s16, %s7368_s15  }
  0x73   : > { %s676_s13 = scalar_lea.hbm %s7370_s8, %s5977_s0  ;;  %s720_s0 = scalar_lea.vmem [#allocation13], %s5971_s11 }
  0x74   : > { %s677_s6 = sshll.u32 %s676_s13, 4  ;;  %s727_s29 = sshll.u32 %s720_s0, 4  ;;  %s678_s6 = int_to_ptr.hbm [resolvable:$true] %s677_s6  ;;  %s728_s29 = int_to_ptr.vmem [resolvable:$true] %s727_s29 }
  0x75   : > { %4973 = dma.hbm_to_vmem [thread:$0]  (!%p5956_p3), %s678_s6, 1024, %s680_s20, %s7371_s12, %s7364_s3, %s7364_s3, %s5678_s4  }
  0x76   : > { %s723_s30 = scalar_lea.hbm %s7372_s5, %s5661_s27  ;;  %s7373_s19 = scalar_lea.sflag [#allocation12], %s5944_s14 }
  0x77   : > { %s725_s24 = sshll.u32 %s723_s30, 4  ;;  %s762_s4 = scalar_lea.hbm %s7374_s7, %s5661_s27  ;;  %s726_s24 = int_to_ptr.hbm [resolvable:$true] %s725_s24 }
  0x78   : > { %4979 = dma.hbm_to_vmem [thread:$0]  (!%p5956_p3), %s726_s24, 16, %s728_s29, %s7373_s19  }
  0x79   : > { %s764_s3 = sshll.u32 %s762_s4, 4  ;;  %s766_s8 = sshll.u32 %s759_s26, 4  ;;  %s765_s3 = int_to_ptr.hbm [resolvable:$true] %s764_s3  ;;  %s767_s8 = int_to_ptr.vmem [resolvable:$true] %s766_s8 }
  0x7a   : > { %s7375_s13 = scalar_lea.sflag [#allocation15], %s5944_s14  ;;  %s7376_s6 = scalar_lea.sflag [#allocation18], %s5944_s14 }
  0x7b   : > { %4985 = dma.hbm_to_vmem [thread:$0]  (!%p5956_p3), %s765_s3, 16, %s767_s8, %s7375_s13  }
  0x7c   : > { %4991 = dma.hbm_to_vmem [thread:$0]  (!%p5956_p3), %s6027_s1, 2048, %s6029_s17, %s7376_s6, %s7369_s16, %s7369_s16, %s7368_s15  }
  0x7d   : > { %s7377_s12 = sld [smem:[#allocation72_spill]]  ;;  %s873_s30 = scalar_lea.vmem [#allocation22], %s5971_s11 }
  0x7e   : > { %s880_s24 = sshll.u32 %s873_s30, 4  ;;  %s881_s24 = int_to_ptr.vmem [resolvable:$true] %s880_s24 }
  0x81   : > { %895 = sbr.rel (%p5979_p4) target bundleno = 2774 (0xad6), region = 100 }
  0x83   : > { %s876_s10 = scalar_lea.hbm %s7377_s12, %s5661_s27 }
  0x84   : > { %s878_s2 = sshll.u32 %s876_s10, 4  ;;  %s879_s2 = int_to_ptr.hbm [resolvable:$true] %s878_s2 }
  0x85   : > { %4997 = dma.hbm_to_vmem [thread:$0]  (!%p5956_p3), %s879_s2, 16, %s881_s24, %s831_s22  }
  0x86   : > { %s7379_s29 = sld [smem:[#allocation35_spill]] }
  0x8c   : > { %s6106_s18 = sand.u32 1, %s7379_s29  }
  0x8d   : > { %7381 = sst [smem:[#allocation52_spill]] %s6106_s18  ;;  %s6109_s16 = sshll.u32 %s6106_s18, 5 }
  0x8e   : > { %s898_s17 = scalar_lea.sflag [#allocation6], %s6106_s18  ;;  %s6113_s11 = scalar_lea.vmem [#allocation5], %s6109_s16 }
  0x8f   : > { %5596 = dma.done.wait (%p5885_p7), %s898_s17, 512  }
  0x90   : > { %5598 = vsyncadd (%p5885_p7), %s898_s17, 4294966784  ;;  %s7382_s9 = sld [smem:[#allocation42_spill]]  ;;  %s6124_s1 = scalar_lea.vmem [#allocation8], %s6109_s16 }
  0x96   : > { %s6120_s14 = sand.u32 1, %s7382_s9  }
  0x97   : > { %s908_s15 = scalar_lea.sflag [#allocation9], %s6120_s14 }
  0x98   : > { %5600 = dma.done.wait (%p5885_p7), %s908_s15, 512  }
  0x99   : > { %5602 = vsyncadd (%p5885_p7), %s908_s15, 4294966784  ;;  %s7383_s22 = sld [smem:[#allocation32_spill]] }
  0x9f   : > { %s6131_s4 = sand.u32 1, %s7383_s22  }
  0xa0   : > { %s4491_s3 = sshll.u32 %s6131_s4, 6 }
  0xa1   : > { %s6134_s26 = scalar_lea.vmem [#allocation10], %s4491_s3 }
  0xa2   : > { %5604 = dma.done.wait (%p5909_p13), %s908_s15, 1024  }
  0xa3   : > { %5606 = vsyncadd (%p5909_p13), %s908_s15, 4294966272  ;;  %s928_s8 = scalar_lea.sflag [#allocation12], %s6120_s14  ;;  %s6141_s13 = scalar_lea.vmem [#allocation11], %s4491_s3 }
  0xa4   : > { %5608 = dma.done.wait (%p5909_p13), %s928_s8, 1040  }
  0xa5   : > { %5610 = vsyncadd (%p5909_p13), %s928_s8, 4294966256  ;;  %s947_s21 = scalar_lea.sflag [#allocation15], %s6120_s14  ;;  %s6149_s20 = scalar_lea.vmem [#allocation14], %s4491_s3 }
  0xa6   : > { %5612 = dma.done.wait (%p5909_p13), %s947_s21, 1040  }
  0xa7   : > { %5614 = vsyncadd (%p5909_p13), %s947_s21, 4294966256  ;;  %s966_s10 = scalar_lea.sflag [#allocation18], %s6120_s14  ;;  %s6157_s2 = scalar_lea.vmem [#allocation17], %s4491_s3 }
  0xa8   : > { %7385 = sst [smem:[#allocation53_spill]] %s6157_s2 }
  0xa9   : > { %5616 = dma.done.wait (%p5909_p13), %s966_s10, 3072  }
  0xaa   : > { %5618 = vsyncadd (%p5909_p13), %s966_s10, 4294964224  ;;  %s4495_s30 = sshll.u32 %s6131_s4, 7  ;;  %s986_s0 = scalar_lea.sflag [#allocation21], %s6120_s14 }
  0xab   : > { %s6164_s24 = scalar_lea.vmem [#allocation19], %s4495_s30  ;;  %s6167_s29 = scalar_lea.vmem [#allocation20], %s4495_s30 }
  0xac   : > { %7386 = sst [smem:[#allocation54_spill]] %s6164_s24 }
  0xad   : > { %7387 = sst [smem:[#allocation55_spill]] %s6167_s29 }
  0xae   : > { %5620 = dma.done.wait (%p5909_p13), %s986_s0, 2064  }
  0xaf   : > { %5622 = vsyncadd (%p5909_p13), %s986_s0, 4294965232  ;;  %s7388_s19 = sld [smem:[#allocation37_spill]]  ;;  %s998_s2 = scalar_lea.vmem [#allocation22], %s6131_s4 }
  0xb0   : > { %s7391_s12 = sld [smem:[#allocation69_spill]]  ;;  %s1124_s30 = scalar_lea.vmem [#allocation23], %s6109_s16 }
  0xb1   : > { %s7392_s28 = sld [smem:[#allocation67_spill]] }
  0xb2   : > { %s7393_s25 = sld [smem:[#allocation70_spill]] }
  0xb3   : > { %s7394_s14 = sld [smem:[#allocation71_spill]] }
  0xb4   : > { %s7395_s8 = sld [smem:[#allocation73_spill]] }
  0xb5   : > { %p1125_p7 = scmp.lt.s32.totalorder %s7388_s19, 1  ;;  %p4499_p11 = scmp.ne.s32.totalorder %s7388_s19, 0 }
  0xb7   : > { %s6175_s17 = scalar_select %p1125_p7, %s7388_s19, 1 }
  0xb8   : > { %1151 = sbr.rel (%p4499_p11) target bundleno = 194 (0xc2), region = 148 }
  0xb9   : > { %s4498_s10 = sshll.u32 %s6175_s17, 1  ;;  %s1137_s6 = scalar_lea.vmem %s7391_s12, %s6175_s17 }
  0xba   : > { %s6193_s9 = scalar_lea.vmem %s7392_s28, %s4498_s10  ;;  %s1140_s18 = scalar_lea.vmem %s7393_s25, %s6175_s17 }
  0xbb   : > { %s1143_s24 = scalar_lea.vmem %s7394_s14, %s6175_s17  ;;  %s1146_s21 = scalar_lea.vmem %s7395_s8, %s6175_s17 }
  0xbd   : > { %v1152_v0 = vld [vmem:[%s6113_s11] sm:$0xff]  ;;  %v1153_v1 = vld [vmem:[%s6113_s11 + $0x8] sm:$0xff]  ;;  %v1154_v2 = vld [vmem:[%s6113_s11 + $0x10] sm:$0xff] }
  0xbe   : > { %1156 = vst [vmem:[#allocation2] sm:$0xff] %v1152_v0  ;;  %v1155_v3 = vld [vmem:[%s6113_s11 + $0x18] sm:$0xff] }
  0xbf   : > { %1157 = vst [vmem:[#allocation2 + $0x8] sm:$0xff] %v1153_v1 }
  0xc0   : > { %1158 = vst [vmem:[#allocation2 + $0x10] sm:$0xff] %v1154_v2 }
  0xc1   : > { %1159 = vst [vmem:[#allocation2 + $0x18] sm:$0xff] %v1155_v3 }
  0xc2 PF: > { %v4850_v4 = vld [vmem:[%s6141_s13 + $0x38] sm:$0xff]  ;;  %v4849_v6 = vld [vmem:[%s6141_s13 + $0x30] sm:$0xff]  ;;  %v4848_v8 = vld [vmem:[%s6141_s13 + $0x28] sm:$0xff]  ;;  %s7396_s5 = scalar_lea.vmem [#allocation13], %s6131_s4  ;;  %s7397_s7 = scalar_lea.vmem [#allocation16], %s6131_s4  ;;  %vm1441_vm0 = vcmask 1047556  }
  0xc3   : > { %v4858_v5 = vld [vmem:[%s6149_s20 + $0x38] sm:$0xff]  ;;  %1242 = vmatpush.bf16.msra.mxu0 %v4850_v4  ;;  %4924 = vmatpush.bf16.msra.mxu2 %v4850_v4  ;;  %v4857_v7 = vld [vmem:[%s6149_s20 + $0x30] sm:$0xff]  ;;  %v4856_v9 = vld [vmem:[%s6149_s20 + $0x28] sm:$0xff]  ;;  %s5679_s25 = smov 96   ;;  %s5680_s27 = smov 64   ;;  %vm1855_vm1 = vcmask 257024  }
  0xc4   : > { %1331 = vmatpush.bf16.msra.mxu1 %v4858_v5  ;;  %4932 = vmatpush.bf16.msra.mxu3 %v4858_v5  ;;  %v4847_v10 = vld [vmem:[%s6141_s13 + $0x20] sm:$0xff]  ;;  %v4846_v12 = vld [vmem:[%s6141_s13 + $0x18] sm:$0xff]  ;;  %v4845_v14 = vld [vmem:[%s6141_s13 + $0x10] sm:$0xff]  ;;  %s5681_s28 = smov 32   ;;  %v5682_v0 = vmov 1983009808  }
  0xc5   : > { %v4855_v11 = vld [vmem:[%s6149_s20 + $0x20] sm:$0xff]  ;;  %v4854_v13 = vld [vmem:[%s6149_s20 + $0x18] sm:$0xff]  ;;  %v4853_v15 = vld [vmem:[%s6149_s20 + $0x10] sm:$0xff]  ;;  %v1432_v1 = vunpack.c.l.s4 %v5682_v0  ;;  %s6685_s11 = smov 0  }
  0xc6   : > { %v4844_v16 = vld [vmem:[%s6141_s13 + $0x8] sm:$0xff]  ;;  %v1160_v17 = vld [vmem:[#allocation2] sm:$0xff]  ;;  %v1166_v23 = vld [vmem:[%s6124_s1 + $0x10] sm:$0xff] }
  0xc7   : > { %1243 = vmatpush.bf16.msra.mxu0 %v4849_v6  ;;  %4925 = vmatpush.bf16.msra.mxu2 %v4849_v6  ;;  %v1161_v18 = vld [vmem:[#allocation2 + $0x8] sm:$0xff]  ;;  %v1164_v19 = vld [vmem:[%s6124_s1] sm:$0xff]  ;;  %v1162_v21 = vld [vmem:[#allocation2 + $0x10] sm:$0xff]  ;;  %v6299_v5 = vunpack.c.0.s8 %v1432_v1 }
  0xc8   : > { %1332 = vmatpush.bf16.msra.mxu1 %v4857_v7  ;;  %4933 = vmatpush.bf16.msra.mxu3 %v4857_v7  ;;  %v1165_v20 = vld [vmem:[%s6124_s1 + $0x8] sm:$0xff]  ;;  %v1163_v22 = vld [vmem:[#allocation2 + $0x18] sm:$0xff]  ;;  %v1168_v26 = vadd.f32 %v1164_v19, %v1160_v17  ;;  %v1170_v28 = vadd.f32 %v1166_v23, %v1162_v21  ;;  %v4843_v30 = vld [vmem:[%s6141_s13] sm:$0xff]  ;;  %v1261_v34 = vpack.c.bf16 %v1161_v18, %v1160_v17 }
  0xc9   : > { %v1167_v24 = vld [vmem:[%s6124_s1 + $0x18] sm:$0xff]  ;;  %v4852_v25 = vld [vmem:[%s6149_s20 + $0x8] sm:$0xff]  ;;  %v1169_v27 = vadd.f32 %v1165_v20, %v1161_v18  ;;  %v4851_v31 = vld [vmem:[%s6149_s20] sm:$0xff]  ;;  %v1262_v35 = vpack.c.bf16 %v1163_v22, %v1162_v21 }
  0xca   : > { %v1171_v29 = vadd.f32 %v1167_v24, %v1163_v22  ;;  %v5115_v36 = vld [vmem:[%s7396_s5] ss:$0 sm:$0xff] }
  0xcb   : > { %1244 = vmatpush.bf16.msra.mxu0 %v4848_v8  ;;  %4926 = vmatpush.bf16.msra.mxu2 %v4848_v8  ;;  %v1172_v32 = vpack.c.bf16 %v1169_v27, %v1168_v26  ;;  %v5116_v37 = vld [vmem:[%s7397_s7] ss:$0 sm:$0xff]  ;;  %v5683_v8 = vmov 1934713408  }
  0xcc   : > { %1333 = vmatpush.bf16.msra.mxu1 %v4856_v9  ;;  %4934 = vmatpush.bf16.msra.mxu3 %v4856_v9  ;;  %v1173_v33 = vpack.c.bf16 %v1171_v29, %v1170_v28  ;;  %v1446_v9 = vunpack.c.l.s4 %v5683_v8 }
  0xce   : > { %v6306_v20 = vunpack.c.0.s8 %v1446_v9 }
  0xcf   : > { %1245 = vmatpush.bf16.msra.mxu0 %v4847_v10  ;;  %4927 = vmatpush.bf16.msra.mxu2 %v4847_v10 }
  0xd0   : > { %1334 = vmatpush.bf16.msra.mxu1 %v4855_v11  ;;  %4935 = vmatpush.bf16.msra.mxu3 %v4855_v11 }
  0xd3   : > { %1246 = vmatpush.bf16.msra.mxu0 %v4846_v12  ;;  %4928 = vmatpush.bf16.msra.mxu2 %v4846_v12 }
  0xd4   : > { %1335 = vmatpush.bf16.msra.mxu1 %v4854_v13  ;;  %4936 = vmatpush.bf16.msra.mxu3 %v4854_v13 }
  0xd7   : > { %1247 = vmatpush.bf16.msra.mxu0 %v4845_v14  ;;  %4929 = vmatpush.bf16.msra.mxu2 %v4845_v14 }
  0xd8   : > { %1336 = vmatpush.bf16.msra.mxu1 %v4853_v15  ;;  %4937 = vmatpush.bf16.msra.mxu3 %v4853_v15 }
  0xdb   : > { %1248 = vmatpush.bf16.msra.mxu0 %v4844_v16  ;;  %4930 = vmatpush.bf16.msra.mxu2 %v4844_v16 }
  0xdc   : > { %1337 = vmatpush.bf16.msra.mxu1 %v4852_v25  ;;  %4938 = vmatpush.bf16.msra.mxu3 %v4852_v25 }
  0xdf   : > { %1249 = vmatpush.bf16.msra.mxu0 %v4843_v30  ;;  %4931 = vmatpush.bf16.msra.mxu2 %v4843_v30 }
  0xe0   : > { %1338 = vmatpush.bf16.msra.mxu1 %v4851_v31  ;;  %4939 = vmatpush.bf16.msra.mxu3 %v4851_v31 }
  0xe2   : > { %1250 = vmatmul.bf16.vlgmr.msra.gmra.mxu0 %v1172_v32  ;;  %1255 = vmatmul.bf16.vlgmr.msra.gmra.mxu2 %v1173_v33 }
  0xe3   : > { %1339 = vmatmul.bf16.vlgmr.msra.gmra.mxu1 %v1261_v34  ;;  %1344 = vmatmul.bf16.vlgmr.msra.gmra.mxu3 %v1262_v35 }
 0x15f   : > { %v1251_v38 = vpop.f32.mrf.mxu0 }
 0x160   : > { %v1252_v39 = vadd.f32 %v5115_v36, %v1251_v38  ;;  %v1340_v40 = vpop.f32.mrf.mxu1 }
 0x161   : > { %v1341_v41 = vadd.f32 %v5116_v37, %v1340_v40 }
 0x162   : > { %v6238_v42 = vpack.c.bf16 %v1252_v39, %v1252_v39 }
 0x163   : > { %v1872_v43 = vpack.c.bf16 %v1341_v41, %v1341_v41 }
 0x164   : > { %1358 = vrot.lane.b32.xlu0 %v6238_v42, %s5679_s25  ;;  %v1385_v21 = vshrl.u32 %v6238_v42, 16 }
 0x165   : > { %1888 = vrot.lane.b32.xlu1 %v1872_v43, %s5680_s27  ;;  %1880 = vrot.lane.b32.xlu2 %v1872_v43, %s5679_s25  ;;  %v1256_v44 = vpop.f32.mrf.mxu2  ;;  %v1907_v4 = vshrl.u32 %v1872_v43, 16 }
 0x166   : > { %v1257_v45 = vadd.f32 %v5115_v36, %v1256_v44  ;;  %v1345_v47 = vpop.f32.mrf.mxu3 }
 0x167   : > { %v1346_v48 = vadd.f32 %v5116_v37, %v1345_v47  ;;  %v1253_v50 = vpop.f32.mrf.mxu0 }
 0x168   : > { %v6244_v46 = vpack.c.bf16 %v1257_v45, %v1257_v45  ;;  %v1254_v51 = vadd.f32 %v5115_v36, %v1253_v50  ;;  %v1342_v53 = vpop.f32.mrf.mxu1 }
 0x169   : > { %v6252_v49 = vpack.c.bf16 %v1346_v48, %v1346_v48  ;;  %v1343_v55 = vadd.f32 %v5116_v37, %v1342_v53 }
 0x16a   : > { %v6259_v52 = vpack.c.bf16 %v1254_v51, %v1254_v51  ;;  %v1409_v22 = vshrl.u32 %v6244_v46, 16 }
 0x16b   : > { %v6267_v57 = vpack.c.bf16 %v1343_v55, %v1343_v55  ;;  %v1931_v26 = vshrl.u32 %v6252_v49, 16 }
 0x16c   : > { %1374 = vrot.lane.b32.xlu0 %v6238_v42, %s5681_s28  ;;  %v1397_v30 = vshrl.u32 %v6259_v52, 16 }
 0x16d   : > { %1362 = vrot.lane.b32.xlu1 %v6244_v46, %s5679_s25  ;;  %1366 = vrot.lane.b32.xlu2 %v6238_v42, %s5680_s27  ;;  %v1258_v54 = vpop.f32.mrf.mxu2  ;;  %v1919_v29 = vshrl.u32 %v6267_v57, 16 }
 0x16e   : > { %v1259_v56 = vadd.f32 %v5115_v36, %v1258_v54  ;;  %v1347_v59 = vpop.f32.mrf.mxu3 }
 0x16f   : > { %v1348_v60 = vadd.f32 %v5116_v37, %v1347_v59 }
 0x170   : > { %v6269_v58 = vpack.c.bf16 %v1259_v56, %v1259_v56 }
 0x171   : > { %v6277_v61 = vpack.c.bf16 %v1348_v60, %v1348_v60 }
 0x172   : > { %v1421_v37 = vshrl.u32 %v6269_v58, 16 }
 0x173   : > { %v1943_v38 = vshrl.u32 %v6277_v61, 16 }
 0x174   : > { %1884 = vrot.lane.b32.xlu0 %v6252_v49, %s5679_s25 }
 0x175   : > { %1370 = vrot.lane.b32.xlu1 %v6244_v46, %s5680_s27  ;;  %1896 = vrot.lane.b32.xlu2 %v1872_v43, %s5681_s28 }
 0x17c   : > { %1892 = vrot.lane.b32.xlu0 %v6252_v49, %s5680_s27 }
 0x17d   : > { %1376 = vrot.lane.b32.xlu1 %v6259_v52, %s5681_s28  ;;  %1378 = vrot.lane.b32.xlu2 %v6244_v46, %s5681_s28 }
 0x184   : > { %1360 = vrot.lane.b32.xlu0 %v6259_v52, %s5679_s25 }
 0x185   : > { %1364 = vrot.lane.b32.xlu1 %v6269_v58, %s5679_s25  ;;  %1882 = vrot.lane.b32.xlu2 %v6267_v57, %s5679_s25 }
 0x18c   : > { %1368 = vrot.lane.b32.xlu0 %v6259_v52, %s5680_s27 }
 0x18d   : > { %1886 = vrot.lane.b32.xlu1 %v6277_v61, %s5679_s25  ;;  %1890 = vrot.lane.b32.xlu2 %v6267_v57, %s5680_s27 }
 0x194   : > { %1380 = vrot.lane.b32.xlu0 %v6269_v58, %s5681_s28 }
 0x195   : > { %1894 = vrot.lane.b32.xlu1 %v6277_v61, %s5680_s27  ;;  %1372 = vrot.lane.b32.xlu2 %v6269_v58, %s5680_s27 }
 0x19c   : > { %1898 = vrot.lane.b32.xlu0 %v6267_v57, %s5681_s28 }
 0x19d   : > { %1900 = vrot.lane.b32.xlu1 %v6252_v49, %s5681_s28  ;;  %1902 = vrot.lane.b32.xlu2 %v6277_v61, %s5681_s28 }
 0x1bf   : > { %v1881_v62 = vpop.permute.xlu2 %1880 }
 0x1c0   : > { %v1908_v2 = vshrl.u32 %v1881_v62, 16  ;;  %v1906_v6 = vpack.i.b16 %v1881_v62, %v1872_v43 }
 0x1c2   : > { %v1909_v7 = vpack.i.b16 %v1908_v2, %v1907_v4  ;;  %v1956_v10 = vperm.slane %v1906_v6, %v6299_v5 }
 0x1c4   : > { %v1982_v12 = vperm.slane %v1909_v7, %v6299_v5  ;;  %v1964_v23 = vrot.slane %v1956_v10, 4 }
 0x1c6   : > { %v1990_v27 = vrot.slane %v1982_v12, 4 }
 0x1c7   : > { %v6297_v63 = vpop.permute.xlu2 %1366 }
 0x1c8   : > { %v1391_v35 = vshrl.u32 %v6297_v63, 16 }
 0x1cf   : > { %v1897_v3 = vpop.permute.xlu2 %1896 }
 0x1d0   : > { %v1914_v16 = vshrl.u32 %v1897_v3, 16 }
 0x1d6   : > { %v1359_v11 = vpop.permute.xlu0 %1358 }
 0x1d7   : > { %v1889_v13 = vpop.permute.xlu1 %1888  ;;  %v6303_v14 = vpop.permute.xlu2 %1378  ;;  %v1384_v15 = vpack.i.b16 %v1359_v11, %v6238_v42  ;;  %v1386_v19 = vshrl.u32 %v1359_v11, 16 }
 0x1d8   : > { %v1912_v17 = vpack.i.b16 %v1897_v3, %v1889_v13  ;;  %v1913_v18 = vshrl.u32 %v1889_v13, 16  ;;  %v1416_v42 = vshrl.u32 %v6303_v14, 16 }
 0x1d9   : > { %v6313_v28 = vperm.slane %v1384_v15, %v6299_v5  ;;  %v1387_v34 = vpack.i.b16 %v1386_v19, %v1385_v21 }
 0x1da   : > { %v1915_v24 = vpack.i.b16 %v1914_v16, %v1913_v18  ;;  %v1961_v25 = vperm.slane %v1912_v17, %v6299_v5 }
 0x1db   : > { %v1443_v47 = vrot.slane %v6313_v28, 4  ;;  %v6331_v53 = vperm.slane %v1387_v34, %v6299_v5 }
 0x1dc   : > { %v1962_v31 = vrot.slane %v1961_v25, 4  ;;  %v1965_v32 = vsel %vm1441_vm0, %v1961_v25, %v1964_v23  ;;  %v1987_v33 = vperm.slane %v1915_v24, %v6299_v5 }
 0x1dd   : > { %v1973_v36 = vperm.slane %v1965_v32, %v6306_v20  ;;  %v1469_v11 = vrot.slane %v6331_v53, 4 }
 0x1de   : > { %v1963_v39 = vsel %vm1441_vm0, %v1962_v31, %v1956_v10  ;;  %v1988_v40 = vrot.slane %v1987_v33, 4  ;;  %v1991_v41 = vsel %vm1441_vm0, %v1987_v33, %v1990_v27  ;;  %v1375_v50 = vpop.permute.xlu0 %1374 }
 0x1df   : > { %v1969_v43 = vperm.slane %v1963_v39, %v6306_v20  ;;  %v1976_v44 = vrot.slane %v1973_v36, 4  ;;  %v1999_v45 = vperm.slane %v1991_v41, %v6306_v20  ;;  %v1363_v48 = vpop.permute.xlu1 %1362  ;;  %v1883_v0 = vpop.permute.xlu2 %1882  ;;  %v1390_v4 = vpack.i.b16 %v1375_v50, %v6297_v63 }
 0x1e0   : > { %v1989_v51 = vsel %vm1441_vm0, %v1988_v40, %v1982_v12  ;;  %v1408_v54 = vpack.i.b16 %v1363_v48, %v6244_v46  ;;  %v1410_v55 = vshrl.u32 %v1363_v48, 16  ;;  %v1918_v12 = vpack.i.b16 %v1883_v0, %v6267_v57 }
 0x1e1   : > { %v1974_v56 = vrot.slane %v1969_v43, 4  ;;  %v1977_v59 = vsel %vm1441_vm0, 0, %v1976_v44  ;;  %v1995_v60 = vperm.slane %v1989_v51, %v6306_v20  ;;  %v2002_v62 = vrot.slane %v1999_v45, 4 }
 0x1e2   : > { %v2160_v1 = vsel %vm1441_vm0, %v1976_v44, %v1969_v43  ;;  %v2165_v2 = vrot.slane %v1977_v59, 4  ;;  %v1411_v3 = vpack.i.b16 %v1410_v55, %v1409_v22  ;;  %v6341_v46 = vperm.slane %v1408_v54, %v6299_v5 }
 0x1e3   : > { %v1975_v6 = vsel %vm1441_vm0, 0, %v1974_v56  ;;  %v2000_v7 = vrot.slane %v1995_v60, 4  ;;  %v2003_v8 = vsel %vm1441_vm0, 0, %v2002_v62  ;;  %v2164_v63 = vperm.slane %v2160_v1, %v6299_v5 }
 0x1e4   : > { %v2166_v9 = vsel %vm1441_vm0, %v2165_v2, %v1975_v6  ;;  %v2184_v10 = vrot.slane %v2003_v8, 4  ;;  %v2179_v16 = vsel %vm1441_vm0, %v2002_v62, %v1995_v60  ;;  %v6352_v18 = vperm.slane %v1411_v3, %v6299_v5 }
 0x1e5   : > { %v2001_v13 = vsel %vm1441_vm0, 0, %v2000_v7  ;;  %v2170_v15 = vperm.slane %v2166_v9, %v6299_v5  ;;  %v1920_v19 = vshrl.u32 %v1883_v0, 16  ;;  %v1392_v21 = vshrl.u32 %v1375_v50, 16 }
 0x1e6   : > { %v2185_v17 = vsel %vm1441_vm0, %v2184_v10, %v2001_v13  ;;  %v1547_v57 = vrot.slane %v6341_v46, 4  ;;  %v1439_v24 = vperm.slane %v1390_v4, %v6299_v5  ;;  %v2183_v27 = vperm.slane %v2179_v16, %v6299_v5  ;;  %v6363_v41 = vpop.permute.xlu0 %1884 }
 0x1e7   : > { %v2171_v22 = vrot.slane %v2170_v15, 4  ;;  %v2189_v23 = vperm.slane %v2185_v17, %v6299_v5  ;;  %v1371_v25 = vpop.permute.xlu1 %1370  ;;  %v1921_v31 = vpack.i.b16 %v1920_v19, %v1919_v29  ;;  %v6359_v32 = vperm.slane %v1918_v12, %v6299_v5  ;;  %v6391_v19 = vpop.permute.xlu2 %1890 }
 0x1e8   : > { %v1393_v33 = vpack.i.b16 %v1392_v21, %v1391_v35  ;;  %v1440_v39 = vrot.slane %v1439_v24, 4  ;;  %v1444_v40 = vsel %vm1441_vm0, %v1439_v24, %v1443_v47  ;;  %v1573_v44 = vrot.slane %v6352_v18, 4 }
 0x1e9   : > { %v2172_v34 = vsel %vm1441_vm0, %v2171_v22, %v2164_v63  ;;  %v2190_v36 = vrot.slane %v2189_v23, 4  ;;  %v1452_v45 = vperm.slane %v1444_v40, %v6306_v20  ;;  %v6371_v35 = vperm.slane %v1921_v31, %v6299_v5 }
 0x1ea   : > { %v2176_v43 = vperm.slane %v2172_v34, %v6306_v20  ;;  %v1466_v29 = vperm.slane %v1393_v33, %v6299_v5  ;;  %v1442_v50 = vsel %vm1441_vm0, %v1440_v39, %v6313_v28  ;;  %v1414_v47 = vpack.i.b16 %v6303_v14, %v1371_v25 }
 0x1eb   : > { %v2191_v48 = vsel %vm1441_vm0, %v2190_v36, %v2183_v27  ;;  %v1415_v56 = vshrl.u32 %v1371_v25, 16  ;;  %v1448_v59 = vperm.slane %v1442_v50, %v6306_v20  ;;  %v1455_v60 = vrot.slane %v1452_v45, 4 }
 0x1ec   : > { %v2177_v51 = vrot.slane %v2176_v43, 4  ;;  %v2195_v54 = vperm.slane %v2191_v48, %v6306_v20  ;;  %v2316_v55 = vshrl.u32 %v2176_v43, 16  ;;  %v1467_v62 = vrot.slane %v1466_v29, 4 }
 0x1ed   : > { %v1470_v0 = vsel %vm1441_vm0, %v1466_v29, %v1469_v11  ;;  %v1453_v6 = vrot.slane %v1448_v59, 4  ;;  %v1456_v28 = vsel %vm1441_vm0, 0, %v1455_v60  ;;  %v1544_v8 = vperm.slane %v1414_v47, %v6299_v5 }
 0x1ee   : > { %v2178_v1 = vsel %vm1441_vm0, 0, %v2177_v51  ;;  %v2196_v2 = vrot.slane %v2195_v54, 4  ;;  %v2314_v3 = vpack.i.b16 %v2195_v54, %v2176_v43  ;;  %v2317_v4 = vshrl.u32 %v2195_v54, 16  ;;  %v6399_v33 = vpop.permute.xlu0 %1892 }
 0x1ef   : > { %v1468_v7 = vsel %vm1441_vm0, %v1467_v62, %v6331_v53  ;;  %v6384_v9 = vpop.permute.xlu1 %1376  ;;  %v1478_v13 = vperm.slane %v1470_v0, %v6306_v20  ;;  %v2324_v15 = vshrl.u32 %v2178_v1, 16  ;;  %v1454_v17 = vsel %vm1441_vm0, 0, %v1453_v6 }
 0x1f0   : > { %v2197_v10 = vsel %vm1441_vm0, 0, %v2196_v2  ;;  %v2318_v12 = vpack.i.b16 %v2317_v4, %v2316_v55  ;;  %2376 = vst.msk [vmem:[#allocation4] sm:$0xf] %vm1855_vm1, %v2314_v3  ;;  %v1474_v11 = vperm.slane %v1468_v7, %v6306_v20  ;;  %v2016_v53 = vrot.slane %v6359_v32, 4 }
 0x1f1   : > { %v2322_v63 = vpack.i.b16 %v2197_v10, %v2178_v1  ;;  %v2325_v16 = vshrl.u32 %v2197_v10, 16  ;;  %v1481_v22 = vrot.slane %v1478_v13, 4  ;;  %v1644_v23 = vrot.slane %v1456_v28, 4  ;;  %v6434_v13 = vpop.permute.xlu2 %1372 }
 0x1f2   : > { %2380 = vst.msk [vmem:[#allocation4 + $0x10] sm:$0xf] %vm1855_vm1, %v2318_v12  ;;  %v1479_v21 = vrot.slane %v1474_v11, 4  ;;  %v1417_v25 = vpack.i.b16 %v1416_v42, %v1415_v56  ;;  %v1545_v27 = vrot.slane %v1544_v8, 4  ;;  %v1548_v31 = vsel %vm1441_vm0, %v1544_v8, %v1547_v57 }
 0x1f3   : > { %v2326_v24 = vpack.i.b16 %v2325_v16, %v2324_v15  ;;  %2384 = vst.msk [vmem:[#allocation4 + $0x20] sm:$0xf] %vm1855_vm1, %v2322_v63  ;;  %v1482_v36 = vsel %vm1441_vm0, 0, %v1481_v22  ;;  %v1639_v39 = vsel %vm1441_vm0, %v1455_v60, %v1448_v59  ;;  %v1645_v40 = vsel %vm1441_vm0, %v1644_v23, %v1454_v17 }
 0x1f4   : > { %v1480_v34 = vsel %vm1441_vm0, 0, %v1479_v21  ;;  %v2042_v43 = vrot.slane %v6371_v35, 4  ;;  %v1649_v14 = vperm.slane %v1645_v40, %v6299_v5  ;;  %v1663_v42 = vrot.slane %v1482_v36, 4 }
 0x1f5   : > { %2388 = vst.msk [vmem:[#allocation4 + $0x30] sm:$0xf] %vm1855_vm1, %v2326_v24  ;;  %v1546_v57 = vsel %vm1441_vm0, %v1545_v27, %v6341_v46  ;;  %v1658_v45 = vsel %vm1441_vm0, %v1481_v22, %v1474_v11  ;;  %v1556_v48 = vperm.slane %v1548_v31, %v6306_v20  ;;  %v1570_v50 = vperm.slane %v1417_v25, %v6299_v5 }
 0x1f6   : > { %v1552_v29 = vperm.slane %v1546_v57, %v6306_v20  ;;  %v1643_v47 = vperm.slane %v1639_v39, %v6299_v5  ;;  %v1650_v51 = vrot.slane %v1649_v14, 4  ;;  %v1664_v54 = vsel %vm1441_vm0, %v1663_v42, %v1480_v34  ;;  %v1361_v22 = vpop.permute.xlu0 %1360 }
 0x1f7   : > { %v1932_v55 = vshrl.u32 %v6363_v41, 16  ;;  %v6417_v56 = vpop.permute.xlu1 %1364  ;;  %v1668_v59 = vperm.slane %v1664_v54, %v6299_v5  ;;  %v1559_v60 = vrot.slane %v1556_v48, 4  ;;  %v1571_v62 = vrot.slane %v1570_v50, 4 }
 0x1f8   : > { %v1557_v46 = vrot.slane %v1552_v29, 4  ;;  %v1651_v0 = vsel %vm1441_vm0, %v1650_v51, %v1643_v47  ;;  %v1662_v1 = vperm.slane %v1658_v45, %v6299_v5  ;;  %v1574_v2 = vsel %vm1441_vm0, %v1570_v50, %v1573_v44 }
 0x1f9   : > { %v1930_v3 = vpack.i.b16 %v6363_v41, %v6252_v49  ;;  %v1655_v4 = vperm.slane %v1651_v0, %v6306_v20  ;;  %v1669_v6 = vrot.slane %v1668_v59, 4  ;;  %v1560_v7 = vsel %vm1441_vm0, 0, %v1559_v60 }
 0x1fa   : > { %v1558_v28 = vsel %vm1441_vm0, 0, %v1557_v46  ;;  %v1572_v8 = vsel %vm1441_vm0, %v1571_v62, %v6352_v18  ;;  %v1582_v10 = vperm.slane %v1574_v2, %v6306_v20  ;;  %v1715_v12 = vsel %vm1441_vm0, %v1559_v60, %v1552_v29 }
 0x1fb   : > { %v1720_v11 = vrot.slane %v1560_v7, 4  ;;  %v1656_v44 = vrot.slane %v1655_v4, 4  ;;  %v1670_v41 = vsel %vm1441_vm0, %v1669_v6, %v1662_v1  ;;  %v1578_v63 = vperm.slane %v1572_v8, %v6306_v20  ;;  %v1903_v7 = vpop.permute.xlu2 %1902 }
 0x1fc   : > { %v1933_v15 = vpack.i.b16 %v1932_v55, %v1931_v26  ;;  %v1674_v16 = vperm.slane %v1670_v41, %v6306_v20  ;;  %v1585_v17 = vrot.slane %v1582_v10, 4  ;;  %v6443_v21 = vperm.slane %v1930_v3, %v6299_v5 }
 0x1fd   : > { %v1721_v18 = vsel %vm1441_vm0, %v1720_v11, %v1558_v28  ;;  %v1795_v23 = vshrl.u32 %v1655_v4, 16  ;;  %v1583_v24 = vrot.slane %v1578_v63, 4  ;;  %v1719_v25 = vperm.slane %v1715_v12, %v6299_v5 }
 0x1fe   : > { %v1725_v27 = vperm.slane %v1721_v18, %v6299_v5  ;;  %v1657_v31 = vsel %vm1441_vm0, 0, %v1656_v44  ;;  %v1675_v34 = vrot.slane %v1674_v16, 4  ;;  %v1793_v49 = vpack.i.b16 %v1674_v16, %v1655_v4 }
 0x1ff   : > { %v1796_v26 = vshrl.u32 %v1674_v16, 16  ;;  %v1584_v36 = vsel %vm1441_vm0, 0, %v1583_v24  ;;  %v1586_v39 = vsel %vm1441_vm0, 0, %v1585_v17  ;;  %v1734_v14 = vsel %vm1441_vm0, %v1585_v17, %v1578_v63  ;;  %v1887_v42 = vpop.permute.xlu1 %1886  ;;  %v1369_v16 = vpop.permute.xlu0 %1368 }
 0x200   : > { %v1726_v40 = vrot.slane %v1725_v27, 4  ;;  %v1676_v57 = vsel %vm1441_vm0, 0, %v1675_v34  ;;  %1856 = vst.msk [vmem:[#allocation3] sm:$0xf] %vm1855_vm1, %v1793_v49  ;;  %v1739_v29 = vrot.slane %v1586_v39, 4  ;;  %v2068_v48 = vrot.slane %v6443_v21, 4 }
 0x201   : > { %v1797_v45 = vpack.i.b16 %v1796_v26, %v1795_v23  ;;  %v1801_v50 = vpack.i.b16 %v1676_v57, %v1657_v31  ;;  %v1803_v47 = vshrl.u32 %v1657_v31, 16  ;;  %v1804_v51 = vshrl.u32 %v1676_v57, 16 }
 0x202   : > { %v1727_v54 = vsel %vm1441_vm0, %v1726_v40, %v1719_v25  ;;  %v1738_v59 = vperm.slane %v1734_v14, %v6299_v5  ;;  %v1740_v46 = vsel %vm1441_vm0, %v1739_v29, %v1584_v36  ;;  %v6460_v60 = vperm.slane %v1933_v15, %v6299_v5 }
 0x203   : > { %1860 = vst.msk [vmem:[#allocation3 + $0x10] sm:$0xf] %vm1855_vm1, %v1797_v45  ;;  %v1731_v55 = vperm.slane %v1727_v54, %v6306_v20  ;;  %v1805_v62 = vpack.i.b16 %v1804_v51, %v1803_v47  ;;  %v1744_v0 = vperm.slane %v1740_v46, %v6299_v5  ;;  %v1404_v1 = vshrl.u32 %v6384_v9, 16 }
 0x204   : > { %1864 = vst.msk [vmem:[#allocation3 + $0x20] sm:$0xf] %vm1855_vm1, %v1801_v50  ;;  %v1427_v2 = vshrl.u32 %v6434_v13, 16  ;;  %v1937_v4 = vshrl.u32 %v6399_v33, 16  ;;  %v1420_v6 = vpack.i.b16 %v6417_v56, %v6269_v58  ;;  %v1422_v28 = vshrl.u32 %v6417_v56, 16 }
 0x205   : > { %v1732_v3 = vrot.slane %v1731_v55, 4  ;;  %1868 = vst.msk [vmem:[#allocation3 + $0x30] sm:$0xf] %vm1855_vm1, %v1805_v62  ;;  %v1745_v8 = vrot.slane %v1744_v0, 4  ;;  %v1827_v10 = vshrl.u32 %v1731_v55, 16  ;;  %v1396_v12 = vpack.i.b16 %v1361_v22, %v6259_v52 }
 0x206   : > { %v1398_v11 = vshrl.u32 %v1361_v22, 16  ;;  %v1423_v41 = vpack.i.b16 %v1422_v28, %v1421_v37  ;;  %v6476_v63 = vperm.slane %v1420_v6, %v6299_v5  ;;  %v1942_v15 = vpack.i.b16 %v1887_v42, %v6277_v61 }
 0x207   : > { %v1733_v44 = vsel %vm1441_vm0, 0, %v1732_v3  ;;  %v1746_v56 = vsel %vm1441_vm0, %v1745_v8, %v1738_v59  ;;  %v1950_v17 = vshrl.u32 %v1903_v7, 16  ;;  %v1487_v23 = vperm.slane %v1396_v12, %v6299_v5  ;;  %v1895_v49 = vpop.permute.xlu1 %1894 }
 0x208   : > { %v1399_v18 = vpack.i.b16 %v1398_v11, %v1397_v30  ;;  %v1750_v22 = vperm.slane %v1746_v56, %v6306_v20  ;;  %v1835_v24 = vshrl.u32 %v1733_v44, 16  ;;  %v6485_v58 = vperm.slane %v1423_v41, %v6299_v5 }
 0x209   : > { %v1944_v37 = vshrl.u32 %v1887_v42, 16  ;;  %v1599_v25 = vrot.slane %v6476_v63, 4  ;;  %v2112_v31 = vperm.slane %v1942_v15, %v6299_v5  ;;  %v1402_v34 = vpack.i.b16 %v6384_v9, %v1369_v16 }
 0x20a   : > { %v1513_v27 = vperm.slane %v1399_v18, %v6299_v5  ;;  %v1751_v52 = vrot.slane %v1750_v22, 4  ;;  %v1825_v30 = vpack.i.b16 %v1750_v22, %v1731_v55  ;;  %v1828_v26 = vshrl.u32 %v1750_v22, 16 }
 0x20b   : > { %v1495_v36 = vrot.slane %v1487_v23, 4  ;;  %v1625_v39 = vrot.slane %v6485_v58, 4  ;;  %v1945_v14 = vpack.i.b16 %v1944_v37, %v1943_v38  ;;  %v1403_v42 = vshrl.u32 %v1369_v16, 16 }
 0x20c   : > { %v1521_v40 = vrot.slane %v1513_v27, 4  ;;  %v1752_v57 = vsel %vm1441_vm0, 0, %v1751_v52  ;;  %v1829_v45 = vpack.i.b16 %v1828_v26, %v1827_v10  ;;  %1858 = vst.msk [vmem:[#allocation3 + $0x8] sm:$0xf] %vm1855_vm1, %v1825_v30  ;;  %v1492_v29 = vperm.slane %v1402_v34, %v6299_v5 }
 0x20d   : > { %v1948_v9 = vpack.i.b16 %v1903_v7, %v1895_v49  ;;  %v1833_v50 = vpack.i.b16 %v1752_v57, %v1733_v44  ;;  %v1836_v47 = vshrl.u32 %v1752_v57, 16  ;;  %v2120_v51 = vrot.slane %v2112_v31, 4 }
 0x20e   : > { %v1405_v54 = vpack.i.b16 %v1404_v1, %v1403_v42  ;;  %1862 = vst.msk [vmem:[#allocation3 + $0x18] sm:$0xf] %vm1855_vm1, %v1829_v45  ;;  %v1493_v55 = vrot.slane %v1492_v29, 4  ;;  %v1496_v59 = vsel %vm1441_vm0, %v1492_v29, %v1495_v36  ;;  %v1949_v61 = vshrl.u32 %v1895_v49, 16 }
 0x20f   : > { %v2117_v38 = vperm.slane %v1948_v9, %v6299_v5  ;;  %v1837_v46 = vpack.i.b16 %v1836_v47, %v1835_v24  ;;  %1866 = vst.msk [vmem:[#allocation3 + $0x28] sm:$0xf] %vm1855_vm1, %v1833_v50  ;;  %v2138_v62 = vperm.slane %v1945_v14, %v6299_v5  ;;  %v1504_v0 = vperm.slane %v1496_v59, %v6306_v20 }
 0x210   : > { %v1518_v3 = vperm.slane %v1405_v54, %v6299_v5  ;;  %v1494_v6 = vsel %vm1441_vm0, %v1493_v55, %v1487_v23  ;;  %v1951_v1 = vpack.i.b16 %v1950_v17, %v1949_v61 }
 0x211   : > { %v2118_v28 = vrot.slane %v2117_v38, 4  ;;  %v2121_v7 = vsel %vm1441_vm0, %v2117_v38, %v2120_v51  ;;  %1870 = vst.msk [vmem:[#allocation3 + $0x38] sm:$0xf] %vm1855_vm1, %v1837_v46  ;;  %v1500_v8 = vperm.slane %v1494_v6, %v6306_v20  ;;  %v1507_v10 = vrot.slane %v1504_v0, 4  ;;  %v1381_v51 = vpop.permute.xlu0 %1380 }
 0x212   : > { %v1519_v12 = vrot.slane %v1518_v3, 4  ;;  %v1522_v11 = vsel %vm1441_vm0, %v1518_v3, %v1521_v40  ;;  %v2129_v15 = vperm.slane %v2121_v7, %v6306_v20  ;;  %v2143_v16 = vperm.slane %v1951_v1, %v6299_v5 }
 0x213   : > { %v1530_v44 = vperm.slane %v1522_v11, %v6306_v20  ;;  %v2119_v41 = vsel %vm1441_vm0, %v2118_v28, %v2112_v31  ;;  %v1505_v56 = vrot.slane %v1500_v8, 4  ;;  %v1508_v17 = vsel %vm1441_vm0, 0, %v1507_v10 }
 0x214   : > { %v1520_v18 = vsel %vm1441_vm0, %v1519_v12, %v1513_v27  ;;  %v1677_v23 = vsel %vm1441_vm0, %v1507_v10, %v1500_v8  ;;  %v2146_v22 = vrot.slane %v2138_v62, 4  ;;  %v1682_v34 = vrot.slane %v1508_v17, 4 }
 0x215   : > { %v1526_v24 = vperm.slane %v1520_v18, %v6306_v20  ;;  %v1533_v37 = vrot.slane %v1530_v44, 4  ;;  %v1506_v49 = vsel %vm1441_vm0, 0, %v1505_v56  ;;  %v2125_v31 = vperm.slane %v2119_v41, %v6306_v20 }
 0x216   : > { %v2132_v52 = vrot.slane %v2129_v15, 4  ;;  %v2144_v30 = vrot.slane %v2143_v16, 4  ;;  %v1681_v40 = vperm.slane %v1677_v23, %v6299_v5  ;;  %v1683_v27 = vsel %vm1441_vm0, %v1682_v34, %v1506_v49 }
 0x217   : > { %v1531_v26 = vrot.slane %v1526_v24, 4  ;;  %v1534_v36 = vsel %vm1441_vm0, 0, %v1533_v37  ;;  %v1687_v14 = vperm.slane %v1683_v27, %v6299_v5  ;;  %v1696_v42 = vsel %vm1441_vm0, %v1533_v37, %v1526_v24 }
 0x218   : > { %v1701_v57 = vrot.slane %v1534_v36, 4  ;;  %v2130_v45 = vrot.slane %v2125_v31, 4  ;;  %v2133_v9 = vsel %vm1441_vm0, 0, %v2132_v52  ;;  %v2145_v50 = vsel %vm1441_vm0, %v2144_v30, %v2138_v62 }
 0x219   : > { %v1532_v29 = vsel %vm1441_vm0, 0, %v1531_v26  ;;  %v2147_v47 = vsel %vm1441_vm0, %v2143_v16, %v2146_v22  ;;  %v1688_v54 = vrot.slane %v1687_v14, 4  ;;  %v2151_v61 = vperm.slane %v2145_v50, %v6306_v20 }
 0x21a   : > { %v1702_v55 = vsel %vm1441_vm0, %v1701_v57, %v1532_v29  ;;  %v2131_v59 = vsel %vm1441_vm0, 0, %v2130_v45  ;;  %v2155_v46 = vperm.slane %v2147_v47, %v6306_v20  ;;  %v2274_v0 = vsel %vm1441_vm0, %v2132_v52, %v2125_v31 }
 0x21b   : > { %v1706_v38 = vperm.slane %v1702_v55, %v6299_v5  ;;  %v2279_v3 = vrot.slane %v2133_v9, 4  ;;  %v1689_v6 = vsel %vm1441_vm0, %v1688_v54, %v1681_v40  ;;  %v1700_v62 = vperm.slane %v1696_v42, %v6299_v5  ;;  %v1901_v54 = vpop.permute.xlu1 %1900 }
 0x21c   : > { %v2156_v1 = vrot.slane %v2151_v61, 4  ;;  %v1426_v28 = vpack.i.b16 %v1381_v51, %v6434_v13  ;;  %v1693_v7 = vperm.slane %v1689_v6, %v6306_v20  ;;  %v2158_v10 = vrot.slane %v2155_v46, 4 }
 0x21d   : > { %v1707_v8 = vrot.slane %v1706_v38, 4  ;;  %v2280_v12 = vsel %vm1441_vm0, %v2279_v3, %v2131_v59  ;;  %v2278_v11 = vperm.slane %v2274_v0, %v6299_v5  ;;  %v1428_v41 = vshrl.u32 %v1381_v51, 16 }
 0x21e   : > { %v2284_v44 = vperm.slane %v2280_v12, %v6299_v5  ;;  %v1596_v15 = vperm.slane %v1426_v28, %v6299_v5  ;;  %v1694_v16 = vrot.slane %v1693_v7, 4  ;;  %v2157_v17 = vsel %vm1441_vm0, 0, %v2156_v1 }
 0x21f   : > { %v1708_v56 = vsel %vm1441_vm0, %v1707_v8, %v1700_v62  ;;  %v2159_v18 = vsel %vm1441_vm0, 0, %v2158_v10  ;;  %v1811_v22 = vshrl.u32 %v1693_v7, 16  ;;  %v2293_v49 = vsel %vm1441_vm0, %v2158_v10, %v2151_v61 }
 0x220   : > { %v1712_v23 = vperm.slane %v1708_v56, %v6306_v20  ;;  %v2285_v24 = vrot.slane %v2284_v44, 4  ;;  %v2298_v37 = vrot.slane %v2159_v18, 4  ;;  %v1695_v34 = vsel %vm1441_vm0, 0, %v1694_v16 }
 0x221   : > { %v1429_v31 = vpack.i.b16 %v1428_v41, %v1427_v2  ;;  %v1597_v52 = vrot.slane %v1596_v15, 4  ;;  %v1819_v40 = vshrl.u32 %v1695_v34, 16  ;;  %v1600_v57 = vsel %vm1441_vm0, %v1596_v15, %v1599_v25 }
 0x222   : > { %v1713_v30 = vrot.slane %v1712_v23, 4  ;;  %v1809_v26 = vpack.i.b16 %v1712_v23, %v1693_v7  ;;  %v1812_v36 = vshrl.u32 %v1712_v23, 16  ;;  %v2286_v27 = vsel %vm1441_vm0, %v2285_v24, %v2278_v11 }
 0x223   : > { %v2299_v14 = vsel %vm1441_vm0, %v2298_v37, %v2157_v17  ;;  %v1598_v42 = vsel %vm1441_vm0, %v1597_v52, %v6476_v63  ;;  %v2290_v2 = vperm.slane %v2286_v27, %v6306_v20  ;;  %v1608_v51 = vperm.slane %v1600_v57, %v6306_v20 }
 0x224   : > { %v1714_v45 = vsel %vm1441_vm0, 0, %v1713_v30  ;;  %v1813_v13 = vpack.i.b16 %v1812_v36, %v1811_v22  ;;  %1857 = vst.msk [vmem:[#allocation3 + $0x4] sm:$0xf] %vm1855_vm1, %v1809_v26  ;;  %v2303_v29 = vperm.slane %v2299_v14, %v6299_v5  ;;  %v1604_v47 = vperm.slane %v1598_v42, %v6306_v20 }
 0x225   : > { %v1817_v9 = vpack.i.b16 %v1714_v45, %v1695_v34  ;;  %v1820_v50 = vshrl.u32 %v1714_v45, 16  ;;  %v2291_v63 = vrot.slane %v2290_v2, 4  ;;  %v2297_v25 = vperm.slane %v2293_v49, %v6299_v5  ;;  %v1899_v49 = vpop.permute.xlu0 %1898 }
 0x226   : > { %1861 = vst.msk [vmem:[#allocation3 + $0x14] sm:$0xf] %vm1855_vm1, %v1813_v13  ;;  %v2304_v55 = vrot.slane %v2303_v29, 4  ;;  %v1622_v59 = vperm.slane %v1429_v31, %v6299_v5  ;;  %v2364_v38 = vshrl.u32 %v2290_v2, 16  ;;  %v1609_v46 = vrot.slane %v1604_v47, 4 }
 0x227   : > { %v1821_v61 = vpack.i.b16 %v1820_v50, %v1819_v40  ;;  %1865 = vst.msk [vmem:[#allocation3 + $0x24] sm:$0xf] %vm1855_vm1, %v1817_v9  ;;  %v1611_v0 = vrot.slane %v1608_v51, 4  ;;  %v1936_v1 = vpack.i.b16 %v1901_v54, %v6399_v33  ;;  %v2292_v28 = vsel %vm1441_vm0, 0, %v2291_v63 }
 0x228   : > { %v2305_v3 = vsel %vm1441_vm0, %v2304_v55, %v2297_v25  ;;  %v1623_v6 = vrot.slane %v1622_v59, 4  ;;  %v1626_v62 = vsel %vm1441_vm0, %v1622_v59, %v1625_v39  ;;  %v1610_v8 = vsel %vm1441_vm0, 0, %v1609_v46 }
 0x229   : > { %1869 = vst.msk [vmem:[#allocation3 + $0x34] sm:$0xf] %vm1855_vm1, %v1821_v61  ;;  %v2309_v7 = vperm.slane %v2305_v3, %v6306_v20  ;;  %v1612_v10 = vsel %vm1441_vm0, 0, %v1611_v0  ;;  %v1634_v11 = vperm.slane %v1626_v62, %v6306_v20  ;;  %v1753_v44 = vsel %vm1441_vm0, %v1611_v0, %v1604_v47 }
 0x22a   : > { %v1624_v12 = vsel %vm1441_vm0, %v1623_v6, %v6485_v58  ;;  %v1758_v39 = vrot.slane %v1612_v10, 4  ;;  %v2372_v17 = vshrl.u32 %v2292_v28, 16  ;;  %v1938_v22 = vshrl.u32 %v1901_v54, 16 }
 0x22b   : > { %v2310_v41 = vrot.slane %v2309_v7, 4  ;;  %v2362_v15 = vpack.i.b16 %v2309_v7, %v2290_v2  ;;  %v2365_v16 = vshrl.u32 %v2309_v7, 16  ;;  %v1630_v56 = vperm.slane %v1624_v12, %v6306_v20 }
 0x22c   : > { %v1637_v18 = vrot.slane %v1634_v11, 4  ;;  %v1759_v23 = vsel %vm1441_vm0, %v1758_v39, %v1610_v8  ;;  %v1757_v26 = vperm.slane %v1753_v44, %v6299_v5  ;;  %v1939_v57 = vpack.i.b16 %v1938_v22, %v1937_v4 }
 0x22d   : > { %v2311_v24 = vsel %vm1441_vm0, 0, %v2310_v41  ;;  %v2366_v37 = vpack.i.b16 %v2365_v16, %v2364_v38  ;;  %2379 = vst.msk [vmem:[#allocation4 + $0xc] sm:$0xf] %vm1855_vm1, %v2362_v15  ;;  %v1635_v58 = vrot.slane %v1630_v56, 4  ;;  %v1763_v34 = vperm.slane %v1759_v23, %v6299_v5 }
 0x22e   : > { %v2370_v31 = vpack.i.b16 %v2311_v24, %v2292_v28  ;;  %v2373_v52 = vshrl.u32 %v2311_v24, 16  ;;  %v1638_v30 = vsel %vm1441_vm0, 0, %v1637_v18  ;;  %v1772_v27 = vsel %vm1441_vm0, %v1637_v18, %v1630_v56 }
 0x22f   : > { %2383 = vst.msk [vmem:[#allocation4 + $0x1c] sm:$0xf] %vm1855_vm1, %v2366_v37  ;;  %v1636_v36 = vsel %vm1441_vm0, 0, %v1635_v58  ;;  %v1764_v40 = vrot.slane %v1763_v34, 4  ;;  %v1777_v14 = vrot.slane %v1638_v30, 4  ;;  %v2065_v45 = vperm.slane %v1936_v1, %v6299_v5 }
 0x230   : > { %v2374_v42 = vpack.i.b16 %v2373_v52, %v2372_v17  ;;  %2387 = vst.msk [vmem:[#allocation4 + $0x2c] sm:$0xf] %vm1855_vm1, %v2370_v31  ;;  %v1924_v13 = vpack.i.b16 %v1899_v49, %v6391_v19  ;;  %v1925_v2 = vshrl.u32 %v6391_v19, 16  ;;  %v1926_v50 = vshrl.u32 %v1899_v49, 16 }
 0x231   : > { %v1765_v29 = vsel %vm1441_vm0, %v1764_v40, %v1757_v26  ;;  %v1778_v9 = vsel %vm1441_vm0, %v1777_v14, %v1636_v36  ;;  %v2066_v54 = vrot.slane %v2065_v45, 4  ;;  %v2069_v33 = vsel %vm1441_vm0, %v2065_v45, %v2068_v48 }
 0x232   : > { %2391 = vst.msk [vmem:[#allocation4 + $0x3c] sm:$0xf] %vm1855_vm1, %v2374_v42  ;;  %v1769_v47 = vperm.slane %v1765_v29, %v6306_v20  ;;  %v1782_v51 = vperm.slane %v1778_v9, %v6299_v5  ;;  %v2094_v4 = vrot.slane %v6460_v60, 4  ;;  %v1776_v19 = vperm.slane %v1772_v27, %v6299_v5 }
 0x233   : > { %v2077_v63 = vperm.slane %v2069_v33, %v6306_v20  ;;  %v2091_v25 = vperm.slane %v1939_v57, %v6299_v5  ;;  %v2067_v61 = vsel %vm1441_vm0, %v2066_v54, %v6443_v21  ;;  %v2013_v38 = vperm.slane %v1924_v13, %v6299_v5 }
 0x234   : > { %v1770_v55 = vrot.slane %v1769_v47, 4  ;;  %v1783_v59 = vrot.slane %v1782_v51, 4  ;;  %v2073_v46 = vperm.slane %v2067_v61, %v6306_v20  ;;  %v1843_v62 = vshrl.u32 %v1769_v47, 16 }
 0x235   : > { %v2080_v0 = vrot.slane %v2077_v63, 4  ;;  %v2092_v3 = vrot.slane %v2091_v25, 4  ;;  %v2095_v48 = vsel %vm1441_vm0, %v2091_v25, %v2094_v4  ;;  %v1927_v28 = vpack.i.b16 %v1926_v50, %v1925_v2 }
 0x236   : > { %v1784_v6 = vsel %vm1441_vm0, %v1783_v59, %v1776_v19  ;;  %v2103_v1 = vperm.slane %v2095_v48, %v6306_v20  ;;  %v1771_v7 = vsel %vm1441_vm0, 0, %v1770_v55  ;;  %v2078_v10 = vrot.slane %v2073_v46, 4 }
 0x237   : > { %v1788_v8 = vperm.slane %v1784_v6, %v6306_v20  ;;  %v2081_v21 = vsel %vm1441_vm0, 0, %v2080_v0  ;;  %v2093_v12 = vsel %vm1441_vm0, %v2092_v3, %v6460_v60  ;;  %v2014_v39 = vrot.slane %v2013_v38, 4 }
 0x238   : > { %v2106_v11 = vrot.slane %v2103_v1, 4  ;;  %v2241_v44 = vrot.slane %v2081_v21, 4  ;;  %v2079_v56 = vsel %vm1441_vm0, 0, %v2078_v10  ;;  %v2099_v17 = vperm.slane %v2093_v12, %v6306_v20 }
 0x239   : > { %v1789_v41 = vrot.slane %v1788_v8, 4  ;;  %v1841_v15 = vpack.i.b16 %v1788_v8, %v1769_v47  ;;  %v1844_v16 = vshrl.u32 %v1788_v8, 16  ;;  %v2236_v23 = vsel %vm1441_vm0, %v2080_v0, %v2073_v46 }
 0x23a   : > { %v2107_v18 = vsel %vm1441_vm0, 0, %v2106_v11  ;;  %v2242_v22 = vsel %vm1441_vm0, %v2241_v44, %v2079_v56  ;;  %v1851_v49 = vshrl.u32 %v1771_v7, 16  ;;  %v2104_v52 = vrot.slane %v2099_v17, 4 }
 0x23b   : > { %v1790_v24 = vsel %vm1441_vm0, 0, %v1789_v41  ;;  %v1845_v37 = vpack.i.b16 %v1844_v16, %v1843_v62  ;;  %1859 = vst.msk [vmem:[#allocation3 + $0xc] sm:$0xf] %vm1855_vm1, %v1841_v15  ;;  %v2246_v60 = vperm.slane %v2242_v22, %v6299_v5  ;;  %v2260_v58 = vrot.slane %v2107_v18, 4 }
 0x23c   : > { %v1849_v34 = vpack.i.b16 %v1790_v24, %v1771_v7  ;;  %v1852_v31 = vshrl.u32 %v1790_v24, 16  ;;  %v2240_v30 = vperm.slane %v2236_v23, %v6299_v5  ;;  %v2015_v36 = vsel %vm1441_vm0, %v2014_v39, %v6359_v32 }
 0x23d   : > { %1863 = vst.msk [vmem:[#allocation3 + $0x1c] sm:$0xf] %vm1855_vm1, %v1845_v37  ;;  %v2247_v26 = vrot.slane %v2246_v60, 4  ;;  %v2017_v40 = vsel %vm1441_vm0, %v2013_v38, %v2016_v53  ;;  %v2105_v14 = vsel %vm1441_vm0, 0, %v2104_v52  ;;  %v2021_v42 = vperm.slane %v2015_v36, %v6306_v20 }
 0x23e   : > { %v1853_v27 = vpack.i.b16 %v1852_v31, %v1851_v49  ;;  %1867 = vst.msk [vmem:[#allocation3 + $0x2c] sm:$0xf] %vm1855_vm1, %v1849_v34  ;;  %v2025_v57 = vperm.slane %v2017_v40, %v6306_v20  ;;  %v2255_v13 = vsel %vm1441_vm0, %v2106_v11, %v2099_v17  ;;  %v2261_v2 = vsel %vm1441_vm0, %v2260_v58, %v2105_v14 }
 0x23f   : > { %v2248_v45 = vsel %vm1441_vm0, %v2247_v26, %v2240_v30  ;;  %v2039_v29 = vperm.slane %v1927_v28, %v6299_v5  ;;  %v2265_v53 = vperm.slane %v2261_v2, %v6299_v5  ;;  %v2026_v50 = vrot.slane %v2021_v42, 4 }
 0x240   : > { %1871 = vst.msk [vmem:[#allocation3 + $0x3c] sm:$0xf] %vm1855_vm1, %v1853_v27  ;;  %v2252_v32 = vperm.slane %v2248_v45, %v6306_v20  ;;  %v2028_v9 = vrot.slane %v2025_v57, 4  ;;  %v2259_v33 = vperm.slane %v2255_v13, %v6299_v5 }
 0x241   : > { %v2040_v47 = vrot.slane %v2039_v29, 4  ;;  %v2043_v51 = vsel %vm1441_vm0, %v2039_v29, %v2042_v43  ;;  %v2266_v4 = vrot.slane %v2265_v53, 4  ;;  %v2027_v38 = vsel %vm1441_vm0, 0, %v2026_v50 }
 0x242   : > { %v2253_v54 = vrot.slane %v2252_v32, 4  ;;  %v2029_v19 = vsel %vm1441_vm0, 0, %v2028_v9  ;;  %v2051_v25 = vperm.slane %v2043_v51, %v6306_v20  ;;  %v2348_v3 = vshrl.u32 %v2252_v32, 16 }
 0x243   : > { %v2041_v63 = vsel %vm1441_vm0, %v2040_v47, %v6371_v35  ;;  %v2267_v55 = vsel %vm1441_vm0, %v2266_v4, %v2259_v33  ;;  %v2203_v46 = vrot.slane %v2029_v19, 4  ;;  %v2198_v7 = vsel %vm1441_vm0, %v2028_v9, %v2021_v42 }
 0x244   : > { %v2047_v59 = vperm.slane %v2041_v63, %v6306_v20  ;;  %v2271_v61 = vperm.slane %v2267_v55, %v6306_v20  ;;  %v2054_v43 = vrot.slane %v2051_v25, 4  ;;  %v2254_v0 = vsel %vm1441_vm0, 0, %v2253_v54 }
 0x245   : > { %v2204_v8 = vsel %vm1441_vm0, %v2203_v46, %v2027_v38  ;;  %v2356_v11 = vshrl.u32 %v2254_v0, 16  ;;  %v2202_v56 = vperm.slane %v2198_v7, %v6299_v5 }
 0x246   : > { %v2052_v48 = vrot.slane %v2047_v59, 4  ;;  %v2272_v6 = vrot.slane %v2271_v61, 4  ;;  %v2346_v62 = vpack.i.b16 %v2271_v61, %v2252_v32  ;;  %v2349_v1 = vshrl.u32 %v2271_v61, 16 }
 0x247   : > { %v2055_v35 = vsel %vm1441_vm0, 0, %v2054_v43  ;;  %v2208_v44 = vperm.slane %v2204_v8, %v6299_v5  ;;  %v2217_v15 = vsel %vm1441_vm0, %v2054_v43, %v2047_v59 }
 0x248   : > { %v2053_v28 = vsel %vm1441_vm0, 0, %v2052_v48  ;;  %v2222_v10 = vrot.slane %v2055_v35, 4  ;;  %v2273_v21 = vsel %vm1441_vm0, 0, %v2272_v6  ;;  %v2350_v12 = vpack.i.b16 %v2349_v1, %v2348_v3  ;;  %2378 = vst.msk [vmem:[#allocation4 + $0x8] sm:$0xf] %vm1855_vm1, %v2346_v62 }
 0x249   : > { %v2354_v39 = vpack.i.b16 %v2273_v21, %v2254_v0  ;;  %v2357_v41 = vshrl.u32 %v2273_v21, 16  ;;  %v2209_v17 = vrot.slane %v2208_v44, 4  ;;  %v2221_v24 = vperm.slane %v2217_v15, %v6299_v5 }
 0x24a   : > { %v2223_v16 = vsel %vm1441_vm0, %v2222_v10, %v2053_v28  ;;  %2382 = vst.msk [vmem:[#allocation4 + $0x18] sm:$0xf] %vm1855_vm1, %v2350_v12 }
 0x24b   : > { %v2227_v18 = vperm.slane %v2223_v16, %v6299_v5  ;;  %v2358_v23 = vpack.i.b16 %v2357_v41, %v2356_v11  ;;  %2386 = vst.msk [vmem:[#allocation4 + $0x28] sm:$0xf] %vm1855_vm1, %v2354_v39  ;;  %v2210_v22 = vsel %vm1441_vm0, %v2209_v17, %v2202_v56 }
 0x24c   : > { %v2214_v60 = vperm.slane %v2210_v22, %v6306_v20 }
 0x24d   : > { %v2228_v37 = vrot.slane %v2227_v18, 4  ;;  %2390 = vst.msk [vmem:[#allocation4 + $0x38] sm:$0xf] %vm1855_vm1, %v2358_v23 }
 0x24e   : > { %v2215_v34 = vrot.slane %v2214_v60, 4  ;;  %v2332_v31 = vshrl.u32 %v2214_v60, 16 }
 0x24f   : > { %v2229_v58 = vsel %vm1441_vm0, %v2228_v37, %v2221_v24 }
 0x250   : > { %v2233_v49 = vperm.slane %v2229_v58, %v6306_v20  ;;  %v2216_v52 = vsel %vm1441_vm0, 0, %v2215_v34 }
 0x251   : > { %v2340_v42 = vshrl.u32 %v2216_v52, 16 }
 0x252   : > { %v2234_v30 = vrot.slane %v2233_v49, 4  ;;  %v2330_v26 = vpack.i.b16 %v2233_v49, %v2214_v60  ;;  %v2333_v36 = vshrl.u32 %v2233_v49, 16 }
 0x254   : > { %v2235_v40 = vsel %vm1441_vm0, 0, %v2234_v30  ;;  %v2334_v27 = vpack.i.b16 %v2333_v36, %v2332_v31  ;;  %2377 = vst.msk [vmem:[#allocation4 + $0x4] sm:$0xf] %vm1855_vm1, %v2330_v26 }
 0x255   : > { %v2338_v14 = vpack.i.b16 %v2235_v40, %v2216_v52  ;;  %v2341_v57 = vshrl.u32 %v2235_v40, 16 }
 0x256   : > { %2381 = vst.msk [vmem:[#allocation4 + $0x14] sm:$0xf] %vm1855_vm1, %v2334_v27 }
 0x257   : > { %v2342_v45 = vpack.i.b16 %v2341_v57, %v2340_v42  ;;  %2385 = vst.msk [vmem:[#allocation4 + $0x24] sm:$0xf] %vm1855_vm1, %v2338_v14 }
 0x259   : > { %2389 = vst.msk [vmem:[#allocation4 + $0x34] sm:$0xf] %vm1855_vm1, %v2342_v45 }
 0x25a LB: >> { %v4866_v13 = vld [vmem:[%s6134_s26 + $0x38] sm:$0xff]  ;;  %v4865_v2 = vld [vmem:[%s6134_s26 + $0x30] sm:$0xff]  ;;  %v4864_v29 = vld [vmem:[%s6134_s26 + $0x28] sm:$0xff]  ;;  %s6696_s13 = sshll.u32 %s5673_s11, 4  ;;  %s7398_s14 = sld [smem:[#allocation59_spill]]  ;;  %vm2763_vm2 = vcmask 261120   ;;  %s5673_s11 = sphi %s6685_s11, %s2397_s11  }
 0x25b   : >> { %2476 = vmatpush.bf16.msra.mxu0 %v4866_v13  ;;  %v4863_v32 = vld [vmem:[%s6134_s26 + $0x20] sm:$0xff]  ;;  %v4862_v53 = vld [vmem:[%s6134_s26 + $0x18] sm:$0xff]  ;;  %v4861_v9 = vld [vmem:[%s6134_s26 + $0x10] sm:$0xff]  ;;  %s2402_s20 = scalar_lea.vmem %s6124_s1, %s6696_s13 [#allocation8]  ;;  %s6703_s12 = scalar_lea.vmem [#allocation2], %s6696_s13 }
 0x25c   : >> { %v4860_v50 = vld [vmem:[%s6134_s26 + $0x8] sm:$0xff]  ;;  %v2400_v47 = vld [vmem:[%s6703_s12] sm:$0xff]  ;;  %s5684_s0 = smov 32   ;;  %s5685_s15 = smov 64   ;;  %v4870_v62 = vld [vmem:[#allocation3 + $0x18] sm:$0xff] }
 0x25d   : >> { %v2401_v51 = vld [vmem:[%s6703_s12 + $0x8] sm:$0xff]  ;;  %v2403_v54 = vld [vmem:[%s2402_s20] sm:$0xff]  ;;  %s5686_s22 = smov 96   ;;  %v2807_v1 = vsel %vm2763_vm2, %v4870_v62, 0  ;;  %v4869_v15 = vld [vmem:[#allocation3 + $0x10] sm:$0xff]  ;;  %s7422_s23 = sld [smem:[#allocation53_spill]] }
 0x25e   : >> { %v2404_v33 = vld [vmem:[%s2402_s20 + $0x8] sm:$0xff]  ;;  %v2405_v4 = vadd.f32 %v2403_v54, %v2400_v47  ;;  %v4859_v63 = vld [vmem:[%s6134_s26] sm:$0xff]  ;;  %2815 = vmatpush.bf16.xpose.msra.mxu3 %v2807_v1  ;;  %v2804_v24 = vsel %vm2763_vm2, %v4869_v15, 0  ;;  %s7423_s5 = sld [smem:[#allocation65_spill]] }
 0x25f   : >> { %2477 = vmatpush.bf16.msra.mxu0 %v4865_v2  ;;  %v2406_v19 = vadd.f32 %v2404_v33, %v2401_v51  ;;  %v4868_v3 = vld [vmem:[#allocation3 + $0x8] sm:$0xff]  ;;  %v4867_v44 = vld [vmem:[#allocation3] sm:$0xff]  ;;  %s7425_s25 = sld [smem:[#allocation54_spill]] }
 0x260   : >> { %s7399_s10 = scalar_lea.vmem %s7398_s14, %s6175_s17  ;;  %v2771_v6 = vsel %vm2763_vm2, %v4868_v3, 0  ;;  %v2768_v17 = vsel %vm2763_vm2, %v4867_v44, 0  ;;  %s7426_s27 = sld [smem:[#allocation55_spill]] }
 0x261   : >> { %v2407_v25 = vpack.c.bf16 %v2406_v19, %v2405_v4  ;;  %v5132_v55 = vld [vmem:[%s7399_s10] ss:$0 sm:$0xff]  ;;  %2779 = vmatpush.bf16.xpose.msra.mxu1 %v2771_v6 }
 0x263   : >> { %2478 = vmatpush.bf16.msra.mxu0 %v4864_v29 }
 0x264   : >> { %s7424_s7 = scalar_lea.vmem %s7423_s5, %s6175_s17 }
 0x266   : >> { %2816 = vmatpush.bf16.xpose.msra.mxu3 %v2804_v24 }
 0x267   : >> { %2479 = vmatpush.bf16.msra.mxu0 %v4863_v32 }
 0x269   : >> { %2780 = vmatpush.bf16.xpose.msra.mxu1 %v2768_v17 }
 0x26b   : >> { %2480 = vmatpush.bf16.msra.mxu0 %v4862_v53 }
 0x26f   : >> { %2481 = vmatpush.bf16.msra.mxu0 %v4861_v9 }
 0x273   : >> { %2482 = vmatpush.bf16.msra.mxu0 %v4860_v50 }
 0x277   : >> { %2483 = vmatpush.bf16.msra.mxu0 %v4859_v63 }
 0x27a   : >> { %2484 = vmatmul.bf16.vlgmr.msra.gmra.mxu0 %v2407_v25 }
 0x2f7   : >> { %v2485_v59 = vpop.f32.mrf.mxu0 }
 0x2f8   : >> { %v2486_v61 = vadd.f32 %v5132_v55, %v2485_v59  ;;  %v4872_v59 = vld [vmem:[#allocation3 + $0x28] sm:$0xff] }
 0x2fa   : >> { %v2490_v38 = vpack.c.bf16 %v2486_v61, %v2486_v61 }
 0x2fc   : >> { %2502 = vrot.lane.b32.xlu2 %v2490_v38, %s5684_s0  ;;  %2498 = vrot.lane.b32.xlu1 %v2490_v38, %s5685_s15  ;;  %v2509_v12 = vshrl.u32 %v2490_v38, 16 }
 0x2fd   : >> { %2494 = vrot.lane.b32.xlu0 %v2490_v38, %s5686_s22 }
 0x2ff   : >> { %v2487_v43 = vpop.f32.mrf.mxu0 }
 0x300   : >> { %v2488_v46 = vadd.f32 %v5132_v55, %v2487_v43  ;;  %v4874_v55 = vld [vmem:[#allocation3 + $0x38] sm:$0xff] }
 0x302   : >> { %v6716_v0 = vpack.c.bf16 %v2488_v46, %v2488_v46 }
 0x304   : >> { %2504 = vrot.lane.b32.xlu2 %v6716_v0, %s5684_s0  ;;  %2500 = vrot.lane.b32.xlu1 %v6716_v0, %s5685_s15  ;;  %v2521_v47 = vshrl.u32 %v6716_v0, 16 }
 0x305   : >> { %2496 = vrot.lane.b32.xlu0 %v6716_v0, %s5686_s22 }
 0x356   : >> { %v2503_v48 = vpop.permute.xlu2 %2502 }
 0x357   : >> { %v2516_v28 = vshrl.u32 %v2503_v48, 16 }
 0x35e   : >> { %v2505_v18 = vpop.permute.xlu2 %2504 }
 0x35f   : >> { %v2528_v49 = vshrl.u32 %v2505_v18, 16 }
 0x36e   : >> { %v2499_v35 = vpop.permute.xlu1 %2498 }
 0x36f   : >> { %v2514_v7 = vpack.i.b16 %v2503_v48, %v2499_v35  ;;  %v2515_v8 = vshrl.u32 %v2499_v35, 16  ;;  %v2495_v10 = vpop.permute.xlu0 %2494 }
 0x370   : >> { %v2508_v21 = vpack.i.b16 %v2495_v10, %v2490_v38  ;;  %v2510_v11 = vshrl.u32 %v2495_v10, 16 }
 0x371   : >> { %v2517_v39 = vpack.i.b16 %v2516_v28, %v2515_v8  ;;  %v2539_v41 = vperm.slane %v2514_v7, %v6299_v5  ;;  %v2879_v7 = vsel %vm2763_vm2, %v4874_v55, 0  ;;  %v2843_v8 = vsel %vm2763_vm2, %v4872_v59, 0 }
 0x372   : >> { %v2511_v16 = vpack.i.b16 %v2510_v11, %v2509_v12  ;;  %v2534_v56 = vperm.slane %v2508_v21, %v6299_v5  ;;  %2887 = vmatpush.bf16.xpose.msrb.mxu1 %v2879_v7  ;;  %2851 = vmatpush.bf16.xpose.msrb.mxu3 %v2843_v8 }
 0x373   : >> { %v2540_v23 = vrot.slane %v2539_v41, 4  ;;  %v2565_v22 = vperm.slane %v2517_v39, %v6299_v5  ;;  %v4873_v39 = vld [vmem:[#allocation3 + $0x30] sm:$0xff] }
 0x374   : >> { %v2542_v37 = vrot.slane %v2534_v56, 4  ;;  %v2560_v60 = vperm.slane %v2511_v16, %v6299_v5 }
 0x375   : >> { %v2566_v58 = vrot.slane %v2565_v22, 4  ;;  %v2541_v34 = vsel %vm1441_vm0, %v2540_v23, %v2534_v56 }
 0x376   : >> { %v2543_v31 = vsel %vm1441_vm0, %v2539_v41, %v2542_v37  ;;  %v2547_v52 = vperm.slane %v2541_v34, %v6306_v20  ;;  %v2568_v30 = vrot.slane %v2560_v60, 4  ;;  %v2501_v26 = vpop.permute.xlu1 %2500  ;;  %v4871_v41 = vld [vmem:[#allocation3 + $0x20] sm:$0xff]  ;;  %v2876_v34 = vsel %vm2763_vm2, %v4873_v39, 0 }
 0x377   : >> { %v2551_v36 = vperm.slane %v2543_v31, %v6306_v20  ;;  %v2567_v40 = vsel %vm1441_vm0, %v2566_v58, %v2560_v60  ;;  %v2526_v27 = vpack.i.b16 %v2505_v18, %v2501_v26  ;;  %v2527_v14 = vshrl.u32 %v2501_v26, 16  ;;  %v2497_v42 = vpop.permute.xlu0 %2496 }
 0x378   : >> { %v2569_v57 = vsel %vm1441_vm0, %v2565_v22, %v2568_v30  ;;  %v2573_v45 = vperm.slane %v2567_v40, %v6306_v20  ;;  %v2520_v13 = vpack.i.b16 %v2497_v42, %v6716_v0  ;;  %v2552_v9 = vrot.slane %v2547_v52, 4 }
 0x379   : >> { %v2554_v2 = vrot.slane %v2551_v36, 4  ;;  %v2577_v29 = vperm.slane %v2569_v57, %v6306_v20  ;;  %v2529_v32 = vpack.i.b16 %v2528_v49, %v2527_v14  ;;  %v2591_v53 = vperm.slane %v2526_v27, %v6299_v5 }
 0x37a   : >> { %v2578_v50 = vrot.slane %v2573_v45, 4  ;;  %v2522_v51 = vshrl.u32 %v2497_v42, 16  ;;  %v2586_v19 = vperm.slane %v2520_v13, %v6299_v5  ;;  %v2553_v46 = vsel %vm1441_vm0, 0, %v2552_v9  ;;  %2888 = vmatpush.bf16.xpose.msrb.mxu1 %v2876_v34 }
 0x37b   : >> { %v2555_v54 = vsel %vm1441_vm0, 0, %v2554_v2  ;;  %v2580_v33 = vrot.slane %v2577_v29, 4  ;;  %v2592_v4 = vrot.slane %v2591_v53, 4  ;;  %v2617_v25 = vperm.slane %v2529_v32, %v6299_v5 }
 0x37c   : >> { %v2639_v63 = vrot.slane %v2555_v54, 4  ;;  %v2523_v38 = vpack.i.b16 %v2522_v51, %v2521_v47  ;;  %v2579_v48 = vsel %vm1441_vm0, 0, %v2578_v50  ;;  %v2594_v62 = vrot.slane %v2586_v19, 4 }
 0x37d   : >> { %v2581_v61 = vsel %vm1441_vm0, 0, %v2580_v33  ;;  %v2593_v43 = vsel %vm1441_vm0, %v2592_v4, %v2586_v19  ;;  %v2618_v3 = vrot.slane %v2617_v25, 4  ;;  %v2653_v16 = vsel %vm1441_vm0, %v2580_v33, %v2573_v45 }
 0x37e   : >> { %v2658_v0 = vrot.slane %v2581_v61, 4  ;;  %v2640_v6 = vsel %vm1441_vm0, %v2639_v63, %v2553_v46  ;;  %v2612_v1 = vperm.slane %v2523_v38, %v6299_v5  ;;  %v2599_v28 = vperm.slane %v2593_v43, %v6306_v20 }
 0x37f   : >> { %v2595_v21 = vsel %vm1441_vm0, %v2591_v53, %v2594_v62  ;;  %v2644_v15 = vperm.slane %v2640_v6, %v6299_v5  ;;  %v2634_v24 = vsel %vm1441_vm0, %v2554_v2, %v2547_v52  ;;  %v2657_v60 = vperm.slane %v2653_v16, %v6299_v5 }
 0x380   : >> { %v2659_v35 = vsel %vm1441_vm0, %v2658_v0, %v2579_v48  ;;  %v2603_v12 = vperm.slane %v2595_v21, %v6306_v20  ;;  %v2619_v11 = vsel %vm1441_vm0, %v2618_v3, %v2612_v1  ;;  %v2620_v44 = vrot.slane %v2612_v1, 4 }
 0x381   : >> { %v2663_v10 = vperm.slane %v2659_v35, %v6299_v5  ;;  %v2625_v56 = vperm.slane %v2619_v11, %v6306_v20  ;;  %v2604_v18 = vrot.slane %v2599_v28, 4  ;;  %v2840_v49 = vsel %vm2763_vm2, %v4871_v41, 0 }
 0x382   : >> { %v2606_v23 = vrot.slane %v2603_v12, 4  ;;  %v2621_v22 = vsel %vm1441_vm0, %v2617_v25, %v2620_v44  ;;  %v2645_v31 = vrot.slane %v2644_v15, 4  ;;  %v2638_v52 = vperm.slane %v2634_v24, %v6299_v5  ;;  %2852 = vmatpush.bf16.xpose.msrb.mxu3 %v2840_v49 }
 0x383   : >> { %v2664_v17 = vrot.slane %v2663_v10, 4  ;;  %v2629_v37 = vperm.slane %v2621_v22, %v6306_v20  ;;  %v2630_v30 = vrot.slane %v2625_v56, 4  ;;  %v2605_v27 = vsel %vm1441_vm0, 0, %v2604_v18 }
 0x384   : >> { %v2607_v58 = vsel %vm1441_vm0, 0, %v2606_v23  ;;  %v2672_v42 = vsel %vm1441_vm0, %v2606_v23, %v2599_v28  ;;  %v2646_v2 = vsel %vm1441_vm0, %v2645_v31, %v2638_v52 }
 0x385   : >> { %v2632_v26 = vrot.slane %v2629_v37, 4  ;;  %v2677_v36 = vrot.slane %v2607_v58, 4  ;;  %v2665_v40 = vsel %vm1441_vm0, %v2664_v17, %v2657_v60  ;;  %v2631_v29 = vsel %vm1441_vm0, 0, %v2630_v30 }
 0x386   : >> { %v2669_v32 = vperm.slane %v2665_v40, %v6306_v20  ;;  %v2676_v53 = vperm.slane %v2672_v42, %v6299_v5  ;;  %v2650_v54 = vperm.slane %v2646_v2, %v6306_v20 }
 0x387   : >> { %v2633_v14 = vsel %vm1441_vm0, 0, %v2632_v26  ;;  %v2678_v57 = vsel %vm1441_vm0, %v2677_v36, %v2605_v27  ;;  %v2691_v50 = vsel %vm1441_vm0, %v2632_v26, %v2625_v56 }
 0x388   : >> { %v2682_v45 = vperm.slane %v2678_v57, %v6299_v5  ;;  %v2696_v13 = vrot.slane %v2633_v14, 4  ;;  %v2695_v4 = vperm.slane %v2691_v50, %v6299_v5  ;;  %v2714_v25 = vshrl.u32 %v2669_v32, 16  ;;  %v4876_v50 = vld [vmem:[#allocation4 + $0x8] sm:$0xff] }
 0x389   : >> { %v2712_v61 = vpack.i.b16 %v2669_v32, %v2650_v54  ;;  %v2713_v38 = vshrl.u32 %v2650_v54, 16  ;;  %v2670_v35 = vrot.slane %v2669_v32, 4  ;;  %v2651_v21 = vrot.slane %v2650_v54, 4  ;;  %3041 = vmatpush.bf16.msra.mxu2 %v4876_v50 }
 0x38a   : >> { %v2683_v9 = vrot.slane %v2682_v45, 4  ;;  %v2697_v47 = vsel %vm1441_vm0, %v2696_v13, %v2631_v29 }
 0x38b   : >> { %v2701_v51 = vperm.slane %v2697_v47, %v6299_v5  ;;  %v2715_v46 = vpack.i.b16 %v2714_v25, %v2713_v38  ;;  %v2750_v6 = vunpack.c.l.b16 %v2712_v61  ;;  %v2671_v44 = vsel %vm1441_vm0, 0, %v2670_v35  ;;  %v4875_v47 = vld [vmem:[#allocation4] sm:$0xff] }
 0x38c   : >> { %v2684_v33 = vsel %vm1441_vm0, %v2683_v9, %v2676_v53  ;;  %v2652_v15 = vsel %vm1441_vm0, 0, %v2651_v21  ;;  %v2720_v16 = vshrl.u32 %v2671_v44, 16  ;;  %v4879_v21 = vld [vmem:[#allocation4 + $0x20] sm:$0xff] }
 0x38d   : >> { %v2702_v19 = vrot.slane %v2701_v51, 4  ;;  %v2688_v63 = vperm.slane %v2684_v33, %v6306_v20  ;;  %v2787_v8 = vunpack.c.l.b16 %v2715_v46  ;;  %v2719_v17 = vshrl.u32 %v2652_v15, 16  ;;  %3042 = vmatpush.bf16.msra.mxu2 %v4875_v47  ;;  %v4878_v51 = vld [vmem:[#allocation4 + $0x18] sm:$0xff] }
 0x38e   : >> { %v2718_v37 = vpack.i.b16 %v2671_v44, %v2652_v15 }
 0x38f   : >> { %v2703_v55 = vsel %vm1441_vm0, %v2702_v19, %v2695_v4  ;;  %v2725_v0 = vshrl.u32 %v2688_v63, 16  ;;  %v2689_v28 = vrot.slane %v2688_v63, 4  ;;  %v2721_v23 = vpack.i.b16 %v2720_v16, %v2719_v17  ;;  %v4877_v4 = vld [vmem:[#allocation4 + $0x10] sm:$0xff] }
 0x390   : >> { %v2707_v59 = vperm.slane %v2703_v55, %v6306_v20  ;;  %v2823_v49 = vunpack.c.l.b16 %v2718_v37 }
 0x391   : >> { %v2690_v39 = vsel %vm1441_vm0, 0, %v2689_v28  ;;  %v2859_v60 = vunpack.c.l.b16 %v2721_v23 }
 0x392   : >> { %v2724_v43 = vpack.i.b16 %v2707_v59, %v2688_v63  ;;  %v2726_v3 = vshrl.u32 %v2707_v59, 16  ;;  %v2708_v48 = vrot.slane %v2707_v59, 4  ;;  %v2731_v56 = vshrl.u32 %v2690_v39, 16 }
 0x394   : >> { %v2751_v62 = vunpack.c.l.b16 %v2724_v43  ;;  %v2727_v1 = vpack.i.b16 %v2726_v3, %v2725_v0  ;;  %v2709_v12 = vsel %vm1441_vm0, 0, %v2708_v48  ;;  %v4880_v48 = vld [vmem:[#allocation4 + $0x28] sm:$0xff] }
 0x395   : >> { %v2732_v41 = vshrl.u32 %v2709_v12, 16  ;;  %v2730_v22 = vpack.i.b16 %v2709_v12, %v2690_v39  ;;  %3109 = vmatpush.bf16.msrb.mxu0 %v4880_v48  ;;  %v4881_v12 = vld [vmem:[#allocation4 + $0x30] sm:$0xff] }
 0x396   : >> { %v2752_v7 = vpack.c.b16 %v2751_v62, %v2750_v6  ;;  %v2788_v10 = vunpack.c.l.b16 %v2727_v1  ;;  %v4882_v6 = vld [vmem:[#allocation4 + $0x38] sm:$0xff] }
 0x397   : >> { %v2733_v18 = vpack.i.b16 %v2732_v41, %v2731_v56  ;;  %v2824_v58 = vunpack.c.l.b16 %v2730_v22 }
 0x398   : >> { %4605 = vmatmul.msk.bf16.vlgmr.msra.gmra.mxu1 %vm2763_vm2, %v2752_v7  ;;  %v2789_v11 = vpack.c.b16 %v2788_v10, %v2787_v8 }
 0x399   : >> { %v2860_v24 = vunpack.c.l.b16 %v2733_v18  ;;  %v2825_v31 = vpack.c.b16 %v2824_v58, %v2823_v49  ;;  %3143 = vmatpush.bf16.msra.mxu1 %v4882_v6  ;;  %3110 = vmatpush.bf16.msrb.mxu0 %v4879_v21 }
 0x39a   : >> { %4614 = vmatmul.msk.bf16.vlgmr.msra.gmra.mxu3 %vm2763_vm2, %v2789_v11 }
 0x39b   : >> { %v2861_v34 = vpack.c.b16 %v2860_v24, %v2859_v60  ;;  %3075 = vmatpush.bf16.msra.mxu3 %v4878_v51 }
 0x39d   : >> { %3144 = vmatpush.bf16.msra.mxu1 %v4881_v12 }
 0x39f   : >> { %3076 = vmatpush.bf16.msra.mxu3 %v4877_v4 }
 0x3a8   : >> { %4632 = vmatmul.msk.bf16.vlgmr.msrb.gmra.mxu1 %vm2763_vm2, %v2861_v34 }
 0x3aa   : >> { %4623 = vmatmul.msk.bf16.vlgmr.msrb.gmra.mxu3 %vm2763_vm2, %v2825_v31 }
 0x415   : >> { %v2782_v30 = vpop.f32.mrf.mxu1 }
 0x416   : >> { %v2895_v26 = vsel %vm2763_vm2, %v2782_v30, -inf }
 0x417   : >> { %2896 = vmax.xlane.f32.xlu0 %v2895_v26 }
 0x41d   : >> { %v2784_v36 = vpop.f32.mrf.mxu1  ;;  %v2818_v40 = vpop.f32.mrf.mxu3 }
 0x41e   : >> { %v2901_v27 = vsel %vm2763_vm2, %v2818_v40, -inf  ;;  %v2898_v52 = vsel %vm2763_vm2, %v2784_v36, -inf }
 0x41f   : >> { %2902 = vmax.xlane.f32.xlu2 %v2901_v27  ;;  %2899 = vmax.xlane.f32.xlu1 %v2898_v52 }
 0x425   : >> { %v2820_v14 = vpop.f32.mrf.mxu3  ;;  %v2890_v57 = vpop.f32.mrf.mxu1 }
 0x426   : >> { %v2904_v42 = vsel %vm2763_vm2, %v2820_v14, -inf  ;;  %v2913_v13 = vsel %vm2763_vm2, %v2890_v57, -inf }
 0x427   : >> { %2905 = vmax.xlane.f32.xlu2 %v2904_v42 }
 0x42d   : >> { %v2854_v45 = vpop.f32.mrf.mxu3  ;;  %v6804_v29 = vpop.f32.mrf.mxu1 }
 0x42e   : >> { %v2907_v2 = vsel %vm2763_vm2, %v2854_v45, -inf  ;;  %v2916_v53 = vsel %vm2763_vm2, %v6804_v29, -inf }
 0x42f   : >> { %2914 = vmax.xlane.f32.xlu2 %v2913_v13  ;;  %2908 = vmax.xlane.f32.xlu0 %v2907_v2 }
 0x435   : >> { %v6806_v32 = vpop.f32.mrf.mxu3 }
 0x436   : >> { %v2910_v9 = vsel %vm2763_vm2, %v6806_v32, -inf }
 0x437   : >> { %2917 = vmax.xlane.f32.xlu0 %v2916_v53  ;;  %2911 = vmax.xlane.f32.xlu1 %v2910_v9 }
 0x48a   : >> { %v2897_v54 = vpop.xlane.xlu0 %2896 }
 0x48b   : >> { %v2919_v33 = vsub.f32 %v2782_v30, %v2897_v54 }
 0x48d   : >> { %v2927_v19 = vpack.c.bf16 %v2919_v33, %v2919_v33 }
 0x48f   : >> { %v2935_v63 = vunpack.c.l.bf16 %v2927_v19 }
 0x491   : >> { %v2943_v25 = vmul.f32 1.442695, %v2935_v63 }
 0x492   : >> { %v2903_v55 = vpop.xlane.xlu2 %2902  ;;  %v2900_v59 = vpop.xlane.xlu1 %2899 }
 0x493   : >> { %5139 = vpow2.f32 %v2943_v25  ;;  %v2921_v61 = vsub.f32 %v2818_v40, %v2903_v55  ;;  %v2920_v38 = vsub.f32 %v2784_v36, %v2900_v59 }
 0x495   : >> { %v2929_v43 = vpack.c.bf16 %v2921_v61, %v2921_v61  ;;  %v2928_v46 = vpack.c.bf16 %v2920_v38, %v2920_v38 }
 0x497   : >> { %v2937_v0 = vunpack.c.l.bf16 %v2929_v43  ;;  %v2936_v3 = vunpack.c.l.bf16 %v2928_v46 }
 0x499   : >> { %v5140_v62 = vpop.eup %5139  ;;  %v2945_v1 = vmul.f32 1.442695, %v2936_v3  ;;  %v2947_v7 = vmul.f32 1.442695, %v2937_v0 }
 0x49a   : >> { %v2959_v35 = vpack.c.bf16 %v5140_v62, %v5140_v62  ;;  %v2906_v28 = vpop.xlane.xlu2 %2905 }
 0x49b   : >> { %v2922_v8 = vsub.f32 %v2820_v14, %v2906_v28  ;;  %5141 = vpow2.f32 %v2945_v1 }
 0x49c   : >> { %v2967_v10 = vunpack.c.l.bf16 %v2959_v35  ;;  %5143 = vpow2.f32 %v2947_v7  ;;  %v3017_v22 = vunpack.c.l.b16 %v2959_v35 }
 0x49d   : >> { %v2930_v11 = vpack.c.bf16 %v2922_v8, %v2922_v8 }
 0x49e   : >> { %v2975_v44 = vsel %vm2763_vm2, %v2967_v10, 0.0 }
 0x49f   : >> { %v2938_v39 = vunpack.c.l.bf16 %v2930_v11  ;;  %2976 = vadd.xlane.f32.xlu0 %v2975_v44 }
 0x4a1   : >> { %v2949_v41 = vmul.f32 1.442695, %v2938_v39  ;;  %v5142_v15 = vpop.eup %5141 }
 0x4a2   : >> { %v2915_v16 = vpop.xlane.xlu2 %2914  ;;  %v2909_v56 = vpop.xlane.xlu0 %2908  ;;  %v2960_v17 = vpack.c.bf16 %v5142_v15, %v5142_v15 }
 0x4a3   : >> { %5145 = vpow2.f32 %v2949_v41  ;;  %v2925_v18 = vsub.f32 %v2890_v57, %v2915_v16  ;;  %v2923_v23 = vsub.f32 %v2854_v45, %v2909_v56  ;;  %v5144_v24 = vpop.eup %5143 }
 0x4a4   : >> { %v2968_v58 = vunpack.c.l.bf16 %v2960_v17  ;;  %v3018_v34 = vunpack.c.l.b16 %v2960_v17  ;;  %v2961_v36 = vpack.c.bf16 %v5144_v24, %v5144_v24 }
 0x4a5   : >> { %v2933_v37 = vpack.c.bf16 %v2925_v18, %v2925_v18  ;;  %v2931_v60 = vpack.c.bf16 %v2923_v23, %v2923_v23 }
 0x4a6   : >> { %v2978_v30 = vsel %vm2763_vm2, %v2968_v58, 0.0  ;;  %v3019_v26 = vpack.c.b16 %v3018_v34, %v3017_v22  ;;  %v3051_v2 = vunpack.c.l.b16 %v2961_v36  ;;  %v2969_v3 = vunpack.c.l.bf16 %v2961_v36 }
 0x4a7   : >> { %v2941_v49 = vunpack.c.l.bf16 %v2933_v37  ;;  %v2939_v31 = vunpack.c.l.bf16 %v2931_v60  ;;  %2979 = vadd.xlane.f32.xlu1 %v2978_v30 }
 0x4a8   : >> { %4641 = vmatmul.msk.bf16.vlgmr.msra.gmra.mxu2 %vm2763_vm2, %v3019_v26  ;;  %v2981_v10 = vsel %vm2763_vm2, %v2969_v3, 0.0 }
 0x4a9   : >> { %v5146_v40 = vpop.eup %5145  ;;  %v2955_v27 = vmul.f32 1.442695, %v2941_v49  ;;  %v2951_v52 = vmul.f32 1.442695, %v2939_v31 }
 0x4aa   : >> { %v2962_v14 = vpack.c.bf16 %v5146_v40, %v5146_v40  ;;  %v2918_v42 = vpop.xlane.xlu0 %2917  ;;  %v2912_v57 = vpop.xlane.xlu1 %2911 }
 0x4ab   : >> { %5147 = vpow2.f32 %v2955_v27  ;;  %v2926_v45 = vsub.f32 %v6804_v29, %v2918_v42  ;;  %v2924_v13 = vsub.f32 %v6806_v32, %v2912_v57 }
 0x4ac   : >> { %v3052_v53 = vunpack.c.l.b16 %v2962_v14  ;;  %5149 = vpow2.f32 %v2951_v52  ;;  %v2970_v11 = vunpack.c.l.bf16 %v2962_v14 }
 0x4ad   : >> { %v2934_v9 = vpack.c.bf16 %v2926_v45, %v2926_v45  ;;  %v2932_v50 = vpack.c.bf16 %v2924_v13, %v2924_v13 }
 0x4ae   : >> { %v3053_v47 = vpack.c.b16 %v3052_v53, %v3051_v2  ;;  %v2984_v44 = vsel %vm2763_vm2, %v2970_v11, 0.0 }
 0x4af   : >> { %v2942_v51 = vunpack.c.l.bf16 %v2934_v9  ;;  %v2940_v54 = vunpack.c.l.bf16 %v2932_v50 }
 0x4b0   : >> { %4650 = vmatmul.msk.bf16.vlgmr.msra.gmra.mxu3 %vm2763_vm2, %v3053_v47 }
 0x4b1   : >> { %v5148_v33 = vpop.eup %5147  ;;  %v2957_v4 = vmul.f32 1.442695, %v2942_v51  ;;  %v2953_v19 = vmul.f32 1.442695, %v2940_v54 }
 0x4b2   : >> { %v5150_v63 = vpop.eup %5149  ;;  %v2965_v25 = vpack.c.bf16 %v5148_v33, %v5148_v33 }
 0x4b3   : >> { %v2963_v55 = vpack.c.bf16 %v5150_v63, %v5150_v63  ;;  %5151 = vpow2.f32 %v2957_v4 }
 0x4b4   : >> { %5153 = vpow2.f32 %v2953_v19  ;;  %v2973_v29 = vunpack.c.l.bf16 %v2965_v25  ;;  %v3119_v48 = vunpack.c.l.b16 %v2965_v25 }
 0x4b5   : >> { %v2971_v32 = vunpack.c.l.bf16 %v2963_v55  ;;  %v3085_v1 = vunpack.c.l.b16 %v2963_v55 }
 0x4b6   : >> { %v2993_v59 = vsel %vm2763_vm2, %v2973_v29, 0.0 }
 0x4b7   : >> { %2994 = vadd.xlane.f32.xlu2 %v2993_v59  ;;  %v2987_v61 = vsel %vm2763_vm2, %v2971_v32, 0.0 }
 0x4b8   : >> { %2988 = vadd.xlane.f32.xlu1 %v2987_v61 }
 0x4b9   : >> { %v5152_v38 = vpop.eup %5151 }
 0x4ba   : >> { %v5154_v43 = vpop.eup %5153  ;;  %v2966_v46 = vpack.c.bf16 %v5152_v38, %v5152_v38 }
 0x4bb   : >> { %v2964_v0 = vpack.c.bf16 %v5154_v43, %v5154_v43 }
 0x4bc   : >> { %v3120_v6 = vunpack.c.l.b16 %v2966_v46  ;;  %v2974_v62 = vunpack.c.l.bf16 %v2966_v46 }
 0x4bd   : >> { %v3086_v35 = vunpack.c.l.b16 %v2964_v0  ;;  %v2972_v28 = vunpack.c.l.bf16 %v2964_v0 }
 0x4be   : >> { %v3121_v7 = vpack.c.b16 %v3120_v6, %v3119_v48  ;;  %v2996_v8 = vsel %vm2763_vm2, %v2974_v62, 0.0 }
 0x4bf   : >> { %2997 = vadd.xlane.f32.xlu0 %v2996_v8  ;;  %v2990_v21 = vsel %vm2763_vm2, %v2972_v28, 0.0  ;;  %v3087_v12 = vpack.c.b16 %v3086_v35, %v3085_v1 }
 0x4c0   : >> { %2982 = vadd.xlane.f32.xlu1 %v2981_v10  ;;  %2991 = vadd.xlane.f32.xlu2 %v2990_v21 }
 0x4c1   : >> { %4659 = vmatmul.msk.bf16.vlgmr.msrb.gmra.mxu0 %vm2763_vm2, %v3087_v12  ;;  %4668 = vmatmul.msk.bf16.vlgmr.msra.gmra.mxu1 %vm2763_vm2, %v3121_v7 }
 0x4c8   : >> { %2985 = vadd.xlane.f32.xlu2 %v2984_v44 }
 0x512   : >> { %v2977_v39 = vpop.xlane.xlu0 %2976 }
 0x513   : >> { %5155 = vrcp.f32 %v2977_v39  ;;  %v3162_v49 = vand.u32 2147483648, %v2977_v39  ;;  %vm3156_vm4 = vweird.f32 %v2977_v39  ;;  %v3160_v31 = vand.u32 2147483647, %v2977_v39 }
 0x515   : >> { %v3163_v40 = vor.u32 1.1754944e-38, %v3162_v49  ;;  %vm3161_vm8 = vcmp.eq.f32.partialorder %v3160_v31, 8.507059e+37 }
 0x519   : >> { %v5156_v15 = vpop.eup %5155 }
 0x51a   : >> { %v2980_v41 = vpop.xlane.xlu1 %2979  ;;  %v3152_v16 = vmul.f32 %v5156_v15, %v2977_v39  ;;  %vm3157_vm3 = vweird.f32 %v5156_v15 }
 0x51b   : >> { %5157 = vrcp.f32 %v2980_v41  ;;  %v3176_v30 = vand.u32 2147483648, %v2980_v41  ;;  %vm3158_vm5 = vmor %vm3156_vm4, %vm3157_vm3  ;;  %vm3170_vm7 = vweird.f32 %v2980_v41  ;;  %v3174_v14 = vand.u32 2147483647, %v2980_v41 }
 0x51c   : >> { %v3153_v17 = vsub.f32 1.0, %v3152_v16 }
 0x51d   : >> { %v3177_v42 = vor.u32 1.1754944e-38, %v3176_v30  ;;  %vm3175_vm10 = vcmp.eq.f32.partialorder %v3174_v14, 8.507059e+37 }
 0x51e   : >> { %v3154_v22 = vmul.f32 %v5156_v15, %v3153_v17 }
 0x520   : >> { %v3155_v58 = vadd.f32 %v5156_v15, %v3154_v22 }
 0x521   : >> { %v5158_v56 = vpop.eup %5157 }
 0x522   : >> { %v3166_v18 = vmul.f32 %v5158_v56, %v2980_v41  ;;  %vm3171_vm6 = vweird.f32 %v5158_v56  ;;  %v3159_v36 = vsel %vm3158_vm5, %v5156_v15, %v3155_v58 }
 0x523   : >> { %vm6831_vm9 = vmor %vm3170_vm7, %vm3171_vm6  ;;  %v3164_v13 = vsel %vm3161_vm8, %v3163_v40, %v3159_v36 }
 0x524   : >> { %v3167_v23 = vsub.f32 1.0, %v3166_v18 }
 0x526   : >> { %v3168_v37 = vmul.f32 %v5158_v56, %v3167_v23 }
 0x528   : >> { %v3169_v26 = vadd.f32 %v5158_v56, %v3168_v37 }
 0x52a   : >> { %v6826_v24 = vpop.xlane.xlu2 %2994  ;;  %v3173_v53 = vsel %vm6831_vm9, %v5158_v56, %v3169_v26 }
 0x52b   : >> { %5159 = vrcp.f32 %v6826_v24  ;;  %v2989_v60 = vpop.xlane.xlu1 %2988  ;;  %v3044_v34 = vpop.f32.mrf.mxu2  ;;  %v3244_v33 = vand.u32 2147483647, %v6826_v24  ;;  %v3246_v25 = vand.u32 2147483648, %v6826_v24  ;;  %vm3240_vm11 = vweird.f32 %v6826_v24 }
 0x52c   : >> { %5161 = vrcp.f32 %v2989_v60  ;;  %v3216_v9 = vand.u32 2147483647, %v2989_v60  ;;  %v6844_v47 = vmul.f32 %v3164_v13, %v3044_v34  ;;  %v3218_v63 = vand.u32 2147483648, %v2989_v60 }
 0x52d   : >> { %v3178_v29 = vsel %vm3175_vm10, %v3177_v42, %v3173_v53  ;;  %vm3212_vm12 = vweird.f32 %v2989_v60  ;;  %vm6868_vm15 = vcmp.eq.f32.partialorder %v3244_v33, 8.507059e+37  ;;  %v3247_v6 = vor.u32 1.1754944e-38, %v3246_v25 }
 0x52e   : >> { %vm6856_vm13 = vcmp.eq.f32.partialorder %v3216_v9, 8.507059e+37  ;;  %v3274_v61 = vrot.slane %v6844_v47, 4  ;;  %v3219_v3 = vor.u32 1.1754944e-38, %v3218_v63 }
 0x531   : >> { %v6829_v27 = vpop.eup %5159 }
 0x532   : >> { %v6835_v57 = vpop.eup %5161  ;;  %v3236_v45 = vmul.f32 %v6829_v27, %v6826_v24  ;;  %v6839_v2 = vpop.xlane.xlu0 %2997  ;;  %vm3241_vm1 = vweird.f32 %v6829_v27 }
 0x533   : >> { %v3208_v50 = vmul.f32 %v6835_v57, %v2989_v60  ;;  %5163 = vrcp.f32 %v6839_v2  ;;  %v6847_v51 = vpop.xlane.xlu2 %2991  ;;  %v6849_v54 = vpop.xlane.xlu1 %2982  ;;  %vm3213_vm14 = vweird.f32 %v6835_v57  ;;  %vm3254_vm6 = vweird.f32 %v6839_v2  ;;  %vm6909_vm8 = vmor %vm3240_vm11, %vm3241_vm1 }
 0x534   : >> { %v3237_v4 = vsub.f32 1.0, %v3236_v45  ;;  %5165 = vrcp.f32 %v6847_v51  ;;  %v3046_v19 = vpop.f32.mrf.mxu2  ;;  %v3188_v46 = vand.u32 2147483647, %v6849_v54  ;;  %v3190_v0 = vand.u32 2147483648, %v6849_v54  ;;  %vm6884_vm4 = vmor %vm3212_vm12, %vm3213_vm14  ;;  %v3078_v9 = vpop.f32.mrf.mxu3 }
 0x535   : >> { %v3209_v55 = vsub.f32 1.0, %v3208_v50  ;;  %5167 = vrcp.f32 %v6849_v54  ;;  %v6862_v38 = vmul.f32 %v3178_v29, %v3046_v19  ;;  %v3230_v28 = vand.u32 2147483647, %v6847_v51 }
 0x536   : >> { %v3238_v59 = vmul.f32 %v6829_v27, %v3237_v4  ;;  %vm3184_vm3 = vweird.f32 %v6849_v54  ;;  %vm3226_vm5 = vweird.f32 %v6847_v51  ;;  %v3232_v41 = vand.u32 2147483648, %v6847_v51 }
 0x537   : >> { %v3210_v43 = vmul.f32 %v6835_v57, %v3209_v55  ;;  %v3330_v11 = vrot.slane %v6862_v38, 4  ;;  %vm6900_vm7 = vcmp.eq.f32.partialorder %v3188_v46, 8.507059e+37  ;;  %v3191_v17 = vor.u32 1.1754944e-38, %v3190_v0 }
 0x538   : >> { %v3239_v35 = vadd.f32 %v6829_v27, %v3238_v59  ;;  %vm6916_vm9 = vcmp.eq.f32.partialorder %v3230_v28, 8.507059e+37  ;;  %v3258_v60 = vand.u32 2147483647, %v6839_v2  ;;  %v3233_v26 = vor.u32 1.1754944e-38, %v3232_v41 }
 0x539   : >> { %v6872_v62 = vpop.eup %5163  ;;  %v3211_v1 = vadd.f32 %v6835_v57, %v3210_v43  ;;  %v3260_v36 = vand.u32 2147483648, %v6839_v2 }
 0x53a   : >> { %v6878_v7 = vpop.eup %5165  ;;  %v3250_v8 = vmul.f32 %v6872_v62, %v6839_v2  ;;  %v3243_v22 = vsel %vm6909_vm8, %v6829_v27, %v3239_v35  ;;  %vm3255_vm10 = vweird.f32 %v6872_v62  ;;  %vm6938_vm14 = vcmp.eq.f32.partialorder %v3258_v60, 8.507059e+37 }
 0x53b   : >> { %v5168_v21 = vpop.eup %5167  ;;  %v3222_v12 = vmul.f32 %v6878_v7, %v6847_v51  ;;  %v6893_v44 = vpop.xlane.xlu2 %2985  ;;  %v3215_v39 = vsel %vm6884_vm4, %v6835_v57, %v3211_v1  ;;  %vm3227_vm11 = vweird.f32 %v6878_v7  ;;  %v3248_v57 = vsel %vm6868_vm15, %v3247_v6, %v3243_v22 }
 0x53c   : >> { %v3251_v15 = vsub.f32 1.0, %v3250_v8  ;;  %v3180_v16 = vmul.f32 %v5168_v21, %v6849_v54  ;;  %5169 = vrcp.f32 %v6893_v44  ;;  %v3220_v24 = vsel %vm6856_vm13, %v3219_v3, %v3215_v39  ;;  %vm6934_vm13 = vmor %vm3254_vm6, %vm3255_vm10 }
 0x53d   : >> { %v3223_v23 = vsub.f32 1.0, %v3222_v12  ;;  %vm3185_vm12 = vweird.f32 %v5168_v21  ;;  %v3202_v14 = vand.u32 2147483647, %v6893_v44  ;;  %vm3198_vm1 = vweird.f32 %v6893_v44  ;;  %vm6948_vm15 = vmor %vm3226_vm5, %vm3227_vm11 }
 0x53e   : >> { %v3181_v58 = vsub.f32 1.0, %v3180_v16  ;;  %v3112_v34 = vpop.f32.mrf.mxu0  ;;  %v3146_v49 = vpop.f32.mrf.mxu1  ;;  %v3252_v31 = vmul.f32 %v6872_v62, %v3251_v15  ;;  %vm3186_vm4 = vmor %vm3184_vm3, %vm3185_vm12  ;;  %v3204_v63 = vand.u32 2147483648, %v6893_v44  ;;  %vm3521_vm8 = vcmask 785408  }
 0x53f   : >> { %v3267_v30 = vmul.f32 %v3220_v24, %v3112_v34  ;;  %v3224_v27 = vmul.f32 %v6878_v7, %v3223_v23  ;;  %v3269_v33 = vmul.f32 %v3248_v57, %v3146_v49  ;;  %vm6971_vm3 = vcmp.eq.f32.partialorder %v3202_v14, 8.507059e+37 }
 0x540   : >> { %v3182_v40 = vmul.f32 %v5168_v21, %v3181_v58  ;;  %v3253_v52 = vadd.f32 %v6872_v62, %v3252_v31  ;;  %v3205_v16 = vor.u32 1.1754944e-38, %v3204_v63  ;;  %v3080_v58 = vpop.f32.mrf.mxu3 }
 0x541   : >> { %v3271_v42 = vrot.slane %v3267_v30, 4  ;;  %v3225_v4 = vadd.f32 %v6878_v7, %v3224_v27  ;;  %v3275_v55 = vsel %vm1441_vm0, %v3267_v30, %v3274_v61  ;;  %v3284_v3 = vrot.slane %v3269_v33, 4 }
 0x542   : >> { %v5170_v53 = vpop.eup %5169  ;;  %v3183_v50 = vadd.f32 %v5168_v21, %v3182_v40  ;;  %v3257_v54 = vsel %vm6934_vm13, %v6872_v62, %v3253_v52  ;;  %v3283_v0 = vperm.slane %v3275_v55, %v6299_v5 }
 0x543   : >> { %v3194_v19 = vmul.f32 %v5170_v53, %v6893_v44  ;;  %v3273_v25 = vsel %vm1441_vm0, %v3271_v42, %v6844_v47  ;;  %v3229_v32 = vsel %vm6948_vm15, %v6878_v7, %v3225_v4  ;;  %v3261_v47 = vor.u32 1.1754944e-38, %v3260_v36 }
 0x544   : >> { %v3187_v51 = vsel %vm3186_vm4, %v5168_v21, %v3183_v50  ;;  %v3279_v29 = vperm.slane %v3273_v25, %v6299_v5  ;;  %v3234_v6 = vsel %vm6916_vm9, %v3233_v26, %v3229_v32  ;;  %vm3199_vm5 = vweird.f32 %v5170_v53 }
 0x545   : >> { %v3192_v59 = vsel %vm6900_vm7, %v3191_v17, %v3187_v51  ;;  %v3195_v43 = vsub.f32 1.0, %v3194_v19  ;;  %v3262_v28 = vsel %vm6938_vm14, %v3261_v47, %v3257_v54  ;;  %vm3200_vm6 = vmor %vm3198_vm1, %vm3199_vm5  ;;  %v3310_v56 = vrot.slane %v3283_v0, 4 }
 0x546   : >> { %v3265_v61 = vmul.f32 %v3192_v59, %v3078_v9  ;;  %v3114_v48 = vpop.f32.mrf.mxu0  ;;  %v3148_v1 = vpop.f32.mrf.mxu1  ;;  %v3298_v8 = vrot.slane %v3279_v29, 4  ;;  %vm3518_vm7 = vcmask 523264  }
 0x547   : >> { %v3196_v35 = vmul.f32 %v5170_v53, %v3195_v43  ;;  %v3268_v62 = vmul.f32 %v3234_v6, %v3114_v48  ;;  %v3270_v21 = vmul.f32 %v3262_v28, %v3148_v1 }
 0x548   : >> { %v3286_v7 = vrot.slane %v3265_v61, 4  ;;  %v3285_v10 = vsel %vm1441_vm0, %v3284_v3, %v3265_v61 }
 0x549   : >> { %v3197_v12 = vadd.f32 %v5170_v53, %v3196_v35  ;;  %v3291_v39 = vperm.slane %v3285_v10, %v6299_v5  ;;  %v3328_v41 = vrot.slane %v3268_v62, 4  ;;  %v3331_v15 = vsel %vm1441_vm0, %v3268_v62, %v3330_v11 }
 0x54a   : >> { %v3287_v17 = vsel %vm1441_vm0, %v3269_v33, %v3286_v7  ;;  %v3339_v18 = vperm.slane %v3331_v15, %v6299_v5  ;;  %v3340_v24 = vrot.slane %v3270_v21, 4 }
 0x54b   : >> { %v3201_v23 = vsel %vm3200_vm6, %v5170_v53, %v3197_v12  ;;  %v3295_v22 = vperm.slane %v3287_v17, %v6299_v5  ;;  %v3296_v37 = vrot.slane %v3291_v39, 4  ;;  %v3299_v60 = vsel %vm1441_vm0, %v3291_v39, %v3298_v8 }
 0x54c   : >> { %v3206_v34 = vsel %vm6971_vm3, %v3205_v16, %v3201_v23  ;;  %v3307_v11 = vperm.slane %v3299_v60, %v6306_v20  ;;  %v3329_v44 = vsel %vm1441_vm0, %v3328_v41, %v6862_v38  ;;  %v3366_v57 = vrot.slane %v3339_v18, 4 }
 0x54d   : >> { %v3266_v49 = vmul.f32 %v3206_v34, %v3080_v58  ;;  %v3297_v31 = vsel %vm1441_vm0, %v3296_v37, %v3279_v29  ;;  %v3308_v30 = vrot.slane %v3295_v22, 4  ;;  %v3311_v26 = vsel %vm1441_vm0, %v3295_v22, %v3310_v56 }
 0x54e   : >> { %v3303_v36 = vperm.slane %v3297_v31, %v6306_v20  ;;  %v3319_v40 = vperm.slane %v3311_v26, %v6306_v20  ;;  %v3322_v27 = vrot.slane %v3307_v11, 4  ;;  %v3335_v52 = vperm.slane %v3329_v44, %v6299_v5 }
 0x54f   : >> { %v3342_v14 = vrot.slane %v3266_v49, 4  ;;  %v3309_v42 = vsel %vm1441_vm0, %v3308_v30, %v3283_v0  ;;  %v3341_v38 = vsel %vm1441_vm0, %v3340_v24, %v3266_v49 }
 0x550   : >> { %v3315_v45 = vperm.slane %v3309_v42, %v6306_v20  ;;  %v3320_v13 = vrot.slane %v3303_v36, 4  ;;  %v3323_v53 = vsel %vm1441_vm0, 0.0, %v3322_v27  ;;  %v3326_v9 = vrot.slane %v3319_v40, 4 }
 0x551   : >> { %v3384_v50 = vsel %vm1441_vm0, %v3322_v27, %v3303_v36  ;;  %v3389_v33 = vrot.slane %v3323_v53, 4  ;;  %v3354_v4 = vrot.slane %v3335_v52, 4  ;;  %v3343_v2 = vsel %vm1441_vm0, %v3270_v21, %v3342_v14 }
 0x552   : >> { %v3321_v19 = vsel %vm1441_vm0, 0.0, %v3320_v13  ;;  %v3324_v63 = vrot.slane %v3315_v45, 4  ;;  %v3327_v25 = vsel %vm1441_vm0, 0.0, %v3326_v9  ;;  %v3388_v55 = vperm.slane %v3384_v50, %v6299_v5 }
 0x553   : >> { %v3395_v51 = vsel %vm1441_vm0, %v3326_v9, %v3315_v45  ;;  %v3400_v29 = vrot.slane %v3327_v25, 4  ;;  %v3347_v32 = vperm.slane %v3341_v38, %v6299_v5  ;;  %v3351_v54 = vperm.slane %v3343_v2, %v6299_v5 }
 0x554   : >> { %v3325_v59 = vsel %vm1441_vm0, 0.0, %v3324_v63  ;;  %v3399_v43 = vperm.slane %v3395_v51, %v6299_v5  ;;  %v3390_v46 = vsel %vm1441_vm0, %v3389_v33, %v3321_v19  ;;  %v3408_v47 = vrot.slane %v3388_v55, 4 }
 0x555   : >> { %v3352_v61 = vrot.slane %v3347_v32, 4  ;;  %v3355_v0 = vsel %vm1441_vm0, %v3347_v32, %v3354_v4  ;;  %v3364_v3 = vrot.slane %v3351_v54, 4  ;;  %v3367_v48 = vsel %vm1441_vm0, %v3351_v54, %v3366_v57 }
 0x556   : >> { %v3363_v6 = vperm.slane %v3355_v0, %v6306_v20  ;;  %v3375_v1 = vperm.slane %v3367_v48, %v6306_v20  ;;  %v3394_v35 = vperm.slane %v3390_v46, %v6299_v5  ;;  %v3401_v62 = vsel %vm1441_vm0, %v3400_v29, %v3325_v59 }
 0x557   : >> { %v3353_v28 = vsel %vm1441_vm0, %v3352_v61, %v3335_v52  ;;  %v3365_v7 = vsel %vm1441_vm0, %v3364_v3, %v3339_v18  ;;  %v3405_v8 = vperm.slane %v3401_v62, %v6299_v5  ;;  %v3420_v10 = vrot.slane %v3399_v43, 4 }
 0x558   : >> { %v3359_v21 = vperm.slane %v3353_v28, %v6306_v20  ;;  %v3371_v12 = vperm.slane %v3365_v7, %v6306_v20  ;;  %v3378_v39 = vrot.slane %v3363_v6, 4  ;;  %v3382_v41 = vrot.slane %v3375_v1, 4 }
 0x559   : >> { %v3409_v15 = vsel %vm1441_vm0, %v3394_v35, %v3408_v47  ;;  %v3421_v16 = vsel %vm1441_vm0, %v3405_v8, %v3420_v10  ;;  %v3406_v56 = vrot.slane %v3394_v35, 4  ;;  %v3418_v17 = vrot.slane %v3405_v8, 4  ;;  %v4890_v10 = vld [vmem:[%s7422_s23 + $0x38] sm:$0xff] }
 0x55a   : >> { %v3376_v23 = vrot.slane %v3359_v21, 4  ;;  %v3379_v22 = vsel %vm1441_vm0, 0.0, %v3378_v39  ;;  %v3380_v37 = vrot.slane %v3371_v12, 4  ;;  %v3383_v18 = vsel %vm1441_vm0, 0.0, %v3382_v41  ;;  %3593 = vmatpush.bf16.msrb.mxu2 %v4890_v10  ;;  %v4901_v10 = vld [vmem:[%s7425_s25 + $0x54] sm:$0xf] }
 0x55b   : >> { %v3438_v60 = vsel %vm1441_vm0, %v3378_v39, %v3359_v21  ;;  %v3443_v58 = vrot.slane %v3379_v22, 4  ;;  %v3449_v34 = vsel %vm1441_vm0, %v3382_v41, %v3371_v12  ;;  %v3454_v11 = vrot.slane %v3383_v18, 4  ;;  %v4889_v21 = vld [vmem:[%s7422_s23 + $0x30] sm:$0xff]  ;;  %v4888_v12 = vld [vmem:[%s7422_s23 + $0x28] sm:$0xff]  ;;  %v4887_v39 = vld [vmem:[%s7422_s23 + $0x20] sm:$0xff] }
 0x55c   : >> { %v3377_v44 = vsel %vm1441_vm0, 0.0, %v3376_v23  ;;  %v3381_v24 = vsel %vm1441_vm0, 0.0, %v3380_v37  ;;  %v3442_v49 = vperm.slane %v3438_v60, %v6299_v5  ;;  %v3453_v31 = vperm.slane %v3449_v34, %v6299_v5  ;;  %v4886_v41 = vld [vmem:[%s7422_s23 + $0x18] sm:$0xff] }
 0x55d   : >> { %v3417_v30 = vperm.slane %v3409_v15, %v6306_v20  ;;  %v3429_v26 = vperm.slane %v3421_v16, %v6306_v20  ;;  %v3444_v36 = vsel %vm1441_vm0, %v3443_v58, %v3377_v44  ;;  %v3455_v40 = vsel %vm1441_vm0, %v3454_v11, %v3381_v24  ;;  %v4885_v15 = vld [vmem:[%s7422_s23 + $0x10] sm:$0xff]  ;;  %v4884_v16 = vld [vmem:[%s7422_s23 + $0x8] sm:$0xff] }
 0x55e   : >> { %v3448_v27 = vperm.slane %v3444_v36, %v6299_v5  ;;  %v3459_v52 = vperm.slane %v3455_v40, %v6299_v5  ;;  %v3462_v14 = vrot.slane %v3442_v49, 4  ;;  %v3474_v42 = vrot.slane %v3453_v31, 4  ;;  %3594 = vmatpush.bf16.msrb.mxu2 %v4889_v21  ;;  %v5133_v40 = vld [vmem:[%s7424_s7] ss:$0 sm:$0xff]  ;;  %s7431_s7 = sld [smem:[#allocation37_spill]] }
 0x55f   : >> { %v3436_v57 = vrot.slane %v3417_v30, 4  ;;  %v3434_v38 = vrot.slane %v3429_v26, 4  ;;  %v3407_v45 = vsel %vm1441_vm0, %v3406_v56, %v3388_v55  ;;  %v3419_v13 = vsel %vm1441_vm0, %v3418_v17, %v3399_v43  ;;  %v4883_v56 = vld [vmem:[%s7422_s23] sm:$0xff] }
 0x560   : >> { %v3463_v53 = vsel %vm1441_vm0, %v3448_v27, %v3462_v14  ;;  %v3475_v9 = vsel %vm1441_vm0, %v3459_v52, %v3474_v42  ;;  %v3413_v50 = vperm.slane %v3407_v45, %v6306_v20  ;;  %v3425_v33 = vperm.slane %v3419_v13, %v6306_v20  ;;  %v5181_v14 = vld [vmem:[%s6703_s12] sm:$0xff]  ;;  %v5182_v45 = vld [vmem:[%s6703_s12 + $0x8] sm:$0xff] }
 0x561   : >> { %v3471_v4 = vperm.slane %v3463_v53, %v6306_v20  ;;  %v3483_v2 = vperm.slane %v3475_v9, %v6306_v20  ;;  %v3460_v63 = vrot.slane %v3448_v27, 4  ;;  %v3472_v25 = vrot.slane %v3459_v52, 4 }
 0x562   : >> { %v3430_v19 = vrot.slane %v3425_v33, 4  ;;  %v3437_v51 = vsel %vm1441_vm0, %v3429_v26, %v3436_v57  ;;  %v3435_v29 = vsel %vm1441_vm0, %v3434_v38, %v3417_v30  ;;  %v3432_v54 = vrot.slane %v3413_v50, 4  ;;  %3595 = vmatpush.bf16.msrb.mxu2 %v4888_v12  ;;  %v4745_v12 = vld [vmem:[%s7425_s25 + $0x58] sm:$0xf0] }
 0x563   : >> { %v3490_v55 = vrot.slane %v3471_v4, 4  ;;  %v3488_v32 = vrot.slane %v3483_v2, 4  ;;  %v3461_v59 = vsel %vm1441_vm0, %v3460_v63, %v3442_v49  ;;  %v3473_v43 = vsel %vm1441_vm0, %v3472_v25, %v3453_v31 }
 0x564   : >> { %v3431_v46 = vsel %vm1441_vm0, %v3430_v19, %v3413_v50  ;;  %v3467_v0 = vperm.slane %v3461_v59, %v6306_v20  ;;  %v3479_v3 = vperm.slane %v3473_v43, %v6306_v20  ;;  %v3433_v62 = vsel %vm1441_vm0, %v3425_v33, %v3432_v54  ;;  %v4759_v43 = vld [vmem:[%s7425_s25 + $0x70] sm:$0xf]  ;;  %p4829_p12 = scmp.ne.s32.totalorder %s7431_s7, 1 }
 0x565   : >> { %v3491_v47 = vsel %vm1441_vm0, %v3483_v2, %v3490_v55  ;;  %v3489_v61 = vsel %vm1441_vm0, %v3488_v32, %v3471_v4  ;;  %v5687_v53 = vmov 128.0   ;;  %s7432_s20 = sld [smem:[#allocation74_spill]] (!%p4829_p12)  ;;  %s4077_s10 = scalar_lea.vmem (!%p4829_p12), %s1124_s30, %s6696_s13 [#allocation23] }
 0x566   : >> { %v5127_v48 = vpack.i.bf16 %v3491_v47, %v3437_v51  ;;  %v5122_v6 = vpack.i.bf16 %v3489_v61, %v3435_v29  ;;  %v3484_v1 = vrot.slane %v3479_v3, 4  ;;  %v3486_v35 = vrot.slane %v3467_v0, 4  ;;  %3596 = vmatpush.bf16.msrb.mxu2 %v4887_v39  ;;  %v4905_v47 = vld [vmem:[%s7425_s25 + $0x74] sm:$0xf]  ;;  %s7433_s14 = sld [smem:[#allocation75_spill]] (!%p4829_p12) }
 0x567   : >> { %5171 = vrcp.f32 %v5687_v53  ;;  %v4748_v39 = vor.u32 %v4901_v10, %v4745_v12  ;;  %v4705_v53 = vld [vmem:[%s7425_s25 + $0x8] sm:$0xf0] }
 0x568   : >> { %5128 = vrot.lane.b32.xlu2 %v5127_v48, %s5686_s22  ;;  %5123 = vrot.lane.b32.xlu1 %v5122_v6, %s5685_s15  ;;  %v3487_v28 = vsel %vm1441_vm0, %v3479_v3, %v3486_v35  ;;  %v3485_v7 = vsel %vm1441_vm0, %v3484_v1, %v3467_v0  ;;  %v4761_v0 = vld [vmem:[%s7425_s25 + $0x78] sm:$0xf0]  ;;  %v4751_v48 = vld [vmem:[%s7425_s25 + $0x60] sm:$0xf] }
 0x569   : >> { %v5117_v8 = vpack.i.bf16 %v3487_v28, %v3433_v62  ;;  %v4764_v3 = vor.u32 %v4905_v47, %v4761_v0  ;;  %v4904_v6 = vld [vmem:[%s7425_s25 + $0x64] sm:$0xf0]  ;;  %v4903_v1 = vld [vmem:[%s7425_s25 + $0x64] sm:$0xf]  ;;  %v4753_v62 = vld [vmem:[%s7425_s25 + $0x68] sm:$0xf0] }
 0x56a   : >> { %3597 = vmatpush.bf16.msrb.mxu2 %v4886_v41  ;;  %v4752_v35 = vor.u32 %v4904_v6, %v4751_v48  ;;  %v4756_v28 = vor.u32 %v4903_v1, %v4753_v62  ;;  %v4735_v41 = vld [vmem:[%s7425_s25 + $0x40] sm:$0xf]  ;;  %v4912_v47 = vld [vmem:[%s7426_s27 + $0x28] sm:$0xff] }
 0x56b   : >> { %5118 = vrot.lane.b32.xlu0 %v5117_v8, %s5684_s0  ;;  %3785 = vmatpush.bf16.msra.mxu0 %v4764_v3  ;;  %v4902_v8 = vld [vmem:[%s7425_s25 + $0x54] sm:$0xf0]  ;;  %v4919_v3 = vld [vmem:[%s7426_s27 + $0x60] sm:$0xff] }
 0x56d   : >> { %v5172_v9 = vpop.eup %5171 }
 0x56e   : >> { %3598 = vmatpush.bf16.msrb.mxu2 %v4885_v15  ;;  %v3616_v50 = vmul.f32 128.0, %v5172_v9  ;;  %v4900_v15 = vld [vmem:[%s7425_s25 + $0x44] sm:$0xf0] }
 0x56f   : >> { %3786 = vmatpush.bf16.msra.mxu0 %v4756_v28 }
 0x570   : >> { %v3617_v33 = vsub.f32 1.0, %v3616_v50 }
 0x572   : >> { %3599 = vmatpush.bf16.msrb.mxu2 %v4884_v16  ;;  %v3618_v4 = vmul.f32 %v5172_v9, %v3617_v33  ;;  %v4899_v16 = vld [vmem:[%s7425_s25 + $0x44] sm:$0xf] }
 0x573   : >> { %3787 = vmatpush.bf16.msra.mxu0 %v4748_v39 }
 0x574   : >> { %v3619_v2 = vadd.f32 %v5172_v9, %v3618_v4  ;;  %v4922_v4 = vld [vmem:[%s7426_s27 + $0x78] sm:$0xff] }
 0x576   : >> { %3600 = vmatpush.bf16.msrb.mxu2 %v4883_v56  ;;  %v4736_v56 = vor.u32 %v4900_v15, %v4735_v41 }
 0x57a   : >> { %3951 = vmatpush.bf16.msra.mxu2 %v4922_v4 }
 0x5c2   : >> { %v5129_v23 = vpop.permute.xlu2 %5128 }
 0x5c3   : >> { %v5131_v34 = vunpack.i.h.bf16 %v5129_v23  ;;  %v5130_v11 = vunpack.i.l.bf16 %v5129_v23 }
 0x5da   : >> { %v5124_v17 = vpop.permute.xlu1 %5123 }
 0x5db   : >> { %v5126_v22 = vunpack.i.h.bf16 %v5124_v17  ;;  %v5125_v37 = vunpack.i.l.bf16 %v5124_v17  ;;  %v4737_v17 = vld [vmem:[%s7425_s25 + $0x48] sm:$0xf0] }
 0x5dc   : >> { %v4740_v23 = vor.u32 %v4899_v16, %v4737_v17 }
 0x5dd   : >> { %v5119_v18 = vpop.permute.xlu0 %5118 }
 0x5de   : >> { %v5121_v60 = vunpack.i.h.bf16 %v5119_v18  ;;  %v5120_v58 = vunpack.i.l.bf16 %v5119_v18  ;;  %3788 = vmatpush.bf16.msra.mxu0 %v4740_v23  ;;  %v4897_v18 = vld [vmem:[%s7425_s25 + $0x34] sm:$0xf] }
 0x5e0   : >> { %v3517_v44 = vsel %vm2763_vm2, %v3485_v7, %v5121_v60  ;;  %v3516_v24 = vsel %vm2763_vm2, %v3431_v46, %v5120_v58  ;;  %vm3620_vm2 = vweird.f32 %v5172_v9  ;;  %v4906_v46 = vld [vmem:[%s7425_s25 + $0x74] sm:$0xf0]  ;;  %v4743_v7 = vld [vmem:[%s7425_s25 + $0x50] sm:$0xf]  ;;  %v4729_v58 = vld [vmem:[%s7425_s25 + $0x38] sm:$0xf0] }
 0x5e1   : >> { %v3519_v49 = vsel %vm3518_vm7, %v3516_v24, %v5125_v37  ;;  %v3520_v31 = vsel %vm3518_vm7, %v3517_v44, %v5126_v22  ;;  %v7083_v19 = vsel %vm3620_vm2, %v5172_v9, %v3619_v2  ;;  %v4760_v61 = vor.u32 %v4906_v46, %v4759_v43  ;;  %v4727_v22 = vld [vmem:[%s7425_s25 + $0x30] sm:$0xf]  ;;  %v4898_v37 = vld [vmem:[%s7425_s25 + $0x34] sm:$0xf0]  ;;  %v4896_v44 = vld [vmem:[%s7425_s25 + $0x24] sm:$0xf0] }
 0x5e2   : >> { %v3522_v30 = vsel %vm3521_vm8, %v3519_v49, %v5130_v11  ;;  %v3523_v26 = vsel %vm3521_vm8, %v3520_v31, %v5131_v34  ;;  %v4744_v21 = vor.u32 %v4902_v8, %v4743_v7  ;;  %v4728_v60 = vor.u32 %v4898_v37, %v4727_v22  ;;  %v4719_v11 = vld [vmem:[%s7425_s25 + $0x20] sm:$0xf]  ;;  %v4895_v24 = vld [vmem:[%s7425_s25 + $0x24] sm:$0xf]  ;;  %v4721_v31 = vld [vmem:[%s7425_s25 + $0x28] sm:$0xf0] }
 0x5e3   : >> { %v3524_v36 = vpack.c.bf16 %v3523_v26, %v3522_v30  ;;  %3771 = vmatpush.bf16.msrb.mxu3 %v4760_v61  ;;  %v4732_v34 = vor.u32 %v4897_v18, %v4729_v58  ;;  %v4720_v49 = vor.u32 %v4896_v44, %v4719_v11  ;;  %v4724_v30 = vor.u32 %v4895_v24, %v4721_v31  ;;  %v4711_v26 = vld [vmem:[%s7425_s25 + $0x10] sm:$0xf]  ;;  %v4914_v2 = vld [vmem:[%s7426_s27 + $0x38] sm:$0xff]  ;;  %v4920_v46 = vld [vmem:[%s7426_s27 + $0x68] sm:$0xff] }
 0x5e4   : >> { %3937 = vmatpush.bf16.msrb.mxu1 %v4914_v2  ;;  %v4918_v22 = vld [vmem:[%s7426_s27 + $0x58] sm:$0xff]  ;;  %v4917_v37 = vld [vmem:[%s7426_s27 + $0x50] sm:$0xff]  ;;  %v4908_v11 = vld [vmem:[%s7426_s27 + $0x8] sm:$0xff] }
 0x5e5   : >> { %3601 = vmatmul.bf16.vlgmr.msrb.gmra.mxu2 %v3524_v36  ;;  %3789 = vmatpush.bf16.msra.mxu0 %v4732_v34  ;;  %v4894_v36 = vld [vmem:[%s7425_s25 + $0x14] sm:$0xf0]  ;;  %v4909_v58 = vld [vmem:[%s7426_s27 + $0x10] sm:$0xff]  ;;  %v4915_v34 = vld [vmem:[%s7426_s27 + $0x40] sm:$0xff] }
 0x5e6   : >> { %v4910_v18 = vld [vmem:[%s7426_s27 + $0x18] sm:$0xff]  ;;  %v4907_v44 = vld [vmem:[%s7426_s27] sm:$0xff] }
 0x5e7   : >> { %3772 = vmatpush.bf16.msrb.mxu3 %v4752_v35  ;;  %v3685_v24 = vld [vmem:[%s6193_s9] sm:$0x3] }
 0x5e8   : >> { %v3688_v31 = vperm.slane %v3685_v24, 1 }
 0x5e9   : >> { %3790 = vmatpush.bf16.msra.mxu0 %v4724_v30 }
 0x5eb   : >> { %3773 = vmatpush.bf16.msrb.mxu3 %v4744_v21  ;;  %v5134_v21 = vld [vmem:[%s1140_s18] ss:$0 sm:$0xff] }
 0x5ef   : >> { %3774 = vmatpush.bf16.msrb.mxu3 %v4736_v56 }
 0x5f3   : >> { %3775 = vmatpush.bf16.msrb.mxu3 %v4728_v60  ;;  %v4916_v60 = vld [vmem:[%s7426_s27 + $0x48] sm:$0xff] }
 0x5f7   : >> { %3776 = vmatpush.bf16.msrb.mxu3 %v4720_v49 }
 0x668   : >> { %v3602_v27 = vpop.f32.mrf.mxu2 }
 0x669   : >> { %v3603_v52 = vadd.f32 %v5133_v40, %v3602_v27 }
 0x66b   : >> { %v3607_v42 = vadd.f32 %v5181_v14, %v3603_v52  ;;  %v4712_v52 = vor.u32 %v4894_v36, %v4711_v26  ;;  %v4713_v14 = vld [vmem:[%s7425_s25 + $0x18] sm:$0xf0] }
 0x66d   : >> { %3611 = vadd.xlane.f32.xlu0 %v3607_v42  ;;  %3777 = vmatpush.bf16.msrb.mxu3 %v4712_v52 }
 0x670   : >> { %v3604_v57 = vpop.f32.mrf.mxu2 }
 0x671   : >> { %v3605_v38 = vadd.f32 %v5133_v40, %v3604_v57  ;;  %v4893_v40 = vld [vmem:[%s7425_s25 + $0x14] sm:$0xf]  ;;  %v4892_v57 = vld [vmem:[%s7425_s25 + $0x4] sm:$0xf0] }
 0x673   : >> { %v3608_v13 = vadd.f32 %v5182_v45, %v3605_v38  ;;  %v4716_v45 = vor.u32 %v4893_v40, %v4713_v14  ;;  %v3687_v40 = vperm.slane %v3685_v24, 0 }
 0x675   : >> { %3613 = vadd.xlane.f32.xlu1 %v3608_v13  ;;  %3791 = vmatpush.bf16.msra.mxu0 %v4716_v45 }
 0x6e0   : >> { %v3612_v63 = vpop.xlane.xlu0 %3611 }
 0x6e1   : >> { %v3622_v25 = vmul.f32 %v7083_v19, %v3612_v63 }
 0x6e3   : >> { %v7086_v51 = vsub.f32 %v3607_v42, %v3622_v25  ;;  %v4703_v42 = vld [vmem:[%s7425_s25] sm:$0xf] }
 0x6e4   : >> { %v4704_v50 = vor.u32 %v4892_v57, %v4703_v42 }
 0x6e5   : >> { %v3626_v55 = vmul.f32 %v7086_v51, %v7086_v51 }
 0x6e6   : >> { %3778 = vmatpush.bf16.msrb.mxu3 %v4704_v50  ;;  %v5136_v50 = vld [vmem:[%s1137_s6] ss:$0 sm:$0xff] }
 0x6e7   : >> { %3628 = vadd.xlane.f32.xlu2 %v3626_v55  ;;  %v4921_v55 = vld [vmem:[%s7426_s27 + $0x70] sm:$0xff] }
 0x6e8   : >> { %v3614_v29 = vpop.xlane.xlu1 %3613  ;;  %3952 = vmatpush.bf16.msra.mxu2 %v4921_v55 }
 0x6e9   : >> { %v3623_v32 = vmul.f32 %v7083_v19, %v3614_v29  ;;  %v4913_v29 = vld [vmem:[%s7426_s27 + $0x30] sm:$0xff] }
 0x6ea   : >> { %3938 = vmatpush.bf16.msrb.mxu1 %v4913_v29 }
 0x6eb   : >> { %v7091_v54 = vsub.f32 %v3608_v13, %v3623_v32  ;;  %v4891_v13 = vld [vmem:[%s7425_s25 + $0x4] sm:$0xf] }
 0x6ec   : >> { %v4708_v33 = vor.u32 %v4891_v13, %v4705_v53  ;;  %3953 = vmatpush.bf16.msra.mxu2 %v4920_v46 }
 0x6ed   : >> { %v3627_v59 = vmul.f32 %v7091_v54, %v7091_v54 }
 0x6ee   : >> { %3792 = vmatpush.bf16.msra.mxu0 %v4708_v33  ;;  %3939 = vmatpush.bf16.msrb.mxu1 %v4912_v47 }
 0x6ef   : >> { %3630 = vadd.xlane.f32.xlu0 %v3627_v59 }
 0x6f0   : >> { %3954 = vmatpush.bf16.msra.mxu2 %v4919_v3 }
 0x6f4   : >> { %3955 = vmatpush.bf16.msra.mxu2 %v4918_v22 }
 0x6f8   : >> { %3956 = vmatpush.bf16.msra.mxu2 %v4917_v37 }
 0x6fc   : >> { %3957 = vmatpush.bf16.msra.mxu2 %v4916_v60 }
 0x700   : >> { %3958 = vmatpush.bf16.msra.mxu2 %v4915_v34 }
 0x75a   : >> { %v3629_v27 = vpop.xlane.xlu2 %3628 }
 0x75b   : >> { %v3632_v38 = vmul.f32 %v3629_v27, %v7083_v19 }
 0x75d   : >> { %v3634_v9 = vadd.f32 1e-05, %v3632_v38 }
 0x75f   : >> { %5173 = vrsqrt.f32 %v3634_v9  ;;  %vm3642_vm10 = vweird.f32 %v3634_v9 }
 0x762   : >> { %v3631_v63 = vpop.xlane.xlu0 %3630 }
 0x763   : >> { %v3633_v25 = vmul.f32 %v3631_v63, %v7083_v19 }
 0x765   : >> { %v5174_v32 = vpop.eup %5173  ;;  %v3635_v59 = vadd.f32 1e-05, %v3633_v25 }
 0x766   : >> { %v3637_v43 = vmul.f32 %v5174_v32, %v3634_v9  ;;  %vm3643_vm9 = vweird.f32 %v5174_v32 }
 0x767   : >> { %5175 = vrsqrt.f32 %v3635_v59  ;;  %vm3644_vm11 = vmor %vm3642_vm10, %vm3643_vm9  ;;  %vm3652_vm13 = vweird.f32 %v3635_v59 }
 0x768   : >> { %v3638_v61 = vmul.f32 %v5174_v32, %v3637_v43 }
 0x76a   : >> { %v3639_v0 = vmul.f32 0.5, %v3638_v61 }
 0x76c   : >> { %v3640_v48 = vsub.f32 1.5, %v3639_v0 }
 0x76d   : >> { %v5176_v6 = vpop.eup %5175 }
 0x76e   : >> { %v3641_v1 = vmul.f32 %v5174_v32, %v3640_v48  ;;  %v3647_v35 = vmul.f32 %v5176_v6, %v3635_v59  ;;  %vm3653_vm12 = vweird.f32 %v5176_v6 }
 0x76f   : >> { %vm3654_vm14 = vmor %vm3652_vm13, %vm3653_vm12 }
 0x770   : >> { %v3648_v62 = vmul.f32 %v5176_v6, %v3647_v35  ;;  %v3645_v28 = vsel %vm3644_vm11, %v5174_v32, %v3641_v1 }
 0x771   : >> { %v3656_v10 = vmul.f32 %v3645_v28, %v7086_v51  ;;  %v5135_v51 = vld [vmem:[%s1143_s24] ss:$0 sm:$0xff] }
 0x772   : >> { %v3649_v7 = vmul.f32 0.5, %v3648_v62 }
 0x773   : >> { %v3661_v15 = vmul.f32 %v5134_v21, %v3656_v10 }
 0x774   : >> { %v3650_v8 = vsub.f32 1.5, %v3649_v7 }
 0x775   : >> { %v3666_v56 = vadd.f32 %v5135_v51, %v3661_v15 }
 0x776   : >> { %v3651_v12 = vmul.f32 %v5176_v6, %v3650_v8 }
 0x778   : >> { %v3655_v39 = vsel %vm3654_vm14, %v5176_v6, %v3651_v12 }
 0x779   : >> { %v3657_v41 = vmul.f32 %v3655_v39, %v7091_v54  ;;  %v4911_v54 = vld [vmem:[%s7426_s27 + $0x20] sm:$0xff] }
 0x77a   : >> { %3940 = vmatpush.bf16.msrb.mxu1 %v4911_v54  ;;  %v5138_v54 = vld [vmem:[%s1146_s21] ss:$0 sm:$0xff] }
 0x77b   : >> { %v3662_v16 = vmul.f32 %v5134_v21, %v3657_v41 }
 0x77d   : >> { %v3667_v17 = vadd.f32 %v5135_v51, %v3662_v16 }
 0x77e   : >> { %3941 = vmatpush.bf16.msrb.mxu1 %v4910_v18 }
 0x77f   : >> { %v3668_v23 = vpack.c.bf16 %v3667_v17, %v3666_v56 }
 0x781   : >> { %3779 = vmatmul.bf16.vlgmr.msrb.gmra.mxu3 %v3668_v23  ;;  %3793 = vmatmul.bf16.vlgmr.msra.gmra.mxu0 %v3668_v23 }
 0x782   : >> { %3942 = vmatpush.bf16.msrb.mxu1 %v4909_v58 }
 0x786   : >> { %3943 = vmatpush.bf16.msrb.mxu1 %v4908_v11 }
 0x78a   : >> { %3944 = vmatpush.bf16.msrb.mxu1 %v4907_v44 }
 0x7fe   : >> { %v3794_v49 = vpop.f32.mrf.mxu0 }
 0x7ff   : >> { %v3795_v26 = vadd.f32 %v3794_v49, %v3688_v31 }
 0x801   : >> { %v3800_v52 = vmax.f32 %v3795_v26, 0.0 }
 0x804   : >> { %v3780_v30 = vpop.f32.mrf.mxu3 }
 0x805   : >> { %v3781_v42 = vadd.f32 %v3780_v30, %v3687_v40 }
 0x806   : >> { %v3796_v36 = vpop.f32.mrf.mxu0 }
 0x807   : >> { %v3797_v27 = vadd.f32 %v3796_v36, %v3688_v31  ;;  %v3799_v13 = vmax.f32 %v3781_v42, 0.0 }
 0x809   : >> { %v3802_v14 = vmax.f32 %v3797_v27, 0.0 }
 0x80b   : >> { %v3804_v57 = vpack.c.bf16 %v3802_v14, %v3800_v52 }
 0x80c   : >> { %v3782_v38 = vpop.f32.mrf.mxu3 }
 0x80d   : >> { %v3783_v45 = vadd.f32 %v3782_v38, %v3687_v40  ;;  %3959 = vmatmul.bf16.vlgmr.msra.gmra.mxu2 %v3804_v57 }
 0x80f   : >> { %v3801_v53 = vmax.f32 %v3783_v45, 0.0 }
 0x811   : >> { %v3803_v9 = vpack.c.bf16 %v3801_v53, %v3799_v13 }
 0x813   : >> { %3945 = vmatmul.bf16.vlgmr.msrb.gmra.mxu1 %v3803_v9 }
 0x890   : >> { %v3946_v33 = vpop.f32.mrf.mxu1  ;;  %v3960_v4 = vpop.f32.mrf.mxu2 }
 0x891   : >> { %v3947_v2 = vadd.f32 %v5136_v50, %v3946_v33 }
 0x893   : >> { %v3961_v63 = vadd.f32 %v3960_v4, %v3947_v2 }
 0x895   : >> { %v3965_v25 = vadd.f32 %v3961_v63, %v3666_v56 }
 0x897   : >> { %3969 = vadd.xlane.f32.xlu1 %v3965_v25 }
 0x898   : >> { %v3948_v55 = vpop.f32.mrf.mxu1  ;;  %v3962_v32 = vpop.f32.mrf.mxu2 }
 0x899   : >> { %v3949_v29 = vadd.f32 %v5136_v50, %v3948_v55 }
 0x89b   : >> { %v3963_v59 = vadd.f32 %v3962_v32, %v3949_v29 }
 0x89d   : >> { %v3966_v43 = vadd.f32 %v3963_v59, %v3667_v17  ;;  %v5137_v17 = vld [vmem:[%s998_s2] ss:$0 sm:$0xff] }
 0x89f   : >> { %3971 = vadd.xlane.f32.xlu0 %v3966_v43 }
 0x90a   : >> { %v3970_v46 = vpop.xlane.xlu1 %3969 }
 0x90b   : >> { %v3973_v47 = vmul.f32 %v3970_v46, %v7083_v19 }
 0x90d   : >> { %v3975_v61 = vsub.f32 %v3965_v25, %v3973_v47 }
 0x90f   : >> { %v3977_v0 = vmul.f32 %v3975_v61, %v3975_v61 }
 0x911   : >> { %3979 = vadd.xlane.f32.xlu2 %v3977_v0 }
 0x912   : >> { %v3972_v3 = vpop.xlane.xlu0 %3971 }
 0x913   : >> { %v3974_v48 = vmul.f32 %v3972_v3, %v7083_v19 }
 0x915   : >> { %v3976_v6 = vsub.f32 %v3966_v43, %v3974_v48 }
 0x917   : >> { %v3978_v1 = vmul.f32 %v3976_v6, %v3976_v6 }
 0x919   : >> { %3981 = vadd.xlane.f32.xlu1 %v3978_v1 }
 0x984   : >> { %v3980_v35 = vpop.xlane.xlu2 %3979 }
 0x985   : >> { %v3983_v62 = vmul.f32 %v3980_v35, %v7083_v19 }
 0x987   : >> { %v3985_v28 = vadd.f32 1e-05, %v3983_v62 }
 0x989   : >> { %5177 = vrsqrt.f32 %v3985_v28  ;;  %vm3993_vm15 = vweird.f32 %v3985_v28 }
 0x98c   : >> { %v3982_v7 = vpop.xlane.xlu1 %3981 }
 0x98d   : >> { %v3984_v8 = vmul.f32 %v3982_v7, %v7083_v19 }
 0x98f   : >> { %v5178_v10 = vpop.eup %5177  ;;  %v3986_v21 = vadd.f32 1e-05, %v3984_v8 }
 0x990   : >> { %v3988_v12 = vmul.f32 %v5178_v10, %v3985_v28  ;;  %vm3994_vm1 = vweird.f32 %v5178_v10 }
 0x991   : >> { %5179 = vrsqrt.f32 %v3986_v21  ;;  %vm3995_vm4 = vmor %vm3993_vm15, %vm3994_vm1  ;;  %vm4003_vm5 = vweird.f32 %v3986_v21 }
 0x992   : >> { %v3989_v39 = vmul.f32 %v5178_v10, %v3988_v12 }
 0x994   : >> { %v3990_v41 = vmul.f32 0.5, %v3989_v39 }
 0x996   : >> { %v3991_v15 = vsub.f32 1.5, %v3990_v41 }
 0x997   : >> { %v5180_v51 = vpop.eup %5179 }
 0x998   : >> { %v3992_v16 = vmul.f32 %v5178_v10, %v3991_v15  ;;  %v3998_v56 = vmul.f32 %v5180_v51, %v3986_v21  ;;  %vm4004_vm3 = vweird.f32 %v5180_v51 }
 0x999   : >> { %vm4005_vm6 = vmor %vm4003_vm5, %vm4004_vm3 }
 0x99a   : >> { %v3996_v23 = vsel %vm3995_vm4, %v5178_v10, %v3992_v16  ;;  %v3999_v22 = vmul.f32 %v5180_v51, %v3998_v56 }
 0x99b   : >> { %v4007_v37 = vmul.f32 %v3996_v23, %v3975_v61 }
 0x99c   : >> { %v4000_v18 = vmul.f32 0.5, %v3999_v22 }
 0x99d   : >> { %v4012_v60 = vmul.f32 %v5137_v17, %v4007_v37 }
 0x99e   : >> { %v4001_v58 = vsub.f32 1.5, %v4000_v18 }
 0x99f   : >> { %v4017_v34 = vadd.f32 %v5138_v54, %v4012_v60 }
 0x9a0   : >> { %v4002_v11 = vmul.f32 %v5180_v51, %v4001_v58 }
 0x9a1   : >> { %4019 = vst [vmem:[%s6703_s12] sm:$0xff] %v4017_v34 }
 0x9a2   : >> { %v4006_v44 = vsel %vm4005_vm6, %v5180_v51, %v4002_v11 }
 0x9a3   : >> { %v4008_v24 = vmul.f32 %v4006_v44, %v3976_v6 }
 0x9a5   : >> { %v4013_v49 = vmul.f32 %v5137_v17, %v4008_v24  ;;  %4024 = sbr.rel (%p4829_p12) target bundleno = 2749 (0xabd), region = 159 }
 0x9a7   : >> { %v4018_v31 = vadd.f32 %v5138_v54, %v4013_v49 }
 0x9a9   : >> { %4020 = vst [vmem:[%s6703_s12 + $0x8] sm:$0xff] %v4018_v31 }
 0x9aa   : >> { %4027 = vadd.xlane.f32.xlu0 %v4017_v34  ;;  %v5183_v32 = vld [vmem:[%s7432_s20] ss:$0 sm:$0xff] }
 0x9ab   : >> { %v5184_v46 = vld [vmem:[%s7433_s14] ss:$0 sm:$0xff] }
 0x9b2   : >> { %4029 = vadd.xlane.f32.xlu0 %v4018_v31 }
 0xa1d   : >> { %v4028_v30 = vpop.xlane.xlu0 %4027 }
 0xa1e   : >> { %v4031_v26 = vmul.f32 %v4028_v30, %v7083_v19 }
 0xa20   : >> { %v4033_v36 = vsub.f32 %v4017_v34, %v4031_v26 }
 0xa22   : >> { %v4035_v40 = vmul.f32 %v4033_v36, %v4033_v36 }
 0xa24   : >> { %4037 = vadd.xlane.f32.xlu1 %v4035_v40 }
 0xa25   : >> { %v4030_v27 = vpop.xlane.xlu0 %4029 }
 0xa26   : >> { %v4032_v52 = vmul.f32 %v4030_v27, %v7083_v19 }
 0xa28   : >> { %v4034_v14 = vsub.f32 %v4018_v31, %v4032_v52 }
 0xa2a   : >> { %v4036_v42 = vmul.f32 %v4034_v14, %v4034_v14 }
 0xa2c   : >> { %4039 = vadd.xlane.f32.xlu1 %v4036_v42 }
 0xa97   : >> { %v4038_v57 = vpop.xlane.xlu1 %4037 }
 0xa98   : >> { %v4041_v38 = vmul.f32 %v4038_v57, %v7083_v19 }
 0xa9a   : >> { %v4043_v45 = vadd.f32 1e-05, %v4041_v38 }
 0xa9c   : >> { %5185 = vrsqrt.f32 %v4043_v45  ;;  %vm4051_vm8 = vweird.f32 %v4043_v45 }
 0xa9f   : >> { %v4040_v13 = vpop.xlane.xlu1 %4039 }
 0xaa0   : >> { %v4042_v53 = vmul.f32 %v4040_v13, %v7083_v19 }
 0xaa2   : >> { %v5186_v9 = vpop.eup %5185  ;;  %v4044_v50 = vadd.f32 1e-05, %v4042_v53 }
 0xaa3   : >> { %v4046_v33 = vmul.f32 %v5186_v9, %v4043_v45  ;;  %vm4052_vm7 = vweird.f32 %v5186_v9 }
 0xaa4   : >> { %5187 = vrsqrt.f32 %v4044_v50  ;;  %vm4053_vm2 = vmor %vm4051_vm8, %vm4052_vm7  ;;  %vm4061_vm10 = vweird.f32 %v4044_v50 }
 0xaa5   : >> { %v4047_v4 = vmul.f32 %v5186_v9, %v4046_v33 }
 0xaa7   : >> { %v4048_v2 = vmul.f32 0.5, %v4047_v4 }
 0xaa9   : >> { %v4049_v63 = vsub.f32 1.5, %v4048_v2 }
 0xaaa   : >> { %v5188_v25 = vpop.eup %5187 }
 0xaab   : >> { %v4050_v55 = vmul.f32 %v5186_v9, %v4049_v63  ;;  %v4056_v29 = vmul.f32 %v5188_v25, %v4044_v50  ;;  %vm4062_vm9 = vweird.f32 %v5188_v25 }
 0xaac   : >> { %vm4063_vm11 = vmor %vm4061_vm10, %vm4062_vm9 }
 0xaad   : >> { %v4054_v19 = vsel %vm4053_vm2, %v5186_v9, %v4050_v55  ;;  %v4057_v59 = vmul.f32 %v5188_v25, %v4056_v29 }
 0xaae   : >> { %v4065_v43 = vmul.f32 %v4054_v19, %v4033_v36 }
 0xaaf   : >> { %v4058_v47 = vmul.f32 0.5, %v4057_v59 }
 0xab0   : >> { %v4070_v61 = vmul.f32 %v5183_v32, %v4065_v43 }
 0xab1   : >> { %v4059_v0 = vsub.f32 1.5, %v4058_v47 }
 0xab2   : >> { %v4075_v3 = vadd.f32 %v5184_v46, %v4070_v61 }
 0xab3   : >> { %v4060_v48 = vmul.f32 %v5188_v25, %v4059_v0 }
 0xab4   : >> { %4078 = vst [vmem:[%s4077_s10] sm:$0xff] %v4075_v3 }
 0xab5   : >> { %v4064_v6 = vsel %vm4063_vm11, %v5188_v25, %v4060_v48 }
 0xab6   : >> { %v4066_v1 = vmul.f32 %v4064_v6, %v4034_v14 }
 0xab8   : >> { %v4071_v35 = vmul.f32 %v5183_v32, %v4066_v1 }
 0xaba   : >> { %v4076_v62 = vadd.f32 %v5184_v46, %v4071_v35 }
 0xabc   : >> { %4079 = vst [vmem:[%s4077_s10 + $0x8] sm:$0xff] %v4076_v62 }
 0xabd PF: >> { %s2397_s11 = sadd.s32 1, %s5673_s11  }
 0xabe   : >> { %p2394_p13 = scmp.ge.s32.totalorder %s2397_s11, 2  }
 0xabf   : > { %s7434_s13 = sld [smem:[#allocation38_spill]] (%p2394_p13)  ;;  %s4093_s12 = sshll.u32 (%p2394_p13), %s1124_s30, 4  ;;  %s4094_s12 = int_to_ptr.vmem [resolvable:$true] %s4093_s12 }
 0xac0   : > { %2396 = sbr.rel (!%p2394_p13) target bundleno = 602 (0x25a), region = 304  ;;  %s7435_s0 = sld [smem:[#allocation52_spill]] (%p2394_p13) }
 0xac1   : > { %s7437_s5 = sld [smem:[#allocation76_spill]] (%p2394_p13) }
 0xac5   : > { %s4923_s22 = sshll.u32 %s7434_s13, 5 }
 0xac6   : > { %s4081_s20 = scalar_lea.sflag [#allocation7], %s7435_s0 }
 0xac7   : > { %s4092_s7 = scalar_lea.hbm %s7437_s5, %s4923_s22  ;;  %s5539_s4 = scalar_lea.hbm %s7437_s5, 64 }
 0xac8   : > { %s4095_s28 = sshll.u32 %s4092_s7, 4  ;;  %s4096_s28 = int_to_ptr.hbm [resolvable:$true] %s4095_s28 }
 0xac9   : > { %s5533_s29 = sshra.s32 %s4096_s28, 4  ;;  %s5534_s29 = int_to_ptr.hbm [resolvable:$true] %s5533_s29 }
 0xaca   : > { %s5535_s19 = scalar_lea.hbm %s5534_s29, 32  ;;  %p5540_p1 = scmp.lt.s32.totalorder %s5534_s29, %s7437_s5 }
 0xacb   : > { %p5536_p0 = scmp.ne.s32.totalorder %s5534_s29, %s5535_s19  ;;  %p5541_p3 = scmp.lt.s32.totalorder %s5539_s4, %s5535_s19 }
 0xacd   : > { %p5537_p5 = pnand %p5536_p0, %p5918_p8  ;;  %p5542_p6 = por %p5541_p3, %p5540_p1 }
 0xacf   : > { %p5538_p10 = pneg %p5537_p5 }
 0xad1   : > { %p5543_p9 = pnand %p5542_p6, %p5538_p10 }
 0xad3   : > { %5546 = shalt.err (!%p5543_p9)
}
 0xad4   : > { %s5688_s16 = smov 128   ;;  %s5689_s2 = smov 8  }
 0xad5   : > { %4962 = dma.vmem_to_hbm [thread:$0]  (%p5918_p8), %s4094_s12, 512, %s4096_s28, %s4081_s20, %s5688_s16, %s5688_s16, %s5689_s2  }
 0xad6 PF: > { %s7438_s24 = sld [smem:[#allocation41_spill]] }
 0xad7   : > { %s7439_s17 = sld [smem:[#allocation34_spill]] }
 0xadc   : > { %p5003_p4 = scmp.ge.s32.totalorder %s7438_s24, 2 }
 0xadd   : > { %s4110_s9 = sand.u32 1, %s7439_s17  }
 0xade   : > { %p4999_p7 = pnand %p5003_p4, %p5925_p2  ;;  %s4111_s30 = scalar_lea.sflag [#allocation7], %s4110_s9 }
 0xae0   : > { %p5000_p11 = pneg %p4999_p7 }
 0xae2   : > { %5624 = dma.done.wait (%p5000_p11), %s4111_s30, 512  }
 0xae3   : > { %5626 = vsyncadd (%p5000_p11), %s4111_s30, 4294966784  ;;  %s51_s4 = sadd.s32 1, %s7438_s24   ;;  %s7441_s1 = sld [smem:[#allocation32_spill]] }
 0xae4   : > { %p48_p12 = scmp.ge.s32.totalorder %s51_s4, 6   ;;  %s7442_s22 = sld [smem:[#allocation33_spill]] }
 0xae5   : > { %s7443_s23 = sld [smem:[#allocation46_spill]] }
 0xae6   : > { %s7444_s24 = sld [smem:[#allocation35_spill]] }
 0xae7   : > { %s7445_s2 = sld [smem:[#allocation36_spill]] }
 0xae8   : > { %s7446_s25 = sld [smem:[#allocation47_spill]]  ;;  %50 = sbr.rel (!%p48_p12) target bundleno = 41 (0x29), region = 315 }
 0xae9   : > { %s7447_s3 = sld [smem:[#allocation39_spill]] }
 0xaea   : > { %s7448_s26 = sld [smem:[#allocation40_spill]] }
 0xaeb   : > { %s7449_s27 = sld [smem:[#allocation43_spill]] }
 0xaec   : > { %s7450_s28 = sld [smem:[#allocation44_spill]] }
 0xaed   :  { %4117 = vsyncpa [#allocation6], 1 }
 0xaee   :  { %4119 = vsyncpa [#allocation6 + $0x1], 1 }
 0xaef   :  { %4120 = vsyncpa [#allocation9], 1 }
 0xaf0   :  { %4122 = vsyncpa [#allocation9 + $0x1], 1 }
 0xaf1   :  { %4123 = vsyncpa [#allocation12], 1 }
 0xaf2   :  { %4125 = vsyncpa [#allocation12 + $0x1], 1 }
 0xaf3   :  { %4126 = vsyncpa [#allocation15], 1 }
 0xaf4   :  { %4128 = vsyncpa [#allocation15 + $0x1], 1 }
 0xaf5   :  { %4129 = vsyncpa [#allocation18], 1 }
 0xaf6   :  { %4131 = vsyncpa [#allocation18 + $0x1], 1 }
 0xaf7   :  { %4132 = vsyncpa [#allocation21], 1 }
 0xaf8   :  { %4134 = vsyncpa [#allocation21 + $0x1], 1 }
 0xaf9   :  { %4135 = vsyncpa [#allocation7], 1 }
 0xafa   :  { %4137 = vsyncpa [#allocation7 + $0x1], 1 }

</bundles_post_ra>
